<compile_context>
chip_gen: v7x
topology: tpu7x:2x2x1
jax: 0.10.0
libtpu: 0.0.40
codegen_flags: <defaults>
</compile_context>

<pallas_src>
import jax
import jax.numpy as jnp
import numpy as np
from jax.experimental import pallas as pl
from jax.experimental.pallas import tpu as pltpu

# ---- model hyper-parameters (match nn.TransformerDecoderLayer __init__) ----
D_MODEL = 32
NHEAD = 4
DIM_FF = 64
NUM_LAYERS = 2
HEAD_DIM = D_MODEL // NHEAD
EPS = 1e-5                       # layer_norm_eps default
NEG_INF = -1e9
SCALE = 1.0 / float(HEAD_DIM) ** 0.5
VEC_W = max(3 * D_MODEL, DIM_FF)  # 96: row width of packed bias/LN slab

# rows of the packed "vecs" slab
R_SA_QKV_B, R_SA_OUT_B = 0, 1
R_CA_QKV_B, R_CA_OUT_B = 2, 3
R_FF_B1, R_FF_B2 = 4, 5
R_LN1_W, R_LN1_B, R_LN2_W, R_LN2_B, R_LN3_W, R_LN3_B = 6, 7, 8, 9, 10, 11
N_VEC_ROWS = 12


# ------------------------- fused decoder-stack kernel ------------------------
def fused_decoder_kernel(x_ref, mem_ref, tmask_ref, mmask_ref,
                         w_attn_ref, w_ff_ref, vecs_ref, out_ref):
    D, H, HD, FF = D_MODEL, NHEAD, HEAD_DIM, DIM_FF

    tmask = tmask_ref[...]                 # [T, T] additive f32
    mmask = mmask_ref[...]                 # [T, S]
    T, S = tmask.shape[0], mmask.shape[1]
    x = x_ref[...]                         # [B*T, D]  (batch folded into rows)
    mem = mem_ref[...]                     # [B*S, D]
    B = x.shape[0] // T

    def vec(layer, row, width):            # [1, width] bias / LN slice
        return vecs_ref[layer, row:row + 1, :width]

    def layer_norm(v, w, b):               # biased variance like torch LayerNorm
        mean = jnp.mean(v, axis=-1, keepdims=True)
        c = v - mean
        var = jnp.mean(c * c, axis=-1, keepdims=True)
        return c * jax.lax.rsqrt(var + EPS) * w + b

    def split_heads(t2, rows):
        # [B*rows, D] -> [H*B, rows, HD]  (head-major along the batched axis)
        parts = [t2[:, h * HD:(h + 1) * HD].reshape(B, rows, HD) for h in range(H)]
        return jnp.concatenate(parts, axis=0)

    def merge_heads(g3, rows):
        # [H*B, rows, HD] -> [B*rows, D]
        parts = [g3[h * B:(h + 1) * B] for h in range(H)]
        return jnp.concatenate(parts, axis=-1).reshape(B * rows, D)

    def attention(q2, k2, v2, mask, rows_q, rows_k, wo, bo):
        # q2: [B*rows_q, D], k2/v2: [B*rows_k, D], mask: [rows_q, rows_k]
        qg = split_heads(q2, rows_q)       # [H*B, rows_q, HD]
        kg = split_heads(k2, rows_k)
        vg = split_heads(v2, rows_k)
        s = jnp.einsum("gqe,gke->gqk", qg * SCALE, kg,
                       preferred_element_type=jnp.float32)
        s = s + mask[None]                                  # same mask per (h, b)
        s = s - jnp.max(s, axis=-1, keepdims=True)
        p = jnp.exp(s)
        p = p * pl.reciprocal(jnp.sum(p, axis=-1, keepdims=True), approx=True)
        ctx = jnp.einsum("gqk,gke->gqe", p, vg, preferred_element_type=jnp.float32)
        ctx2 = merge_heads(ctx, rows_q)                     # [B*rows_q, D]
        # single [N,D]x[D,D] output projection (no per-head matmul / head sum)
        return jnp.dot(ctx2, wo, preferred_element_type=jnp.float32) + bo

    for l in range(NUM_LAYERS):            # static unroll; stays in VMEM/vregs
        wsa = w_attn_ref[l, 0, :, :]       # [D, 4D]: [Wqkv^T | Wo^T]
        wca = w_attn_ref[l, 1, :, :]

        # --- self-attention (post-norm; dropout = identity in eval) ---
        qkv = jnp.dot(x, wsa[:, :3 * D], preferred_element_type=jnp.float32) \
            + vec(l, R_SA_QKV_B, 3 * D)
        sa = attention(qkv[:, :D], qkv[:, D:2 * D], qkv[:, 2 * D:3 * D],
                       tmask, T, T, wsa[:, 3 * D:4 * D], vec(l, R_SA_OUT_B, D))
        x = layer_norm(x + sa, vec(l, R_LN1_W, D), vec(l, R_LN1_B, D))

        # --- cross-attention (Q from x, fused KV from memory) ---
        q = jnp.dot(x, wca[:, :D], preferred_element_type=jnp.float32) \
            + vec(l, R_CA_QKV_B, 3 * D)[:, :D]
        kv = jnp.dot(mem, wca[:, D:3 * D], preferred_element_type=jnp.float32) \
            + vec(l, R_CA_QKV_B, 3 * D)[:, D:3 * D]
        ca = attention(q, kv[:, :D], kv[:, D:2 * D],
                       mmask, T, S, wca[:, 3 * D:4 * D], vec(l, R_CA_OUT_B, D))
        x = layer_norm(x + ca, vec(l, R_LN2_W, D), vec(l, R_LN2_B, D))

        # --- feed-forward (ReLU, torch default); weights pre-transposed ---
        w1 = w_ff_ref[l, :D, :FF]          # [D, FF]
        w2 = w_ff_ref[l, D:D + FF, :D]     # [FF, D]
        h = jnp.dot(x, w1, preferred_element_type=jnp.float32) + vec(l, R_FF_B1, FF)
        h = jnp.maximum(h, 0.0)
        ff = jnp.dot(h, w2, preferred_element_type=jnp.float32) + vec(l, R_FF_B2, D)
        x = layer_norm(x + ff, vec(l, R_LN3_W, D), vec(l, R_LN3_B, D))

    out_ref[...] = x


# ------------------------------- wrapper -------------------------------------
def transformer_decoder(tgt_tbd, mem_sbd, tgt_mask=None, memory_mask=None, params=None):
    """Matches TransformerDecoder.forward (eval): tgt [T,B,D], memory [S,B,D]."""
    T, B, D = tgt_tbd.shape
    S = mem_sbd.shape[0]

    x0 = jnp.transpose(tgt_tbd, (1, 0, 2)).reshape(B * T, D)      # [B*T, D]
    mem = jnp.transpose(mem_sbd, (1, 0, 2)).reshape(B * S, D)     # [B*S, D]
    tmask = (jnp.zeros((T, T), jnp.float32) if tgt_mask is None
             else tgt_mask.astype(jnp.float32))                   # small [T, T]
    mmask = (jnp.zeros((T, S), jnp.float32) if memory_mask is None
             else memory_mask.astype(jnp.float32))                # small [T, S]

    vmem = pl.BlockSpec(memory_space=pltpu.MemorySpace.VMEM)
    out = pl.pallas_call(
        fused_decoder_kernel,
        out_shape=jax.ShapeDtypeStruct((B * T, D), jnp.float32),
        in_specs=[vmem] * 7,
        out_specs=vmem,
        compiler_params=pltpu.CompilerParams(vmem_limit_bytes=16 * 1024 * 1024),
        # grid=() : one invocation, whole working set (<1 MiB) resident in VMEM.
    )(x0, mem, tmask, mmask, params["w_attn"], params["w_ff"], params["vecs"])
    return jnp.transpose(out.reshape(B, T, D), (1, 0, 2))         # -> [T, B, D]


# --------------- host-side weight prep: pack into 3 slabs ---------------------
def prepare_params(params_list):
    """Torch-layout per-layer params -> 3 packed, pre-transposed slabs."""
    D, FF = D_MODEL, DIM_FF
    w_attn_l, w_ff_l, vecs_l = [], [], []

    def row(v):
        v = jnp.reshape(v, (-1,))
        return jnp.pad(v, (0, VEC_W - v.shape[0]))

    for p in params_list:
        # [D, 4D] per attention: [ Wqkv^T (D,3D) | Wo^T (D,D) ]
        sa = jnp.concatenate([p["sa_in_w"].T, p["sa_out_w"].T], axis=1)
        ca = jnp.concatenate([p["ca_in_w"].T, p["ca_out_w"].T], axis=1)
        w_attn_l.append(jnp.stack([sa, ca], axis=0))              # [2, D, 4D]

        w1t = p["lin1_w"].T                                       # [D, FF]
        w2t = jnp.pad(p["lin2_w"].T, ((0, 0), (0, FF - D)))       # [FF, FF]
        w_ff_l.append(jnp.concatenate([w1t, w2t], axis=0))        # [D+FF, FF]

        vecs_l.append(jnp.stack([
            row(p["sa_in_b"]), row(p["sa_out_b"]),
            row(p["ca_in_b"]), row(p["ca_out_b"]),
            row(p["lin1_b"]), row(p["lin2_b"]),
            row(p["n1_w"]), row(p["n1_b"]),
            row(p["n2_w"]), row(p["n2_b"]),
            row(p["n3_w"]), row(p["n3_b"]),
        ], axis=0))                                               # [12, 96]

    return {
        "w_attn": jnp.stack(w_attn_l, axis=0),   # [L, 2, D, 4D]
        "w_ff":   jnp.stack(w_ff_l, axis=0),     # [L, D+FF, FF]
        "vecs":   jnp.stack(vecs_l, axis=0),     # [L, 12, 96]
    }


# --------------------------- deterministic params -----------------------------
def init_layer_params(key):
    def w(k, shape, scale=0.05):
        return scale * jax.random.normal(k, shape, dtype=jnp.float32)

    ks = jax.random.split(key, 12)
    return dict(
        sa_in_w=w(ks[0], (3 * D_MODEL, D_MODEL)),
        sa_in_b=w(ks[1], (1, 3 * D_MODEL)),
        sa_out_w=w(ks[2], (D_MODEL, D_MODEL)),
        sa_out_b=w(ks[3], (1, D_MODEL)),
        ca_in_w=w(ks[4], (3 * D_MODEL, D_MODEL)),
        ca_in_b=w(ks[5], (1, 3 * D_MODEL)),
        ca_out_w=w(ks[6], (D_MODEL, D_MODEL)),
        ca_out_b=w(ks[7], (1, D_MODEL)),
        lin1_w=w(ks[8], (DIM_FF, D_MODEL)),
        lin1_b=w(ks[9], (1, DIM_FF)),
        lin2_w=w(ks[10], (D_MODEL, DIM_FF)),
        lin2_b=w(ks[11], (1, D_MODEL)),
        n1_w=jnp.ones((1, D_MODEL), jnp.float32),
        n1_b=jnp.zeros((1, D_MODEL), jnp.float32),
        n2_w=jnp.ones((1, D_MODEL), jnp.float32),
        n2_b=jnp.zeros((1, D_MODEL), jnp.float32),
        n3_w=jnp.ones((1, D_MODEL), jnp.float32),
        n3_b=jnp.zeros((1, D_MODEL), jnp.float32),
    )


# --------------------------- pure-JAX reference -------------------------------
def _ref_layer_norm(x, w, b):
    mean = x.mean(-1, keepdims=True)
    var = ((x - mean) ** 2).mean(-1, keepdims=True)
    return (x - mean) / jnp.sqrt(var + EPS) * w + b


def _ref_mha(q_in, kv_in, mask, in_w, in_b, out_w, out_b):
    d = D_MODEL
    q = q_in @ in_w[:d].T + in_b[0, :d]
    k = kv_in @ in_w[d:2 * d].T + in_b[0, d:2 * d]
    v = kv_in @ in_w[2 * d:].T + in_b[0, 2 * d:]
    outs = []
    for h in range(NHEAD):
        sl = slice(h * HEAD_DIM, (h + 1) * HEAD_DIM)
        s = (q[:, sl] * SCALE) @ k[:, sl].T + mask
        p = jax.nn.softmax(s, axis=-1)
        outs.append(p @ v[:, sl])
    return jnp.concatenate(outs, -1) @ out_w.T + out_b[0]


def reference_decoder(tgt, mem, tgt_mask, memory_mask, params_list):
    T, B, D = tgt.shape
    S = mem.shape[0]
    tm = jnp.zeros((T, T), jnp.float32) if tgt_mask is None else tgt_mask
    mm = jnp.zeros((T, S), jnp.float32) if memory_mask is None else memory_mask
    outs = []
    for b in range(B):
        x, m = tgt[:, b, :], mem[:, b, :]
        for p in params_list:
            sa = _ref_mha(x, x, tm, p["sa_in_w"], p["sa_in_b"], p["sa_out_w"], p["sa_out_b"])
            x = _ref_layer_norm(x + sa, p["n1_w"][0], p["n1_b"][0])
            ca = _ref_mha(x, m, mm, p["ca_in_w"], p["ca_in_b"], p["ca_out_w"], p["ca_out_b"])
            x = _ref_layer_norm(x + ca, p["n2_w"][0], p["n2_b"][0])
            h = jnp.maximum(x @ p["lin1_w"].T + p["lin1_b"][0], 0.0)
            ff = h @ p["lin2_w"].T + p["lin2_b"][0]
            x = _ref_layer_norm(x + ff, p["n3_w"][0], p["n3_b"][0])
        outs.append(x)
    return jnp.stack(outs, axis=1)   # [T, B, D]


# ----------------------------------- main -------------------------------------
if __name__ == "__main__":
    key = jax.random.PRNGKey(0)
    k_tgt, k_mem, k_p = jax.random.split(key, 3)

    T, S, B = 8, 8, 2
    tgt = jax.random.normal(k_tgt, (T, B, D_MODEL), dtype=jnp.float32)
    mem = jax.random.normal(k_mem, (S, B, D_MODEL), dtype=jnp.float32)

    # causal target mask (additive float mask, like torch's square subsequent mask)
    row_i = jax.lax.broadcasted_iota(jnp.int32, (T, T), 0)
    col_i = jax.lax.broadcasted_iota(jnp.int32, (T, T), 1)
    tgt_mask = jnp.where(col_i > row_i, NEG_INF, 0.0).astype(jnp.float32)

    params_list = [init_layer_params(jax.random.fold_in(k_p, i))
                   for i in range(NUM_LAYERS)]
    kernel_params = prepare_params(params_list)

    fwd = jax.jit(lambda t, m, tm: transformer_decoder(
        t, m, tgt_mask=tm, memory_mask=None, params=kernel_params))
    out = jax.block_until_ready(fwd(tgt, mem, tgt_mask))

    assert out.shape == (T, B, D_MODEL)
    assert bool(jnp.all(jnp.isfinite(out)))

    # correctness vs. pure-JAX post-norm TransformerDecoder reference (eval mode)
    ref = reference_decoder(tgt, mem, tgt_mask, None, params_list)
    np.testing.assert_allclose(np.asarray(out), np.asarray(ref), rtol=2e-2, atol=2e-2)

    print("KERNEL_OK")
</pallas_src>

<mosaic_0001>
module attributes {stable_mosaic.version = 11 : i64} {
  func.func @fused_decoder_kernel(%arg0: memref<16x32xf32, #tpu.memory_space<vmem>>, %arg1: memref<16x32xf32, #tpu.memory_space<vmem>>, %arg2: memref<8x8xf32, #tpu.memory_space<vmem>>, %arg3: memref<8x8xf32, #tpu.memory_space<vmem>>, %arg4: memref<2x2x32x128xf32, #tpu.memory_space<vmem>>, %arg5: memref<2x96x64xf32, #tpu.memory_space<vmem>>, %arg6: memref<2x12x96xf32, #tpu.memory_space<vmem>>, %arg7: memref<16x32xf32, #tpu.memory_space<vmem>>) attributes {dimension_semantics = [], scalar_prefetch = 0 : i64, scratch_operands = 0 : i64, tpu.core_type = #tpu.core_type<tc>} {
    %c0 = arith.constant 0 : index
    %c0_0 = arith.constant 0 : index
    %0 = vector.load %arg2[%c0, %c0_0] : memref<8x8xf32, #tpu.memory_space<vmem>>, vector<8x8xf32>
    %c0_1 = arith.constant 0 : index
    %c0_2 = arith.constant 0 : index
    %1 = vector.load %arg3[%c0_1, %c0_2] : memref<8x8xf32, #tpu.memory_space<vmem>>, vector<8x8xf32>
    %c0_3 = arith.constant 0 : index
    %c0_4 = arith.constant 0 : index
    %2 = vector.load %arg0[%c0_3, %c0_4] : memref<16x32xf32, #tpu.memory_space<vmem>>, vector<16x32xf32>
    %c0_5 = arith.constant 0 : index
    %c0_6 = arith.constant 0 : index
    %3 = vector.load %arg1[%c0_5, %c0_6] : memref<16x32xf32, #tpu.memory_space<vmem>>, vector<16x32xf32>
    %c0_7 = arith.constant 0 : index
    %c0_8 = arith.constant 0 : index
    %c0_9 = arith.constant 0 : index
    %c0_10 = arith.constant 0 : index
    %4 = vector.load %arg4[%c0_7, %c0_8, %c0_9, %c0_10] : memref<2x2x32x128xf32, #tpu.memory_space<vmem>>, vector<1x1x32x128xf32>
    %5 = vector.shape_cast %4 : vector<1x1x32x128xf32> to vector<32x128xf32>
    %c0_11 = arith.constant 0 : index
    %c1 = arith.constant 1 : index
    %c0_12 = arith.constant 0 : index
    %c0_13 = arith.constant 0 : index
    %6 = vector.load %arg4[%c0_11, %c1, %c0_12, %c0_13] : memref<2x2x32x128xf32, #tpu.memory_space<vmem>>, vector<1x1x32x128xf32>
    %7 = vector.shape_cast %6 : vector<1x1x32x128xf32> to vector<32x128xf32>
    %8 = vector.extract_strided_slice %5 {offsets = [0, 0], sizes = [32, 96], strides = [1, 1]} : vector<32x128xf32> to vector<32x96xf32>
    %cst = arith.constant dense<0.000000e+00> : vector<16x96xf32>
    %9 = tpu.matmul %2, %8, %cst {dimension_numbers = #tpu.dot_dimension_numbers<[1], [0], [0], [1], [0, 0, 1, 1], [], []>} : vector<16x32xf32>, vector<32x96xf32>, vector<16x96xf32> -> vector<16x96xf32>
    %c0_14 = arith.constant 0 : index
    %c0_15 = arith.constant 0 : index
    %c0_16 = arith.constant 0 : index
    %10 = vector.load %arg6[%c0_14, %c0_15, %c0_16] : memref<2x12x96xf32, #tpu.memory_space<vmem>>, vector<1x1x96xf32>
    %11 = vector.shape_cast %10 : vector<1x1x96xf32> to vector<1x96xf32>
    %12 = vector.broadcast %11 : vector<1x96xf32> to vector<16x96xf32>
    %13 = arith.addf %9, %12 : vector<16x96xf32>
    %14 = vector.extract_strided_slice %13 {offsets = [0, 0], sizes = [16, 32], strides = [1, 1]} : vector<16x96xf32> to vector<16x32xf32>
    %15 = vector.extract_strided_slice %13 {offsets = [0, 32], sizes = [16, 32], strides = [1, 1]} : vector<16x96xf32> to vector<16x32xf32>
    %16 = vector.extract_strided_slice %13 {offsets = [0, 64], sizes = [16, 32], strides = [1, 1]} : vector<16x96xf32> to vector<16x32xf32>
    %17 = vector.extract_strided_slice %5 {offsets = [0, 96], sizes = [32, 32], strides = [1, 1]} : vector<32x128xf32> to vector<32x32xf32>
    %c0_17 = arith.constant 0 : index
    %c1_18 = arith.constant 1 : index
    %c0_19 = arith.constant 0 : index
    %18 = vector.load %arg6[%c0_17, %c1_18, %c0_19] : memref<2x12x96xf32, #tpu.memory_space<vmem>>, vector<1x1x32xf32>
    %19 = vector.shape_cast %18 : vector<1x1x32xf32> to vector<1x32xf32>
    %20 = vector.extract_strided_slice %14 {offsets = [0, 0], sizes = [16, 8], strides = [1, 1]} : vector<16x32xf32> to vector<16x8xf32>
    %21 = vector.shape_cast %20 : vector<16x8xf32> to vector<2x8x8xf32>
    %22 = vector.extract_strided_slice %14 {offsets = [0, 8], sizes = [16, 8], strides = [1, 1]} : vector<16x32xf32> to vector<16x8xf32>
    %23 = vector.shape_cast %22 : vector<16x8xf32> to vector<2x8x8xf32>
    %24 = vector.extract_strided_slice %14 {offsets = [0, 16], sizes = [16, 8], strides = [1, 1]} : vector<16x32xf32> to vector<16x8xf32>
    %25 = vector.shape_cast %24 : vector<16x8xf32> to vector<2x8x8xf32>
    %26 = vector.extract_strided_slice %14 {offsets = [0, 24], sizes = [16, 8], strides = [1, 1]} : vector<16x32xf32> to vector<16x8xf32>
    %27 = vector.shape_cast %26 : vector<16x8xf32> to vector<2x8x8xf32>
    %28 = tpu.concatenate %21, %23, %25, %27 in 0 : vector<2x8x8xf32>, vector<2x8x8xf32>, vector<2x8x8xf32>, vector<2x8x8xf32> -> vector<8x8x8xf32>
    %29 = vector.extract_strided_slice %15 {offsets = [0, 0], sizes = [16, 8], strides = [1, 1]} : vector<16x32xf32> to vector<16x8xf32>
    %30 = vector.shape_cast %29 : vector<16x8xf32> to vector<2x8x8xf32>
    %31 = vector.extract_strided_slice %15 {offsets = [0, 8], sizes = [16, 8], strides = [1, 1]} : vector<16x32xf32> to vector<16x8xf32>
    %32 = vector.shape_cast %31 : vector<16x8xf32> to vector<2x8x8xf32>
    %33 = vector.extract_strided_slice %15 {offsets = [0, 16], sizes = [16, 8], strides = [1, 1]} : vector<16x32xf32> to vector<16x8xf32>
    %34 = vector.shape_cast %33 : vector<16x8xf32> to vector<2x8x8xf32>
    %35 = vector.extract_strided_slice %15 {offsets = [0, 24], sizes = [16, 8], strides = [1, 1]} : vector<16x32xf32> to vector<16x8xf32>
    %36 = vector.shape_cast %35 : vector<16x8xf32> to vector<2x8x8xf32>
    %37 = tpu.concatenate %30, %32, %34, %36 in 0 : vector<2x8x8xf32>, vector<2x8x8xf32>, vector<2x8x8xf32>, vector<2x8x8xf32> -> vector<8x8x8xf32>
    %38 = vector.extract_strided_slice %16 {offsets = [0, 0], sizes = [16, 8], strides = [1, 1]} : vector<16x32xf32> to vector<16x8xf32>
    %39 = vector.shape_cast %38 : vector<16x8xf32> to vector<2x8x8xf32>
    %40 = vector.extract_strided_slice %16 {offsets = [0, 8], sizes = [16, 8], strides = [1, 1]} : vector<16x32xf32> to vector<16x8xf32>
    %41 = vector.shape_cast %40 : vector<16x8xf32> to vector<2x8x8xf32>
    %42 = vector.extract_strided_slice %16 {offsets = [0, 16], sizes = [16, 8], strides = [1, 1]} : vector<16x32xf32> to vector<16x8xf32>
    %43 = vector.shape_cast %42 : vector<16x8xf32> to vector<2x8x8xf32>
    %44 = vector.extract_strided_slice %16 {offsets = [0, 24], sizes = [16, 8], strides = [1, 1]} : vector<16x32xf32> to vector<16x8xf32>
    %45 = vector.shape_cast %44 : vector<16x8xf32> to vector<2x8x8xf32>
    %46 = tpu.concatenate %39, %41, %43, %45 in 0 : vector<2x8x8xf32>, vector<2x8x8xf32>, vector<2x8x8xf32>, vector<2x8x8xf32> -> vector<8x8x8xf32>
    %cst_20 = arith.constant 0.353553385 : f32
    %47 = vector.broadcast %cst_20 : f32 to vector<8x8x8xf32>
    %48 = arith.mulf %28, %47 : vector<8x8x8xf32>
    "tpu.trace_start"() <{level = 10 : i32, message = "gqe,gke->gqk"}> : () -> ()
    %cst_21 = arith.constant dense<0.000000e+00> : vector<8x8x8xf32>
    %49 = tpu.matmul %48, %37, %cst_21 {dimension_numbers = #tpu.dot_dimension_numbers<[2], [2], [1], [1], [0, 0, 0, 1, 1, 1], [0], [0]>} : vector<8x8x8xf32>, vector<8x8x8xf32>, vector<8x8x8xf32> -> vector<8x8x8xf32>
    "tpu.trace_stop"() : () -> ()
    %50 = vector.shape_cast %0 : vector<8x8xf32> to vector<1x8x8xf32>
    %51 = vector.broadcast %50 : vector<1x8x8xf32> to vector<8x8x8xf32>
    %52 = arith.addf %49, %51 : vector<8x8x8xf32>
    %cst_22 = arith.constant dense<0xFF800000> : vector<8x8xf32>
    %53 = vector.multi_reduction <maximumf>, %52, %cst_22 [2] : vector<8x8x8xf32> to vector<8x8xf32>
    %54 = vector.shape_cast %53 : vector<8x8xf32> to vector<8x8x1xf32>
    %55 = vector.broadcast %54 : vector<8x8x1xf32> to vector<8x8x8xf32>
    %56 = arith.subf %52, %55 : vector<8x8x8xf32>
    %57 = math.exp %56 : vector<8x8x8xf32>
    %cst_23 = arith.constant dense<0.000000e+00> : vector<8x8xf32>
    %58 = vector.multi_reduction <add>, %57, %cst_23 [2] : vector<8x8x8xf32> to vector<8x8xf32>
    %59 = vector.shape_cast %58 : vector<8x8xf32> to vector<8x8x1xf32>
    %60 = tpu.reciprocal %59 {approx = true} : vector<8x8x1xf32> -> vector<8x8x1xf32>
    %61 = vector.broadcast %60 : vector<8x8x1xf32> to vector<8x8x8xf32>
    %62 = arith.mulf %57, %61 : vector<8x8x8xf32>
    "tpu.trace_start"() <{level = 10 : i32, message = "gqk,gke->gqe"}> : () -> ()
    %cst_24 = arith.constant dense<0.000000e+00> : vector<8x8x8xf32>
    %63 = tpu.matmul %62, %46, %cst_24 {dimension_numbers = #tpu.dot_dimension_numbers<[2], [1], [1], [2], [0, 0, 0, 1, 1, 2], [0], [0]>} : vector<8x8x8xf32>, vector<8x8x8xf32>, vector<8x8x8xf32> -> vector<8x8x8xf32>
    "tpu.trace_stop"() : () -> ()
    %64 = vector.extract_strided_slice %63 {offsets = [0, 0, 0], sizes = [2, 8, 8], strides = [1, 1, 1]} : vector<8x8x8xf32> to vector<2x8x8xf32>
    %65 = vector.extract_strided_slice %63 {offsets = [2, 0, 0], sizes = [2, 8, 8], strides = [1, 1, 1]} : vector<8x8x8xf32> to vector<2x8x8xf32>
    %66 = vector.extract_strided_slice %63 {offsets = [4, 0, 0], sizes = [2, 8, 8], strides = [1, 1, 1]} : vector<8x8x8xf32> to vector<2x8x8xf32>
    %67 = vector.extract_strided_slice %63 {offsets = [6, 0, 0], sizes = [2, 8, 8], strides = [1, 1, 1]} : vector<8x8x8xf32> to vector<2x8x8xf32>
    %68 = tpu.concatenate %64, %65, %66, %67 in 2 : vector<2x8x8xf32>, vector<2x8x8xf32>, vector<2x8x8xf32>, vector<2x8x8xf32> -> vector<2x8x32xf32>
    %69 = vector.shape_cast %68 : vector<2x8x32xf32> to vector<16x32xf32>
    %cst_25 = arith.constant dense<0.000000e+00> : vector<16x32xf32>
    %70 = tpu.matmul %69, %17, %cst_25 {dimension_numbers = #tpu.dot_dimension_numbers<[1], [0], [0], [1], [0, 0, 1, 1], [], []>} : vector<16x32xf32>, vector<32x32xf32>, vector<16x32xf32> -> vector<16x32xf32>
    %71 = vector.broadcast %19 : vector<1x32xf32> to vector<16x32xf32>
    %72 = arith.addf %70, %71 : vector<16x32xf32>
    %73 = arith.addf %2, %72 : vector<16x32xf32>
    %c0_26 = arith.constant 0 : index
    %c6 = arith.constant 6 : index
    %c0_27 = arith.constant 0 : index
    %74 = vector.load %arg6[%c0_26, %c6, %c0_27] : memref<2x12x96xf32, #tpu.memory_space<vmem>>, vector<1x1x32xf32>
    %75 = vector.shape_cast %74 : vector<1x1x32xf32> to vector<1x32xf32>
    %c0_28 = arith.constant 0 : index
    %c7 = arith.constant 7 : index
    %c0_29 = arith.constant 0 : index
    %76 = vector.load %arg6[%c0_28, %c7, %c0_29] : memref<2x12x96xf32, #tpu.memory_space<vmem>>, vector<1x1x32xf32>
    %77 = vector.shape_cast %76 : vector<1x1x32xf32> to vector<1x32xf32>
    %cst_30 = arith.constant dense<0.000000e+00> : vector<16xf32>
    %78 = vector.multi_reduction <add>, %73, %cst_30 [1] : vector<16x32xf32> to vector<16xf32>
    %79 = vector.shape_cast %78 : vector<16xf32> to vector<16x1xf32>
    %cst_31 = arith.constant 3.200000e+01 : f32
    %80 = vector.broadcast %cst_31 : f32 to vector<16x1xf32>
    %81 = arith.divf %79, %80 : vector<16x1xf32>
    %82 = vector.broadcast %81 : vector<16x1xf32> to vector<16x32xf32>
    %83 = arith.subf %73, %82 : vector<16x32xf32>
    %84 = arith.mulf %83, %83 : vector<16x32xf32>
    %cst_32 = arith.constant dense<0.000000e+00> : vector<16xf32>
    %85 = vector.multi_reduction <add>, %84, %cst_32 [1] : vector<16x32xf32> to vector<16xf32>
    %86 = vector.shape_cast %85 : vector<16xf32> to vector<16x1xf32>
    %cst_33 = arith.constant 3.200000e+01 : f32
    %87 = vector.broadcast %cst_33 : f32 to vector<16x1xf32>
    %88 = arith.divf %86, %87 : vector<16x1xf32>
    %cst_34 = arith.constant 9.99999974E-6 : f32
    %89 = vector.broadcast %cst_34 : f32 to vector<16x1xf32>
    %90 = arith.addf %88, %89 : vector<16x1xf32>
    %91 = math.rsqrt %90 : vector<16x1xf32>
    %92 = vector.broadcast %91 : vector<16x1xf32> to vector<16x32xf32>
    %93 = arith.mulf %83, %92 : vector<16x32xf32>
    %94 = vector.broadcast %75 : vector<1x32xf32> to vector<16x32xf32>
    %95 = arith.mulf %93, %94 : vector<16x32xf32>
    %96 = vector.broadcast %77 : vector<1x32xf32> to vector<16x32xf32>
    %97 = arith.addf %95, %96 : vector<16x32xf32>
    %98 = vector.extract_strided_slice %7 {offsets = [0, 0], sizes = [32, 32], strides = [1, 1]} : vector<32x128xf32> to vector<32x32xf32>
    %cst_35 = arith.constant dense<0.000000e+00> : vector<16x32xf32>
    %99 = tpu.matmul %97, %98, %cst_35 {dimension_numbers = #tpu.dot_dimension_numbers<[1], [0], [0], [1], [0, 0, 1, 1], [], []>} : vector<16x32xf32>, vector<32x32xf32>, vector<16x32xf32> -> vector<16x32xf32>
    %c0_36 = arith.constant 0 : index
    %c2 = arith.constant 2 : index
    %c0_37 = arith.constant 0 : index
    %100 = vector.load %arg6[%c0_36, %c2, %c0_37] : memref<2x12x96xf32, #tpu.memory_space<vmem>>, vector<1x1x96xf32>
    %101 = vector.shape_cast %100 : vector<1x1x96xf32> to vector<1x96xf32>
    %102 = vector.extract_strided_slice %101 {offsets = [0, 0], sizes = [1, 32], strides = [1, 1]} : vector<1x96xf32> to vector<1x32xf32>
    %103 = vector.broadcast %102 : vector<1x32xf32> to vector<16x32xf32>
    %104 = arith.addf %99, %103 : vector<16x32xf32>
    %105 = vector.extract_strided_slice %7 {offsets = [0, 32], sizes = [32, 64], strides = [1, 1]} : vector<32x128xf32> to vector<32x64xf32>
    %cst_38 = arith.constant dense<0.000000e+00> : vector<16x64xf32>
    %106 = tpu.matmul %3, %105, %cst_38 {dimension_numbers = #tpu.dot_dimension_numbers<[1], [0], [0], [1], [0, 0, 1, 1], [], []>} : vector<16x32xf32>, vector<32x64xf32>, vector<16x64xf32> -> vector<16x64xf32>
    %c0_39 = arith.constant 0 : index
    %c2_40 = arith.constant 2 : index
    %c0_41 = arith.constant 0 : index
    %107 = vector.load %arg6[%c0_39, %c2_40, %c0_41] : memref<2x12x96xf32, #tpu.memory_space<vmem>>, vector<1x1x96xf32>
    %108 = vector.shape_cast %107 : vector<1x1x96xf32> to vector<1x96xf32>
    %109 = vector.extract_strided_slice %108 {offsets = [0, 32], sizes = [1, 64], strides = [1, 1]} : vector<1x96xf32> to vector<1x64xf32>
    %110 = vector.broadcast %109 : vector<1x64xf32> to vector<16x64xf32>
    %111 = arith.addf %106, %110 : vector<16x64xf32>
    %112 = vector.extract_strided_slice %111 {offsets = [0, 0], sizes = [16, 32], strides = [1, 1]} : vector<16x64xf32> to vector<16x32xf32>
    %113 = vector.extract_strided_slice %111 {offsets = [0, 32], sizes = [16, 32], strides = [1, 1]} : vector<16x64xf32> to vector<16x32xf32>
    %114 = vector.extract_strided_slice %7 {offsets = [0, 96], sizes = [32, 32], strides = [1, 1]} : vector<32x128xf32> to vector<32x32xf32>
    %c0_42 = arith.constant 0 : index
    %c3 = arith.constant 3 : index
    %c0_43 = arith.constant 0 : index
    %115 = vector.load %arg6[%c0_42, %c3, %c0_43] : memref<2x12x96xf32, #tpu.memory_space<vmem>>, vector<1x1x32xf32>
    %116 = vector.shape_cast %115 : vector<1x1x32xf32> to vector<1x32xf32>
    %117 = vector.extract_strided_slice %104 {offsets = [0, 0], sizes = [16, 8], strides = [1, 1]} : vector<16x32xf32> to vector<16x8xf32>
    %118 = vector.shape_cast %117 : vector<16x8xf32> to vector<2x8x8xf32>
    %119 = vector.extract_strided_slice %104 {offsets = [0, 8], sizes = [16, 8], strides = [1, 1]} : vector<16x32xf32> to vector<16x8xf32>
    %120 = vector.shape_cast %119 : vector<16x8xf32> to vector<2x8x8xf32>
    %121 = vector.extract_strided_slice %104 {offsets = [0, 16], sizes = [16, 8], strides = [1, 1]} : vector<16x32xf32> to vector<16x8xf32>
    %122 = vector.shape_cast %121 : vector<16x8xf32> to vector<2x8x8xf32>
    %123 = vector.extract_strided_slice %104 {offsets = [0, 24], sizes = [16, 8], strides = [1, 1]} : vector<16x32xf32> to vector<16x8xf32>
    %124 = vector.shape_cast %123 : vector<16x8xf32> to vector<2x8x8xf32>
    %125 = tpu.concatenate %118, %120, %122, %124 in 0 : vector<2x8x8xf32>, vector<2x8x8xf32>, vector<2x8x8xf32>, vector<2x8x8xf32> -> vector<8x8x8xf32>
    %126 = vector.extract_strided_slice %112 {offsets = [0, 0], sizes = [16, 8], strides = [1, 1]} : vector<16x32xf32> to vector<16x8xf32>
    %127 = vector.shape_cast %126 : vector<16x8xf32> to vector<2x8x8xf32>
    %128 = vector.extract_strided_slice %112 {offsets = [0, 8], sizes = [16, 8], strides = [1, 1]} : vector<16x32xf32> to vector<16x8xf32>
    %129 = vector.shape_cast %128 : vector<16x8xf32> to vector<2x8x8xf32>
    %130 = vector.extract_strided_slice %112 {offsets = [0, 16], sizes = [16, 8], strides = [1, 1]} : vector<16x32xf32> to vector<16x8xf32>
    %131 = vector.shape_cast %130 : vector<16x8xf32> to vector<2x8x8xf32>
    %132 = vector.extract_strided_slice %112 {offsets = [0, 24], sizes = [16, 8], strides = [1, 1]} : vector<16x32xf32> to vector<16x8xf32>
    %133 = vector.shape_cast %132 : vector<16x8xf32> to vector<2x8x8xf32>
    %134 = tpu.concatenate %127, %129, %131, %133 in 0 : vector<2x8x8xf32>, vector<2x8x8xf32>, vector<2x8x8xf32>, vector<2x8x8xf32> -> vector<8x8x8xf32>
    %135 = vector.extract_strided_slice %113 {offsets = [0, 0], sizes = [16, 8], strides = [1, 1]} : vector<16x32xf32> to vector<16x8xf32>
    %136 = vector.shape_cast %135 : vector<16x8xf32> to vector<2x8x8xf32>
    %137 = vector.extract_strided_slice %113 {offsets = [0, 8], sizes = [16, 8], strides = [1, 1]} : vector<16x32xf32> to vector<16x8xf32>
    %138 = vector.shape_cast %137 : vector<16x8xf32> to vector<2x8x8xf32>
    %139 = vector.extract_strided_slice %113 {offsets = [0, 16], sizes = [16, 8], strides = [1, 1]} : vector<16x32xf32> to vector<16x8xf32>
    %140 = vector.shape_cast %139 : vector<16x8xf32> to vector<2x8x8xf32>
    %141 = vector.extract_strided_slice %113 {offsets = [0, 24], sizes = [16, 8], strides = [1, 1]} : vector<16x32xf32> to vector<16x8xf32>
    %142 = vector.shape_cast %141 : vector<16x8xf32> to vector<2x8x8xf32>
    %143 = tpu.concatenate %136, %138, %140, %142 in 0 : vector<2x8x8xf32>, vector<2x8x8xf32>, vector<2x8x8xf32>, vector<2x8x8xf32> -> vector<8x8x8xf32>
    %cst_44 = arith.constant 0.353553385 : f32
    %144 = vector.broadcast %cst_44 : f32 to vector<8x8x8xf32>
    %145 = arith.mulf %125, %144 : vector<8x8x8xf32>
    "tpu.trace_start"() <{level = 10 : i32, message = "gqe,gke->gqk"}> : () -> ()
    %cst_45 = arith.constant dense<0.000000e+00> : vector<8x8x8xf32>
    %146 = tpu.matmul %145, %134, %cst_45 {dimension_numbers = #tpu.dot_dimension_numbers<[2], [2], [1], [1], [0, 0, 0, 1, 1, 1], [0], [0]>} : vector<8x8x8xf32>, vector<8x8x8xf32>, vector<8x8x8xf32> -> vector<8x8x8xf32>
    "tpu.trace_stop"() : () -> ()
    %147 = vector.shape_cast %1 : vector<8x8xf32> to vector<1x8x8xf32>
    %148 = vector.broadcast %147 : vector<1x8x8xf32> to vector<8x8x8xf32>
    %149 = arith.addf %146, %148 : vector<8x8x8xf32>
    %cst_46 = arith.constant dense<0xFF800000> : vector<8x8xf32>
    %150 = vector.multi_reduction <maximumf>, %149, %cst_46 [2] : vector<8x8x8xf32> to vector<8x8xf32>
    %151 = vector.shape_cast %150 : vector<8x8xf32> to vector<8x8x1xf32>
    %152 = vector.broadcast %151 : vector<8x8x1xf32> to vector<8x8x8xf32>
    %153 = arith.subf %149, %152 : vector<8x8x8xf32>
    %154 = math.exp %153 : vector<8x8x8xf32>
    %cst_47 = arith.constant dense<0.000000e+00> : vector<8x8xf32>
    %155 = vector.multi_reduction <add>, %154, %cst_47 [2] : vector<8x8x8xf32> to vector<8x8xf32>
    %156 = vector.shape_cast %155 : vector<8x8xf32> to vector<8x8x1xf32>
    %157 = tpu.reciprocal %156 {approx = true} : vector<8x8x1xf32> -> vector<8x8x1xf32>
    %158 = vector.broadcast %157 : vector<8x8x1xf32> to vector<8x8x8xf32>
    %159 = arith.mulf %154, %158 : vector<8x8x8xf32>
    "tpu.trace_start"() <{level = 10 : i32, message = "gqk,gke->gqe"}> : () -> ()
    %cst_48 = arith.constant dense<0.000000e+00> : vector<8x8x8xf32>
    %160 = tpu.matmul %159, %143, %cst_48 {dimension_numbers = #tpu.dot_dimension_numbers<[2], [1], [1], [2], [0, 0, 0, 1, 1, 2], [0], [0]>} : vector<8x8x8xf32>, vector<8x8x8xf32>, vector<8x8x8xf32> -> vector<8x8x8xf32>
    "tpu.trace_stop"() : () -> ()
    %161 = vector.extract_strided_slice %160 {offsets = [0, 0, 0], sizes = [2, 8, 8], strides = [1, 1, 1]} : vector<8x8x8xf32> to vector<2x8x8xf32>
    %162 = vector.extract_strided_slice %160 {offsets = [2, 0, 0], sizes = [2, 8, 8], strides = [1, 1, 1]} : vector<8x8x8xf32> to vector<2x8x8xf32>
    %163 = vector.extract_strided_slice %160 {offsets = [4, 0, 0], sizes = [2, 8, 8], strides = [1, 1, 1]} : vector<8x8x8xf32> to vector<2x8x8xf32>
    %164 = vector.extract_strided_slice %160 {offsets = [6, 0, 0], sizes = [2, 8, 8], strides = [1, 1, 1]} : vector<8x8x8xf32> to vector<2x8x8xf32>
    %165 = tpu.concatenate %161, %162, %163, %164 in 2 : vector<2x8x8xf32>, vector<2x8x8xf32>, vector<2x8x8xf32>, vector<2x8x8xf32> -> vector<2x8x32xf32>
    %166 = vector.shape_cast %165 : vector<2x8x32xf32> to vector<16x32xf32>
    %cst_49 = arith.constant dense<0.000000e+00> : vector<16x32xf32>
    %167 = tpu.matmul %166, %114, %cst_49 {dimension_numbers = #tpu.dot_dimension_numbers<[1], [0], [0], [1], [0, 0, 1, 1], [], []>} : vector<16x32xf32>, vector<32x32xf32>, vector<16x32xf32> -> vector<16x32xf32>
    %168 = vector.broadcast %116 : vector<1x32xf32> to vector<16x32xf32>
    %169 = arith.addf %167, %168 : vector<16x32xf32>
    %170 = arith.addf %97, %169 : vector<16x32xf32>
    %c0_50 = arith.constant 0 : index
    %c8 = arith.constant 8 : index
    %c0_51 = arith.constant 0 : index
    %171 = vector.load %arg6[%c0_50, %c8, %c0_51] : memref<2x12x96xf32, #tpu.memory_space<vmem>>, vector<1x1x32xf32>
    %172 = vector.shape_cast %171 : vector<1x1x32xf32> to vector<1x32xf32>
    %c0_52 = arith.constant 0 : index
    %c9 = arith.constant 9 : index
    %c0_53 = arith.constant 0 : index
    %173 = vector.load %arg6[%c0_52, %c9, %c0_53] : memref<2x12x96xf32, #tpu.memory_space<vmem>>, vector<1x1x32xf32>
    %174 = vector.shape_cast %173 : vector<1x1x32xf32> to vector<1x32xf32>
    %cst_54 = arith.constant dense<0.000000e+00> : vector<16xf32>
    %175 = vector.multi_reduction <add>, %170, %cst_54 [1] : vector<16x32xf32> to vector<16xf32>
    %176 = vector.shape_cast %175 : vector<16xf32> to vector<16x1xf32>
    %cst_55 = arith.constant 3.200000e+01 : f32
    %177 = vector.broadcast %cst_55 : f32 to vector<16x1xf32>
    %178 = arith.divf %176, %177 : vector<16x1xf32>
    %179 = vector.broadcast %178 : vector<16x1xf32> to vector<16x32xf32>
    %180 = arith.subf %170, %179 : vector<16x32xf32>
    %181 = arith.mulf %180, %180 : vector<16x32xf32>
    %cst_56 = arith.constant dense<0.000000e+00> : vector<16xf32>
    %182 = vector.multi_reduction <add>, %181, %cst_56 [1] : vector<16x32xf32> to vector<16xf32>
    %183 = vector.shape_cast %182 : vector<16xf32> to vector<16x1xf32>
    %cst_57 = arith.constant 3.200000e+01 : f32
    %184 = vector.broadcast %cst_57 : f32 to vector<16x1xf32>
    %185 = arith.divf %183, %184 : vector<16x1xf32>
    %cst_58 = arith.constant 9.99999974E-6 : f32
    %186 = vector.broadcast %cst_58 : f32 to vector<16x1xf32>
    %187 = arith.addf %185, %186 : vector<16x1xf32>
    %188 = math.rsqrt %187 : vector<16x1xf32>
    %189 = vector.broadcast %188 : vector<16x1xf32> to vector<16x32xf32>
    %190 = arith.mulf %180, %189 : vector<16x32xf32>
    %191 = vector.broadcast %172 : vector<1x32xf32> to vector<16x32xf32>
    %192 = arith.mulf %190, %191 : vector<16x32xf32>
    %193 = vector.broadcast %174 : vector<1x32xf32> to vector<16x32xf32>
    %194 = arith.addf %192, %193 : vector<16x32xf32>
    %c0_59 = arith.constant 0 : index
    %c0_60 = arith.constant 0 : index
    %c0_61 = arith.constant 0 : index
    %195 = vector.load %arg5[%c0_59, %c0_60, %c0_61] : memref<2x96x64xf32, #tpu.memory_space<vmem>>, vector<1x32x64xf32>
    %196 = vector.shape_cast %195 : vector<1x32x64xf32> to vector<32x64xf32>
    %c0_62 = arith.constant 0 : index
    %c32 = arith.constant 32 : index
    %c0_63 = arith.constant 0 : index
    %197 = vector.load %arg5[%c0_62, %c32, %c0_63] : memref<2x96x64xf32, #tpu.memory_space<vmem>>, vector<1x64x32xf32>
    %198 = vector.shape_cast %197 : vector<1x64x32xf32> to vector<64x32xf32>
    %cst_64 = arith.constant dense<0.000000e+00> : vector<16x64xf32>
    %199 = tpu.matmul %194, %196, %cst_64 {dimension_numbers = #tpu.dot_dimension_numbers<[1], [0], [0], [1], [0, 0, 1, 1], [], []>} : vector<16x32xf32>, vector<32x64xf32>, vector<16x64xf32> -> vector<16x64xf32>
    %c0_65 = arith.constant 0 : index
    %c4 = arith.constant 4 : index
    %c0_66 = arith.constant 0 : index
    %200 = vector.load %arg6[%c0_65, %c4, %c0_66] : memref<2x12x96xf32, #tpu.memory_space<vmem>>, vector<1x1x64xf32>
    %201 = vector.shape_cast %200 : vector<1x1x64xf32> to vector<1x64xf32>
    %202 = vector.broadcast %201 : vector<1x64xf32> to vector<16x64xf32>
    %203 = arith.addf %199, %202 : vector<16x64xf32>
    %cst_67 = arith.constant 0.000000e+00 : f32
    %204 = vector.broadcast %cst_67 : f32 to vector<16x64xf32>
    %205 = arith.maximumf %203, %204 : vector<16x64xf32>
    %cst_68 = arith.constant dense<0.000000e+00> : vector<16x32xf32>
    %206 = tpu.matmul %205, %198, %cst_68 {dimension_numbers = #tpu.dot_dimension_numbers<[1], [0], [0], [1], [0, 0, 1, 1], [], []>} : vector<16x64xf32>, vector<64x32xf32>, vector<16x32xf32> -> vector<16x32xf32>
    %c0_69 = arith.constant 0 : index
    %c5 = arith.constant 5 : index
    %c0_70 = arith.constant 0 : index
    %207 = vector.load %arg6[%c0_69, %c5, %c0_70] : memref<2x12x96xf32, #tpu.memory_space<vmem>>, vector<1x1x32xf32>
    %208 = vector.shape_cast %207 : vector<1x1x32xf32> to vector<1x32xf32>
    %209 = vector.broadcast %208 : vector<1x32xf32> to vector<16x32xf32>
    %210 = arith.addf %206, %209 : vector<16x32xf32>
    %211 = arith.addf %194, %210 : vector<16x32xf32>
    %c0_71 = arith.constant 0 : index
    %c10 = arith.constant 10 : index
    %c0_72 = arith.constant 0 : index
    %212 = vector.load %arg6[%c0_71, %c10, %c0_72] : memref<2x12x96xf32, #tpu.memory_space<vmem>>, vector<1x1x32xf32>
    %213 = vector.shape_cast %212 : vector<1x1x32xf32> to vector<1x32xf32>
    %c0_73 = arith.constant 0 : index
    %c11 = arith.constant 11 : index
    %c0_74 = arith.constant 0 : index
    %214 = vector.load %arg6[%c0_73, %c11, %c0_74] : memref<2x12x96xf32, #tpu.memory_space<vmem>>, vector<1x1x32xf32>
    %215 = vector.shape_cast %214 : vector<1x1x32xf32> to vector<1x32xf32>
    %cst_75 = arith.constant dense<0.000000e+00> : vector<16xf32>
    %216 = vector.multi_reduction <add>, %211, %cst_75 [1] : vector<16x32xf32> to vector<16xf32>
    %217 = vector.shape_cast %216 : vector<16xf32> to vector<16x1xf32>
    %cst_76 = arith.constant 3.200000e+01 : f32
    %218 = vector.broadcast %cst_76 : f32 to vector<16x1xf32>
    %219 = arith.divf %217, %218 : vector<16x1xf32>
    %220 = vector.broadcast %219 : vector<16x1xf32> to vector<16x32xf32>
    %221 = arith.subf %211, %220 : vector<16x32xf32>
    %222 = arith.mulf %221, %221 : vector<16x32xf32>
    %cst_77 = arith.constant dense<0.000000e+00> : vector<16xf32>
    %223 = vector.multi_reduction <add>, %222, %cst_77 [1] : vector<16x32xf32> to vector<16xf32>
    %224 = vector.shape_cast %223 : vector<16xf32> to vector<16x1xf32>
    %cst_78 = arith.constant 3.200000e+01 : f32
    %225 = vector.broadcast %cst_78 : f32 to vector<16x1xf32>
    %226 = arith.divf %224, %225 : vector<16x1xf32>
    %cst_79 = arith.constant 9.99999974E-6 : f32
    %227 = vector.broadcast %cst_79 : f32 to vector<16x1xf32>
    %228 = arith.addf %226, %227 : vector<16x1xf32>
    %229 = math.rsqrt %228 : vector<16x1xf32>
    %230 = vector.broadcast %229 : vector<16x1xf32> to vector<16x32xf32>
    %231 = arith.mulf %221, %230 : vector<16x32xf32>
    %232 = vector.broadcast %213 : vector<1x32xf32> to vector<16x32xf32>
    %233 = arith.mulf %231, %232 : vector<16x32xf32>
    %234 = vector.broadcast %215 : vector<1x32xf32> to vector<16x32xf32>
    %235 = arith.addf %233, %234 : vector<16x32xf32>
    %c1_80 = arith.constant 1 : index
    %c0_81 = arith.constant 0 : index
    %c0_82 = arith.constant 0 : index
    %c0_83 = arith.constant 0 : index
    %236 = vector.load %arg4[%c1_80, %c0_81, %c0_82, %c0_83] : memref<2x2x32x128xf32, #tpu.memory_space<vmem>>, vector<1x1x32x128xf32>
    %237 = vector.shape_cast %236 : vector<1x1x32x128xf32> to vector<32x128xf32>
    %c1_84 = arith.constant 1 : index
    %c1_85 = arith.constant 1 : index
    %c0_86 = arith.constant 0 : index
    %c0_87 = arith.constant 0 : index
    %238 = vector.load %arg4[%c1_84, %c1_85, %c0_86, %c0_87] : memref<2x2x32x128xf32, #tpu.memory_space<vmem>>, vector<1x1x32x128xf32>
    %239 = vector.shape_cast %238 : vector<1x1x32x128xf32> to vector<32x128xf32>
    %240 = vector.extract_strided_slice %237 {offsets = [0, 0], sizes = [32, 96], strides = [1, 1]} : vector<32x128xf32> to vector<32x96xf32>
    %cst_88 = arith.constant dense<0.000000e+00> : vector<16x96xf32>
    %241 = tpu.matmul %235, %240, %cst_88 {dimension_numbers = #tpu.dot_dimension_numbers<[1], [0], [0], [1], [0, 0, 1, 1], [], []>} : vector<16x32xf32>, vector<32x96xf32>, vector<16x96xf32> -> vector<16x96xf32>
    %c1_89 = arith.constant 1 : index
    %c0_90 = arith.constant 0 : index
    %c0_91 = arith.constant 0 : index
    %242 = vector.load %arg6[%c1_89, %c0_90, %c0_91] : memref<2x12x96xf32, #tpu.memory_space<vmem>>, vector<1x1x96xf32>
    %243 = vector.shape_cast %242 : vector<1x1x96xf32> to vector<1x96xf32>
    %244 = vector.broadcast %243 : vector<1x96xf32> to vector<16x96xf32>
    %245 = arith.addf %241, %244 : vector<16x96xf32>
    %246 = vector.extract_strided_slice %245 {offsets = [0, 0], sizes = [16, 32], strides = [1, 1]} : vector<16x96xf32> to vector<16x32xf32>
    %247 = vector.extract_strided_slice %245 {offsets = [0, 32], sizes = [16, 32], strides = [1, 1]} : vector<16x96xf32> to vector<16x32xf32>
    %248 = vector.extract_strided_slice %245 {offsets = [0, 64], sizes = [16, 32], strides = [1, 1]} : vector<16x96xf32> to vector<16x32xf32>
    %249 = vector.extract_strided_slice %237 {offsets = [0, 96], sizes = [32, 32], strides = [1, 1]} : vector<32x128xf32> to vector<32x32xf32>
    %c1_92 = arith.constant 1 : index
    %c1_93 = arith.constant 1 : index
    %c0_94 = arith.constant 0 : index
    %250 = vector.load %arg6[%c1_92, %c1_93, %c0_94] : memref<2x12x96xf32, #tpu.memory_space<vmem>>, vector<1x1x32xf32>
    %251 = vector.shape_cast %250 : vector<1x1x32xf32> to vector<1x32xf32>
    %252 = vector.extract_strided_slice %246 {offsets = [0, 0], sizes = [16, 8], strides = [1, 1]} : vector<16x32xf32> to vector<16x8xf32>
    %253 = vector.shape_cast %252 : vector<16x8xf32> to vector<2x8x8xf32>
    %254 = vector.extract_strided_slice %246 {offsets = [0, 8], sizes = [16, 8], strides = [1, 1]} : vector<16x32xf32> to vector<16x8xf32>
    %255 = vector.shape_cast %254 : vector<16x8xf32> to vector<2x8x8xf32>
    %256 = vector.extract_strided_slice %246 {offsets = [0, 16], sizes = [16, 8], strides = [1, 1]} : vector<16x32xf32> to vector<16x8xf32>
    %257 = vector.shape_cast %256 : vector<16x8xf32> to vector<2x8x8xf32>
    %258 = vector.extract_strided_slice %246 {offsets = [0, 24], sizes = [16, 8], strides = [1, 1]} : vector<16x32xf32> to vector<16x8xf32>
    %259 = vector.shape_cast %258 : vector<16x8xf32> to vector<2x8x8xf32>
    %260 = tpu.concatenate %253, %255, %257, %259 in 0 : vector<2x8x8xf32>, vector<2x8x8xf32>, vector<2x8x8xf32>, vector<2x8x8xf32> -> vector<8x8x8xf32>
    %261 = vector.extract_strided_slice %247 {offsets = [0, 0], sizes = [16, 8], strides = [1, 1]} : vector<16x32xf32> to vector<16x8xf32>
    %262 = vector.shape_cast %261 : vector<16x8xf32> to vector<2x8x8xf32>
    %263 = vector.extract_strided_slice %247 {offsets = [0, 8], sizes = [16, 8], strides = [1, 1]} : vector<16x32xf32> to vector<16x8xf32>
    %264 = vector.shape_cast %263 : vector<16x8xf32> to vector<2x8x8xf32>
    %265 = vector.extract_strided_slice %247 {offsets = [0, 16], sizes = [16, 8], strides = [1, 1]} : vector<16x32xf32> to vector<16x8xf32>
    %266 = vector.shape_cast %265 : vector<16x8xf32> to vector<2x8x8xf32>
    %267 = vector.extract_strided_slice %247 {offsets = [0, 24], sizes = [16, 8], strides = [1, 1]} : vector<16x32xf32> to vector<16x8xf32>
    %268 = vector.shape_cast %267 : vector<16x8xf32> to vector<2x8x8xf32>
    %269 = tpu.concatenate %262, %264, %266, %268 in 0 : vector<2x8x8xf32>, vector<2x8x8xf32>, vector<2x8x8xf32>, vector<2x8x8xf32> -> vector<8x8x8xf32>
    %270 = vector.extract_strided_slice %248 {offsets = [0, 0], sizes = [16, 8], strides = [1, 1]} : vector<16x32xf32> to vector<16x8xf32>
    %271 = vector.shape_cast %270 : vector<16x8xf32> to vector<2x8x8xf32>
    %272 = vector.extract_strided_slice %248 {offsets = [0, 8], sizes = [16, 8], strides = [1, 1]} : vector<16x32xf32> to vector<16x8xf32>
    %273 = vector.shape_cast %272 : vector<16x8xf32> to vector<2x8x8xf32>
    %274 = vector.extract_strided_slice %248 {offsets = [0, 16], sizes = [16, 8], strides = [1, 1]} : vector<16x32xf32> to vector<16x8xf32>
    %275 = vector.shape_cast %274 : vector<16x8xf32> to vector<2x8x8xf32>
    %276 = vector.extract_strided_slice %248 {offsets = [0, 24], sizes = [16, 8], strides = [1, 1]} : vector<16x32xf32> to vector<16x8xf32>
    %277 = vector.shape_cast %276 : vector<16x8xf32> to vector<2x8x8xf32>
    %278 = tpu.concatenate %271, %273, %275, %277 in 0 : vector<2x8x8xf32>, vector<2x8x8xf32>, vector<2x8x8xf32>, vector<2x8x8xf32> -> vector<8x8x8xf32>
    %cst_95 = arith.constant 0.353553385 : f32
    %279 = vector.broadcast %cst_95 : f32 to vector<8x8x8xf32>
    %280 = arith.mulf %260, %279 : vector<8x8x8xf32>
    "tpu.trace_start"() <{level = 10 : i32, message = "gqe,gke->gqk"}> : () -> ()
    %cst_96 = arith.constant dense<0.000000e+00> : vector<8x8x8xf32>
    %281 = tpu.matmul %280, %269, %cst_96 {dimension_numbers = #tpu.dot_dimension_numbers<[2], [2], [1], [1], [0, 0, 0, 1, 1, 1], [0], [0]>} : vector<8x8x8xf32>, vector<8x8x8xf32>, vector<8x8x8xf32> -> vector<8x8x8xf32>
    "tpu.trace_stop"() : () -> ()
    %282 = vector.shape_cast %0 : vector<8x8xf32> to vector<1x8x8xf32>
    %283 = vector.broadcast %282 : vector<1x8x8xf32> to vector<8x8x8xf32>
    %284 = arith.addf %281, %283 : vector<8x8x8xf32>
    %cst_97 = arith.constant dense<0xFF800000> : vector<8x8xf32>
    %285 = vector.multi_reduction <maximumf>, %284, %cst_97 [2] : vector<8x8x8xf32> to vector<8x8xf32>
    %286 = vector.shape_cast %285 : vector<8x8xf32> to vector<8x8x1xf32>
    %287 = vector.broadcast %286 : vector<8x8x1xf32> to vector<8x8x8xf32>
    %288 = arith.subf %284, %287 : vector<8x8x8xf32>
    %289 = math.exp %288 : vector<8x8x8xf32>
    %cst_98 = arith.constant dense<0.000000e+00> : vector<8x8xf32>
    %290 = vector.multi_reduction <add>, %289, %cst_98 [2] : vector<8x8x8xf32> to vector<8x8xf32>
    %291 = vector.shape_cast %290 : vector<8x8xf32> to vector<8x8x1xf32>
    %292 = tpu.reciprocal %291 {approx = true} : vector<8x8x1xf32> -> vector<8x8x1xf32>
    %293 = vector.broadcast %292 : vector<8x8x1xf32> to vector<8x8x8xf32>
    %294 = arith.mulf %289, %293 : vector<8x8x8xf32>
    "tpu.trace_start"() <{level = 10 : i32, message = "gqk,gke->gqe"}> : () -> ()
    %cst_99 = arith.constant dense<0.000000e+00> : vector<8x8x8xf32>
    %295 = tpu.matmul %294, %278, %cst_99 {dimension_numbers = #tpu.dot_dimension_numbers<[2], [1], [1], [2], [0, 0, 0, 1, 1, 2], [0], [0]>} : vector<8x8x8xf32>, vector<8x8x8xf32>, vector<8x8x8xf32> -> vector<8x8x8xf32>
    "tpu.trace_stop"() : () -> ()
    %296 = vector.extract_strided_slice %295 {offsets = [0, 0, 0], sizes = [2, 8, 8], strides = [1, 1, 1]} : vector<8x8x8xf32> to vector<2x8x8xf32>
    %297 = vector.extract_strided_slice %295 {offsets = [2, 0, 0], sizes = [2, 8, 8], strides = [1, 1, 1]} : vector<8x8x8xf32> to vector<2x8x8xf32>
    %298 = vector.extract_strided_slice %295 {offsets = [4, 0, 0], sizes = [2, 8, 8], strides = [1, 1, 1]} : vector<8x8x8xf32> to vector<2x8x8xf32>
    %299 = vector.extract_strided_slice %295 {offsets = [6, 0, 0], sizes = [2, 8, 8], strides = [1, 1, 1]} : vector<8x8x8xf32> to vector<2x8x8xf32>
    %300 = tpu.concatenate %296, %297, %298, %299 in 2 : vector<2x8x8xf32>, vector<2x8x8xf32>, vector<2x8x8xf32>, vector<2x8x8xf32> -> vector<2x8x32xf32>
    %301 = vector.shape_cast %300 : vector<2x8x32xf32> to vector<16x32xf32>
    %cst_100 = arith.constant dense<0.000000e+00> : vector<16x32xf32>
    %302 = tpu.matmul %301, %249, %cst_100 {dimension_numbers = #tpu.dot_dimension_numbers<[1], [0], [0], [1], [0, 0, 1, 1], [], []>} : vector<16x32xf32>, vector<32x32xf32>, vector<16x32xf32> -> vector<16x32xf32>
    %303 = vector.broadcast %251 : vector<1x32xf32> to vector<16x32xf32>
    %304 = arith.addf %302, %303 : vector<16x32xf32>
    %305 = arith.addf %235, %304 : vector<16x32xf32>
    %c1_101 = arith.constant 1 : index
    %c6_102 = arith.constant 6 : index
    %c0_103 = arith.constant 0 : index
    %306 = vector.load %arg6[%c1_101, %c6_102, %c0_103] : memref<2x12x96xf32, #tpu.memory_space<vmem>>, vector<1x1x32xf32>
    %307 = vector.shape_cast %306 : vector<1x1x32xf32> to vector<1x32xf32>
    %c1_104 = arith.constant 1 : index
    %c7_105 = arith.constant 7 : index
    %c0_106 = arith.constant 0 : index
    %308 = vector.load %arg6[%c1_104, %c7_105, %c0_106] : memref<2x12x96xf32, #tpu.memory_space<vmem>>, vector<1x1x32xf32>
    %309 = vector.shape_cast %308 : vector<1x1x32xf32> to vector<1x32xf32>
    %cst_107 = arith.constant dense<0.000000e+00> : vector<16xf32>
    %310 = vector.multi_reduction <add>, %305, %cst_107 [1] : vector<16x32xf32> to vector<16xf32>
    %311 = vector.shape_cast %310 : vector<16xf32> to vector<16x1xf32>
    %cst_108 = arith.constant 3.200000e+01 : f32
    %312 = vector.broadcast %cst_108 : f32 to vector<16x1xf32>
    %313 = arith.divf %311, %312 : vector<16x1xf32>
    %314 = vector.broadcast %313 : vector<16x1xf32> to vector<16x32xf32>
    %315 = arith.subf %305, %314 : vector<16x32xf32>
    %316 = arith.mulf %315, %315 : vector<16x32xf32>
    %cst_109 = arith.constant dense<0.000000e+00> : vector<16xf32>
    %317 = vector.multi_reduction <add>, %316, %cst_109 [1] : vector<16x32xf32> to vector<16xf32>
    %318 = vector.shape_cast %317 : vector<16xf32> to vector<16x1xf32>
    %cst_110 = arith.constant 3.200000e+01 : f32
    %319 = vector.broadcast %cst_110 : f32 to vector<16x1xf32>
    %320 = arith.divf %318, %319 : vector<16x1xf32>
    %cst_111 = arith.constant 9.99999974E-6 : f32
    %321 = vector.broadcast %cst_111 : f32 to vector<16x1xf32>
    %322 = arith.addf %320, %321 : vector<16x1xf32>
    %323 = math.rsqrt %322 : vector<16x1xf32>
    %324 = vector.broadcast %323 : vector<16x1xf32> to vector<16x32xf32>
    %325 = arith.mulf %315, %324 : vector<16x32xf32>
    %326 = vector.broadcast %307 : vector<1x32xf32> to vector<16x32xf32>
    %327 = arith.mulf %325, %326 : vector<16x32xf32>
    %328 = vector.broadcast %309 : vector<1x32xf32> to vector<16x32xf32>
    %329 = arith.addf %327, %328 : vector<16x32xf32>
    %330 = vector.extract_strided_slice %239 {offsets = [0, 0], sizes = [32, 32], strides = [1, 1]} : vector<32x128xf32> to vector<32x32xf32>
    %cst_112 = arith.constant dense<0.000000e+00> : vector<16x32xf32>
    %331 = tpu.matmul %329, %330, %cst_112 {dimension_numbers = #tpu.dot_dimension_numbers<[1], [0], [0], [1], [0, 0, 1, 1], [], []>} : vector<16x32xf32>, vector<32x32xf32>, vector<16x32xf32> -> vector<16x32xf32>
    %c1_113 = arith.constant 1 : index
    %c2_114 = arith.constant 2 : index
    %c0_115 = arith.constant 0 : index
    %332 = vector.load %arg6[%c1_113, %c2_114, %c0_115] : memref<2x12x96xf32, #tpu.memory_space<vmem>>, vector<1x1x96xf32>
    %333 = vector.shape_cast %332 : vector<1x1x96xf32> to vector<1x96xf32>
    %334 = vector.extract_strided_slice %333 {offsets = [0, 0], sizes = [1, 32], strides = [1, 1]} : vector<1x96xf32> to vector<1x32xf32>
    %335 = vector.broadcast %334 : vector<1x32xf32> to vector<16x32xf32>
    %336 = arith.addf %331, %335 : vector<16x32xf32>
    %337 = vector.extract_strided_slice %239 {offsets = [0, 32], sizes = [32, 64], strides = [1, 1]} : vector<32x128xf32> to vector<32x64xf32>
    %cst_116 = arith.constant dense<0.000000e+00> : vector<16x64xf32>
    %338 = tpu.matmul %3, %337, %cst_116 {dimension_numbers = #tpu.dot_dimension_numbers<[1], [0], [0], [1], [0, 0, 1, 1], [], []>} : vector<16x32xf32>, vector<32x64xf32>, vector<16x64xf32> -> vector<16x64xf32>
    %c1_117 = arith.constant 1 : index
    %c2_118 = arith.constant 2 : index
    %c0_119 = arith.constant 0 : index
    %339 = vector.load %arg6[%c1_117, %c2_118, %c0_119] : memref<2x12x96xf32, #tpu.memory_space<vmem>>, vector<1x1x96xf32>
    %340 = vector.shape_cast %339 : vector<1x1x96xf32> to vector<1x96xf32>
    %341 = vector.extract_strided_slice %340 {offsets = [0, 32], sizes = [1, 64], strides = [1, 1]} : vector<1x96xf32> to vector<1x64xf32>
    %342 = vector.broadcast %341 : vector<1x64xf32> to vector<16x64xf32>
    %343 = arith.addf %338, %342 : vector<16x64xf32>
    %344 = vector.extract_strided_slice %343 {offsets = [0, 0], sizes = [16, 32], strides = [1, 1]} : vector<16x64xf32> to vector<16x32xf32>
    %345 = vector.extract_strided_slice %343 {offsets = [0, 32], sizes = [16, 32], strides = [1, 1]} : vector<16x64xf32> to vector<16x32xf32>
    %346 = vector.extract_strided_slice %239 {offsets = [0, 96], sizes = [32, 32], strides = [1, 1]} : vector<32x128xf32> to vector<32x32xf32>
    %c1_120 = arith.constant 1 : index
    %c3_121 = arith.constant 3 : index
    %c0_122 = arith.constant 0 : index
    %347 = vector.load %arg6[%c1_120, %c3_121, %c0_122] : memref<2x12x96xf32, #tpu.memory_space<vmem>>, vector<1x1x32xf32>
    %348 = vector.shape_cast %347 : vector<1x1x32xf32> to vector<1x32xf32>
    %349 = vector.extract_strided_slice %336 {offsets = [0, 0], sizes = [16, 8], strides = [1, 1]} : vector<16x32xf32> to vector<16x8xf32>
    %350 = vector.shape_cast %349 : vector<16x8xf32> to vector<2x8x8xf32>
    %351 = vector.extract_strided_slice %336 {offsets = [0, 8], sizes = [16, 8], strides = [1, 1]} : vector<16x32xf32> to vector<16x8xf32>
    %352 = vector.shape_cast %351 : vector<16x8xf32> to vector<2x8x8xf32>
    %353 = vector.extract_strided_slice %336 {offsets = [0, 16], sizes = [16, 8], strides = [1, 1]} : vector<16x32xf32> to vector<16x8xf32>
    %354 = vector.shape_cast %353 : vector<16x8xf32> to vector<2x8x8xf32>
    %355 = vector.extract_strided_slice %336 {offsets = [0, 24], sizes = [16, 8], strides = [1, 1]} : vector<16x32xf32> to vector<16x8xf32>
    %356 = vector.shape_cast %355 : vector<16x8xf32> to vector<2x8x8xf32>
    %357 = tpu.concatenate %350, %352, %354, %356 in 0 : vector<2x8x8xf32>, vector<2x8x8xf32>, vector<2x8x8xf32>, vector<2x8x8xf32> -> vector<8x8x8xf32>
    %358 = vector.extract_strided_slice %344 {offsets = [0, 0], sizes = [16, 8], strides = [1, 1]} : vector<16x32xf32> to vector<16x8xf32>
    %359 = vector.shape_cast %358 : vector<16x8xf32> to vector<2x8x8xf32>
    %360 = vector.extract_strided_slice %344 {offsets = [0, 8], sizes = [16, 8], strides = [1, 1]} : vector<16x32xf32> to vector<16x8xf32>
    %361 = vector.shape_cast %360 : vector<16x8xf32> to vector<2x8x8xf32>
    %362 = vector.extract_strided_slice %344 {offsets = [0, 16], sizes = [16, 8], strides = [1, 1]} : vector<16x32xf32> to vector<16x8xf32>
    %363 = vector.shape_cast %362 : vector<16x8xf32> to vector<2x8x8xf32>
    %364 = vector.extract_strided_slice %344 {offsets = [0, 24], sizes = [16, 8], strides = [1, 1]} : vector<16x32xf32> to vector<16x8xf32>
    %365 = vector.shape_cast %364 : vector<16x8xf32> to vector<2x8x8xf32>
    %366 = tpu.concatenate %359, %361, %363, %365 in 0 : vector<2x8x8xf32>, vector<2x8x8xf32>, vector<2x8x8xf32>, vector<2x8x8xf32> -> vector<8x8x8xf32>
    %367 = vector.extract_strided_slice %345 {offsets = [0, 0], sizes = [16, 8], strides = [1, 1]} : vector<16x32xf32> to vector<16x8xf32>
    %368 = vector.shape_cast %367 : vector<16x8xf32> to vector<2x8x8xf32>
    %369 = vector.extract_strided_slice %345 {offsets = [0, 8], sizes = [16, 8], strides = [1, 1]} : vector<16x32xf32> to vector<16x8xf32>
    %370 = vector.shape_cast %369 : vector<16x8xf32> to vector<2x8x8xf32>
    %371 = vector.extract_strided_slice %345 {offsets = [0, 16], sizes = [16, 8], strides = [1, 1]} : vector<16x32xf32> to vector<16x8xf32>
    %372 = vector.shape_cast %371 : vector<16x8xf32> to vector<2x8x8xf32>
    %373 = vector.extract_strided_slice %345 {offsets = [0, 24], sizes = [16, 8], strides = [1, 1]} : vector<16x32xf32> to vector<16x8xf32>
    %374 = vector.shape_cast %373 : vector<16x8xf32> to vector<2x8x8xf32>
    %375 = tpu.concatenate %368, %370, %372, %374 in 0 : vector<2x8x8xf32>, vector<2x8x8xf32>, vector<2x8x8xf32>, vector<2x8x8xf32> -> vector<8x8x8xf32>
    %cst_123 = arith.constant 0.353553385 : f32
    %376 = vector.broadcast %cst_123 : f32 to vector<8x8x8xf32>
    %377 = arith.mulf %357, %376 : vector<8x8x8xf32>
    "tpu.trace_start"() <{level = 10 : i32, message = "gqe,gke->gqk"}> : () -> ()
    %cst_124 = arith.constant dense<0.000000e+00> : vector<8x8x8xf32>
    %378 = tpu.matmul %377, %366, %cst_124 {dimension_numbers = #tpu.dot_dimension_numbers<[2], [2], [1], [1], [0, 0, 0, 1, 1, 1], [0], [0]>} : vector<8x8x8xf32>, vector<8x8x8xf32>, vector<8x8x8xf32> -> vector<8x8x8xf32>
    "tpu.trace_stop"() : () -> ()
    %379 = vector.shape_cast %1 : vector<8x8xf32> to vector<1x8x8xf32>
    %380 = vector.broadcast %379 : vector<1x8x8xf32> to vector<8x8x8xf32>
    %381 = arith.addf %378, %380 : vector<8x8x8xf32>
    %cst_125 = arith.constant dense<0xFF800000> : vector<8x8xf32>
    %382 = vector.multi_reduction <maximumf>, %381, %cst_125 [2] : vector<8x8x8xf32> to vector<8x8xf32>
    %383 = vector.shape_cast %382 : vector<8x8xf32> to vector<8x8x1xf32>
    %384 = vector.broadcast %383 : vector<8x8x1xf32> to vector<8x8x8xf32>
    %385 = arith.subf %381, %384 : vector<8x8x8xf32>
    %386 = math.exp %385 : vector<8x8x8xf32>
    %cst_126 = arith.constant dense<0.000000e+00> : vector<8x8xf32>
    %387 = vector.multi_reduction <add>, %386, %cst_126 [2] : vector<8x8x8xf32> to vector<8x8xf32>
    %388 = vector.shape_cast %387 : vector<8x8xf32> to vector<8x8x1xf32>
    %389 = tpu.reciprocal %388 {approx = true} : vector<8x8x1xf32> -> vector<8x8x1xf32>
    %390 = vector.broadcast %389 : vector<8x8x1xf32> to vector<8x8x8xf32>
    %391 = arith.mulf %386, %390 : vector<8x8x8xf32>
    "tpu.trace_start"() <{level = 10 : i32, message = "gqk,gke->gqe"}> : () -> ()
    %cst_127 = arith.constant dense<0.000000e+00> : vector<8x8x8xf32>
    %392 = tpu.matmul %391, %375, %cst_127 {dimension_numbers = #tpu.dot_dimension_numbers<[2], [1], [1], [2], [0, 0, 0, 1, 1, 2], [0], [0]>} : vector<8x8x8xf32>, vector<8x8x8xf32>, vector<8x8x8xf32> -> vector<8x8x8xf32>
    "tpu.trace_stop"() : () -> ()
    %393 = vector.extract_strided_slice %392 {offsets = [0, 0, 0], sizes = [2, 8, 8], strides = [1, 1, 1]} : vector<8x8x8xf32> to vector<2x8x8xf32>
    %394 = vector.extract_strided_slice %392 {offsets = [2, 0, 0], sizes = [2, 8, 8], strides = [1, 1, 1]} : vector<8x8x8xf32> to vector<2x8x8xf32>
    %395 = vector.extract_strided_slice %392 {offsets = [4, 0, 0], sizes = [2, 8, 8], strides = [1, 1, 1]} : vector<8x8x8xf32> to vector<2x8x8xf32>
    %396 = vector.extract_strided_slice %392 {offsets = [6, 0, 0], sizes = [2, 8, 8], strides = [1, 1, 1]} : vector<8x8x8xf32> to vector<2x8x8xf32>
    %397 = tpu.concatenate %393, %394, %395, %396 in 2 : vector<2x8x8xf32>, vector<2x8x8xf32>, vector<2x8x8xf32>, vector<2x8x8xf32> -> vector<2x8x32xf32>
    %398 = vector.shape_cast %397 : vector<2x8x32xf32> to vector<16x32xf32>
    %cst_128 = arith.constant dense<0.000000e+00> : vector<16x32xf32>
    %399 = tpu.matmul %398, %346, %cst_128 {dimension_numbers = #tpu.dot_dimension_numbers<[1], [0], [0], [1], [0, 0, 1, 1], [], []>} : vector<16x32xf32>, vector<32x32xf32>, vector<16x32xf32> -> vector<16x32xf32>
    %400 = vector.broadcast %348 : vector<1x32xf32> to vector<16x32xf32>
    %401 = arith.addf %399, %400 : vector<16x32xf32>
    %402 = arith.addf %329, %401 : vector<16x32xf32>
    %c1_129 = arith.constant 1 : index
    %c8_130 = arith.constant 8 : index
    %c0_131 = arith.constant 0 : index
    %403 = vector.load %arg6[%c1_129, %c8_130, %c0_131] : memref<2x12x96xf32, #tpu.memory_space<vmem>>, vector<1x1x32xf32>
    %404 = vector.shape_cast %403 : vector<1x1x32xf32> to vector<1x32xf32>
    %c1_132 = arith.constant 1 : index
    %c9_133 = arith.constant 9 : index
    %c0_134 = arith.constant 0 : index
    %405 = vector.load %arg6[%c1_132, %c9_133, %c0_134] : memref<2x12x96xf32, #tpu.memory_space<vmem>>, vector<1x1x32xf32>
    %406 = vector.shape_cast %405 : vector<1x1x32xf32> to vector<1x32xf32>
    %cst_135 = arith.constant dense<0.000000e+00> : vector<16xf32>
    %407 = vector.multi_reduction <add>, %402, %cst_135 [1] : vector<16x32xf32> to vector<16xf32>
    %408 = vector.shape_cast %407 : vector<16xf32> to vector<16x1xf32>
    %cst_136 = arith.constant 3.200000e+01 : f32
    %409 = vector.broadcast %cst_136 : f32 to vector<16x1xf32>
    %410 = arith.divf %408, %409 : vector<16x1xf32>
    %411 = vector.broadcast %410 : vector<16x1xf32> to vector<16x32xf32>
    %412 = arith.subf %402, %411 : vector<16x32xf32>
    %413 = arith.mulf %412, %412 : vector<16x32xf32>
    %cst_137 = arith.constant dense<0.000000e+00> : vector<16xf32>
    %414 = vector.multi_reduction <add>, %413, %cst_137 [1] : vector<16x32xf32> to vector<16xf32>
    %415 = vector.shape_cast %414 : vector<16xf32> to vector<16x1xf32>
    %cst_138 = arith.constant 3.200000e+01 : f32
    %416 = vector.broadcast %cst_138 : f32 to vector<16x1xf32>
    %417 = arith.divf %415, %416 : vector<16x1xf32>
    %cst_139 = arith.constant 9.99999974E-6 : f32
    %418 = vector.broadcast %cst_139 : f32 to vector<16x1xf32>
    %419 = arith.addf %417, %418 : vector<16x1xf32>
    %420 = math.rsqrt %419 : vector<16x1xf32>
    %421 = vector.broadcast %420 : vector<16x1xf32> to vector<16x32xf32>
    %422 = arith.mulf %412, %421 : vector<16x32xf32>
    %423 = vector.broadcast %404 : vector<1x32xf32> to vector<16x32xf32>
    %424 = arith.mulf %422, %423 : vector<16x32xf32>
    %425 = vector.broadcast %406 : vector<1x32xf32> to vector<16x32xf32>
    %426 = arith.addf %424, %425 : vector<16x32xf32>
    %c1_140 = arith.constant 1 : index
    %c0_141 = arith.constant 0 : index
    %c0_142 = arith.constant 0 : index
    %427 = vector.load %arg5[%c1_140, %c0_141, %c0_142] : memref<2x96x64xf32, #tpu.memory_space<vmem>>, vector<1x32x64xf32>
    %428 = vector.shape_cast %427 : vector<1x32x64xf32> to vector<32x64xf32>
    %c1_143 = arith.constant 1 : index
    %c32_144 = arith.constant 32 : index
    %c0_145 = arith.constant 0 : index
    %429 = vector.load %arg5[%c1_143, %c32_144, %c0_145] : memref<2x96x64xf32, #tpu.memory_space<vmem>>, vector<1x64x32xf32>
    %430 = vector.shape_cast %429 : vector<1x64x32xf32> to vector<64x32xf32>
    %cst_146 = arith.constant dense<0.000000e+00> : vector<16x64xf32>
    %431 = tpu.matmul %426, %428, %cst_146 {dimension_numbers = #tpu.dot_dimension_numbers<[1], [0], [0], [1], [0, 0, 1, 1], [], []>} : vector<16x32xf32>, vector<32x64xf32>, vector<16x64xf32> -> vector<16x64xf32>
    %c1_147 = arith.constant 1 : index
    %c4_148 = arith.constant 4 : index
    %c0_149 = arith.constant 0 : index
    %432 = vector.load %arg6[%c1_147, %c4_148, %c0_149] : memref<2x12x96xf32, #tpu.memory_space<vmem>>, vector<1x1x64xf32>
    %433 = vector.shape_cast %432 : vector<1x1x64xf32> to vector<1x64xf32>
    %434 = vector.broadcast %433 : vector<1x64xf32> to vector<16x64xf32>
    %435 = arith.addf %431, %434 : vector<16x64xf32>
    %cst_150 = arith.constant 0.000000e+00 : f32
    %436 = vector.broadcast %cst_150 : f32 to vector<16x64xf32>
    %437 = arith.maximumf %435, %436 : vector<16x64xf32>
    %cst_151 = arith.constant dense<0.000000e+00> : vector<16x32xf32>
    %438 = tpu.matmul %437, %430, %cst_151 {dimension_numbers = #tpu.dot_dimension_numbers<[1], [0], [0], [1], [0, 0, 1, 1], [], []>} : vector<16x64xf32>, vector<64x32xf32>, vector<16x32xf32> -> vector<16x32xf32>
    %c1_152 = arith.constant 1 : index
    %c5_153 = arith.constant 5 : index
    %c0_154 = arith.constant 0 : index
    %439 = vector.load %arg6[%c1_152, %c5_153, %c0_154] : memref<2x12x96xf32, #tpu.memory_space<vmem>>, vector<1x1x32xf32>
    %440 = vector.shape_cast %439 : vector<1x1x32xf32> to vector<1x32xf32>
    %441 = vector.broadcast %440 : vector<1x32xf32> to vector<16x32xf32>
    %442 = arith.addf %438, %441 : vector<16x32xf32>
    %443 = arith.addf %426, %442 : vector<16x32xf32>
    %c1_155 = arith.constant 1 : index
    %c10_156 = arith.constant 10 : index
    %c0_157 = arith.constant 0 : index
    %444 = vector.load %arg6[%c1_155, %c10_156, %c0_157] : memref<2x12x96xf32, #tpu.memory_space<vmem>>, vector<1x1x32xf32>
    %445 = vector.shape_cast %444 : vector<1x1x32xf32> to vector<1x32xf32>
    %c1_158 = arith.constant 1 : index
    %c11_159 = arith.constant 11 : index
    %c0_160 = arith.constant 0 : index
    %446 = vector.load %arg6[%c1_158, %c11_159, %c0_160] : memref<2x12x96xf32, #tpu.memory_space<vmem>>, vector<1x1x32xf32>
    %447 = vector.shape_cast %446 : vector<1x1x32xf32> to vector<1x32xf32>
    %cst_161 = arith.constant dense<0.000000e+00> : vector<16xf32>
    %448 = vector.multi_reduction <add>, %443, %cst_161 [1] : vector<16x32xf32> to vector<16xf32>
    %449 = vector.shape_cast %448 : vector<16xf32> to vector<16x1xf32>
    %cst_162 = arith.constant 3.200000e+01 : f32
    %450 = vector.broadcast %cst_162 : f32 to vector<16x1xf32>
    %451 = arith.divf %449, %450 : vector<16x1xf32>
    %452 = vector.broadcast %451 : vector<16x1xf32> to vector<16x32xf32>
    %453 = arith.subf %443, %452 : vector<16x32xf32>
    %454 = arith.mulf %453, %453 : vector<16x32xf32>
    %cst_163 = arith.constant dense<0.000000e+00> : vector<16xf32>
    %455 = vector.multi_reduction <add>, %454, %cst_163 [1] : vector<16x32xf32> to vector<16xf32>
    %456 = vector.shape_cast %455 : vector<16xf32> to vector<16x1xf32>
    %cst_164 = arith.constant 3.200000e+01 : f32
    %457 = vector.broadcast %cst_164 : f32 to vector<16x1xf32>
    %458 = arith.divf %456, %457 : vector<16x1xf32>
    %cst_165 = arith.constant 9.99999974E-6 : f32
    %459 = vector.broadcast %cst_165 : f32 to vector<16x1xf32>
    %460 = arith.addf %458, %459 : vector<16x1xf32>
    %461 = math.rsqrt %460 : vector<16x1xf32>
    %462 = vector.broadcast %461 : vector<16x1xf32> to vector<16x32xf32>
    %463 = arith.mulf %453, %462 : vector<16x32xf32>
    %464 = vector.broadcast %445 : vector<1x32xf32> to vector<16x32xf32>
    %465 = arith.mulf %463, %464 : vector<16x32xf32>
    %466 = vector.broadcast %447 : vector<1x32xf32> to vector<16x32xf32>
    %467 = arith.addf %465, %466 : vector<16x32xf32>
    %c0_166 = arith.constant 0 : index
    %c0_167 = arith.constant 0 : index
    %468 = vector.load %arg7[%c0_166, %c0_167] : memref<16x32xf32, #tpu.memory_space<vmem>>, vector<16x32xf32>
    tpu.vector_store %arg7[%c0_166, %c0_167], %467 {strides = array<i32>} : memref<16x32xf32, #tpu.memory_space<vmem>>, vector<16x32xf32>,
    return
  }
}

</mosaic_0001>

<bundles_post_ra>
// kernel: _lambda_.1
= control target key start
LH: loop header
LB: loop body
LE: loop exit
PB: predicated region body
PF: predicated region fallthrough
CT: control target
= control target key end

     0   :  { %12 = vsyncpa [#allocation3], 0  ;;  %s9484_s0 = inlined_call_operand.vmem [shape: f32[16,32], index: 0, kind: input, shape index: {}]   ;;  %s9485_s1 = inlined_call_operand.vmem [shape: f32[16,32], index: 1, kind: input, shape index: {}]   ;;  %s9486_s2 = inlined_call_operand.vmem [shape: f32[8,8], index: 2, kind: input, shape index: {}]   ;;  %s9487_s3 = inlined_call_operand.vmem [shape: f32[8,8], index: 3, kind: input, shape index: {}]   ;;  %s9488_s4 = inlined_call_operand.hbm [shape: f32[2,2,32,128], index: 4, kind: input, shape index: {}]   ;;  %s9489_s5 = inlined_call_operand.hbm [shape: f32[2,96,64], index: 5, kind: input, shape index: {}]   ;;  %s9490_s6 = inlined_call_operand.vmem [shape: f32[2,12,96], index: 6, kind: input, shape index: {}]   ;;  %s9491_s7 = inlined_call_operand.vmem [shape: f32[16,32], index: 7, kind: output, shape index: {}]  }
   0x1   :  { %13 = vsyncpa [#allocation5], 0  ;;  %s8411_s24 = smov [#allocation2]   ;;  %s8363_s28 = scalar_lea.hbm %s9488_s4, 2048 }
   0x2   :  { %s27_s25 = sshll.u32 %s8411_s24, 4  ;;  %p8364_p0 = scmp.ne.s32.totalorder %s9488_s4, %s8363_s28  ;;  %s28_s25 = int_to_ptr.vmem [resolvable:$true] %s27_s25 }
   0x3   :  { %p8367_p1 = scmp.lt.u32.totalorder %s8363_s28, %s9488_s4 }
   0x5   :  { %p8369_p2 = pnand %p8367_p1, %p8364_p0 }
   0x7   :  { %8372 = shalt.err (!%p8369_p2)
}
   0x8   :  { %s8373_s10 = scalar_lea.vmem %s28_s25, 2048  ;;  %p8378_p4 = scmp.lt.s32.totalorder %s28_s25, %s28_s25 }
   0x9   :  { %p8374_p3 = scmp.ne.s32.totalorder %s28_s25, %s8373_s10  ;;  %p8379_p5 = scmp.lt.s32.totalorder %s8373_s10, %s8373_s10 }
   0xb   :  { %p8380_p6 = por %p8379_p5, %p8378_p4 }
   0xd   :  { %p8381_p7 = pnand %p8380_p6, %p8374_p3 }
   0xf   :  { %8384 = shalt.err (!%p8381_p7)
}
  0x10   :  { %s8412_s11 = smov 128   ;;  %s8413_s12 = smov 8  }
  0x11   :  { %33 = dma.hbm_to_vmem [thread:$0]  %s9488_s4, 2048, %s28_s25, [#allocation3], %s8412_s11, %s8412_s11, %s8413_s12  }
  0x12   :  { %s8414_s15 = smov [#allocation4]   ;;  %s8385_s19 = scalar_lea.hbm %s9489_s5, 3072 }
  0x13   :  { %s39_s16 = sshll.u32 %s8414_s15, 4  ;;  %p8386_p8 = scmp.ne.s32.totalorder %s9489_s5, %s8385_s19  ;;  %s40_s16 = int_to_ptr.vmem [resolvable:$true] %s39_s16 }
  0x14   :  { %p8389_p9 = scmp.lt.u32.totalorder %s8385_s19, %s9489_s5 }
  0x16   :  { %p8391_p10 = pnand %p8389_p9, %p8386_p8 }
  0x18   :  { %8394 = shalt.err (!%p8391_p10)
}
  0x19   :  { %s8395_s24 = scalar_lea.vmem %s40_s16, 3072  ;;  %p8400_p12 = scmp.lt.s32.totalorder %s40_s16, %s40_s16 }
  0x1a   :  { %p8396_p11 = scmp.ne.s32.totalorder %s40_s16, %s8395_s24  ;;  %p8401_p13 = scmp.lt.s32.totalorder %s8395_s24, %s8395_s24 }
  0x1c   :  { %p8402_p0 = por %p8401_p13, %p8400_p12 }
  0x1e   :  { %p8403_p1 = pnand %p8402_p0, %p8396_p11 }
  0x20   :  { %8406 = shalt.err (!%p8403_p1)
}
  0x21   :  { %45 = dma.hbm_to_vmem [thread:$0]  %s9489_s5, 3072, %s40_s16, [#allocation5], %s8412_s11, %s8412_s11, %s8413_s12  }
  0x22   :  { %8407 = dma.done.wait [#allocation3], 2048  }
  0x23   :  { %8408 = vsyncadd [#allocation3], 4294965248 }
  0x24   :  { %8409 = dma.done.wait [#allocation5], 3072  }
  0x25   :  { %8410 = vsyncadd [#allocation5], 4294964224  ;;  %vm74_vm0 = vcmask 261120   ;;  %v8491_v0 = vld [vmem:[#allocation2] sm:$0xff]  ;;  %v8493_v1 = vld [vmem:[#allocation2 + $0x8] sm:$0xff]  ;;  %v8415_v11 = vmov 0.0  }
  0x26   :  { %v8495_v2 = vld [vmem:[#allocation2 + $0x10] sm:$0xff]  ;;  %v8147_v3 = vpack.i.bf16 %v8493_v1, %v8491_v0  ;;  %v8005_v4 = vpack.c.bf16 %v8493_v1, %v8491_v0  ;;  %v8501_v5 = vld [vmem:[#allocation2 + $0x18] sm:$0xff]  ;;  %v8506_v6 = vld [vmem:[%s9484_s0] sm:$0xff]  ;;  %7536 = vmatprep.subr.mxu0 %v8415_v11  ;;  %s8416_s8 = smov 112   ;;  %vm8418_vm1 = vmmov 0   ;;  %s8419_s9 = smov 104  }
  0x27   :  { %v8009_v7 = vpack.c.bf16 %v8501_v5, %v8495_v2  ;;  %7523 = vmatprep.mubr.msk.f32.mxu1 %vm74_vm0, %v8506_v6  ;;  %v8515_v8 = vld [vmem:[%s9484_s0 + $0x8] sm:$0xff]  ;;  %v7135_v9 = vld [vmem:[%s9490_s6] ss:$0 sm:$0xff]  ;;  %s8417_s0 = smov 120   ;;  %7538 = vmatprep.mubr.msk.f32.mxu0 %vm8418_vm1, %v8415_v11  ;;  %s8420_s10 = smov 96   ;;  %vm187_vm2 = vcmask 64512  }
  0x28   :  { %8006 = vmatprep.subr.bf16.mxu1 %v8005_v4  ;;  %v54_v37 = vld [vmem:[%s9486_s2] sm:$0xff]  ;;  %s8421_s14 = smov 64   ;;  %s8422_s15 = smov 32   ;;  %vm1524_vm3 = vcmask 130048   ;;  %vm1527_vm4 = vcmask 195584   ;;  %vm3474_vm5 = vcmask 523264  }
  0x29   :  { %8008 = vmatpush3.bf16.msra.mxu1 %v8005_v4  ;;  %s8423_s16 = smov 16   ;;  %s8424_s17 = smov 24  }
  0x2a   :  { %8010 = vmatprep.subr.bf16.mxu1 %v8009_v7 }
  0x2d   :  { %8012 = vmatpush3.bf16.msra.mxu1 %v8009_v7 }
  0x2e   :  { %7526 = vmatprep.subr.mxu1 %v8415_v11 }
  0x30   :  { %7524 = vmatmul.mubr.msk.f32.vlgmr.msra.gmra.mrb[0].mxu1 %vm74_vm0, %v8515_v8 }
  0x31   :  { %7528 = vmatprep.mubr.msk.f32.mxu1 %vm8418_vm1, %v8415_v11 }
 0x103   :  { %v7525_v10 = vpop.f32.mrb[0].mxu1 }
 0x104   :  { %v147_v12 = vpop.f32.mrb[1].mxu1  ;;  %v8534_v14 = vadd.f32 %v7525_v10, %v7135_v9 }
 0x105   :  { %v8524_v13 = vadd.f32 %v7135_v9, %v147_v12 }
 0x106   :  { %v178_v24 = vmul.f32 0.35355338, %v8534_v14 }
 0x107   :  { %165 = vrot.lane.b32.xlu1 %v8524_v13, %s8416_s8  ;;  %159 = vrot.lane.b32.xlu0 %v8524_v13, %s8417_s0  ;;  %v177_v22 = vmul.f32 0.35355338, %v8524_v13 }
 0x10b   :  { %167 = vrot.lane.b32.xlu1 %v8534_v14, %s8416_s8  ;;  %161 = vrot.lane.b32.xlu0 %v8534_v14, %s8417_s0 }
 0x10f   :  { %173 = vrot.lane.b32.xlu1 %v8534_v14, %s8419_s9  ;;  %171 = vrot.lane.b32.xlu0 %v8524_v13, %s8419_s9 }
 0x113   :  { %263 = vrot.lane.b32.xlu1 %v8534_v14, %s8420_s10  ;;  %185 = vrot.lane.b32.xlu0 %v8524_v13, %s8420_s10 }
 0x179   :  { %v8548_v15 = vpop.permute.xlu1 %165  ;;  %v8550_v16 = vpop.permute.xlu0 %159 }
 0x17a   :  { %340 = vrot.lane.b32.xlu0 %v8550_v16, %s8420_s10  ;;  %v179_v26 = vmul.f32 0.35355338, %v8550_v16  ;;  %v181_v29 = vmul.f32 0.35355338, %v8548_v15 }
 0x17d   :  { %v8554_v17 = vpop.permute.xlu1 %167  ;;  %v8556_v18 = vpop.permute.xlu0 %161 }
 0x17e   :  { %494 = vrot.lane.b32.xlu0 %v8548_v15, %s8420_s10  ;;  %417 = vrot.lane.b32.xlu1 %v8556_v18, %s8420_s10  ;;  %v180_v30 = vmul.f32 0.35355338, %v8556_v18  ;;  %v182_v33 = vmul.f32 0.35355338, %v8554_v17 }
 0x181   :  { %v8562_v19 = vpop.permute.xlu0 %171  ;;  %v8568_v20 = vpop.permute.xlu1 %173 }
 0x182   :  { %571 = vrot.lane.b32.xlu1 %v8554_v17, %s8420_s10  ;;  %648 = vrot.lane.b32.xlu0 %v8562_v19, %s8420_s10  ;;  %v183_v34 = vmul.f32 0.35355338, %v8562_v19  ;;  %v184_v36 = vmul.f32 0.35355338, %v8568_v20 }
 0x185   :  { %v186_v21 = vpop.permute.xlu0 %185  ;;  %v264_v23 = vpop.permute.xlu1 %263 }
 0x186   :  { %725 = vrot.lane.b32.xlu1 %v8568_v20, %s8420_s10  ;;  %7527 = vmatpush3.xpose.msk.msra.mxu1 %vm187_vm2, %v186_v21 }
 0x187   :  { %7531 = vmatprep.subr.mxu1 %v8415_v11 }
 0x189   :  { %7529 = vmatmul.mubr.msk.f32.vlgmr.msra.gmra.mrb[2].mxu1 %vm187_vm2, %v177_v22 }
 0x18a   :  { %7532 = vmatpush3.xpose.msk.msra.mxu1 %vm187_vm2, %v264_v23  ;;  %7533 = vmatprep.mubr.msk.f32.mxu1 %vm8418_vm1, %v8415_v11 }
 0x18b   :  { %7541 = vmatprep.subr.mxu1 %v8415_v11 }
 0x18d   :  { %7534 = vmatmul.mubr.msk.f32.vlgmr.msra.gmra.mrb[4].mxu1 %vm187_vm2, %v178_v24 }
 0x18e   :  { %7543 = vmatprep.mubr.msk.f32.mxu1 %vm8418_vm1, %v8415_v11 }
 0x1ec   :  { %v341_v25 = vpop.permute.xlu0 %340 }
 0x1ed   :  { %7537 = vmatpush3.xpose.msk.msra.mxu0 %vm187_vm2, %v341_v25 }
 0x1ee   :  { %7546 = vmatprep.subr.mxu0 %v8415_v11 }
 0x1f0   :  { %v418_v27 = vpop.permute.xlu1 %417  ;;  %7539 = vmatmul.mubr.msk.f32.vlgmr.msra.gmra.mrb[0].mxu0 %vm187_vm2, %v179_v26  ;;  %v495_v28 = vpop.permute.xlu0 %494 }
 0x1f1   :  { %7542 = vmatpush3.xpose.msk.msra.mxu1 %vm187_vm2, %v418_v27  ;;  %7547 = vmatpush3.xpose.msk.msra.mxu0 %vm187_vm2, %v495_v28 }
 0x1f2   :  { %7548 = vmatprep.mubr.msk.f32.mxu0 %vm8418_vm1, %v8415_v11  ;;  %7556 = vmatprep.subr.mxu0 %v8415_v11 }
 0x1f3   :  { %7551 = vmatprep.subr.mxu1 %v8415_v11 }
 0x1f4   :  { %v572_v31 = vpop.permute.xlu1 %571  ;;  %7549 = vmatmul.mubr.msk.f32.vlgmr.msra.gmra.mrb[2].mxu0 %vm187_vm2, %v181_v29  ;;  %v649_v32 = vpop.permute.xlu0 %648  ;;  %7544 = vmatmul.mubr.msk.f32.vlgmr.msra.gmra.mrb[6].mxu1 %vm187_vm2, %v180_v30 }
 0x1f5   :  { %7552 = vmatpush3.xpose.msk.msra.mxu1 %vm187_vm2, %v572_v31  ;;  %7557 = vmatpush3.xpose.msk.msra.mxu0 %vm187_vm2, %v649_v32 }
 0x1f6   :  { %7553 = vmatprep.mubr.msk.f32.mxu1 %vm8418_vm1, %v8415_v11  ;;  %7558 = vmatprep.mubr.msk.f32.mxu0 %vm8418_vm1, %v8415_v11 }
 0x1f7   :  { %7561 = vmatprep.subr.mxu1 %v8415_v11  ;;  %7566 = vmatprep.subr.mxu0 %v8415_v11 }
 0x1f8   :  { %v726_v35 = vpop.permute.xlu1 %725  ;;  %7554 = vmatmul.mubr.msk.f32.vlgmr.msra.gmra.mrb[8].mxu1 %vm187_vm2, %v182_v33  ;;  %7559 = vmatmul.mubr.msk.f32.vlgmr.msra.gmra.mrb[4].mxu0 %vm187_vm2, %v183_v34 }
 0x1f9   :  { %7562 = vmatpush3.xpose.msk.msra.mxu1 %vm187_vm2, %v726_v35  ;;  %7563 = vmatprep.mubr.msk.f32.mxu1 %vm8418_vm1, %v8415_v11 }
 0x1fa   :  { %7571 = vmatprep.subr.mxu1 %v8415_v11  ;;  %7568 = vmatprep.mubr.msk.f32.mxu0 %vm8418_vm1, %v8415_v11 }
 0x1fc   :  { %7564 = vmatmul.mubr.msk.f32.vlgmr.msra.gmra.mrb[10].mxu1 %vm187_vm2, %v184_v36 }
 0x1fd   :  { %7573 = vmatprep.mubr.msk.f32.mxu1 %vm8418_vm1, %v8415_v11 }
 0x25c   :  { %v259_v38 = vpop.f32.mrb[2].mxu1 }
 0x25d   :  { %v260_v39 = vadd.f32 %v259_v38, %v54_v37  ;;  %v7530_v40 = vpop.f32.mrb[3].mxu1 }
 0x25f   :  { %v802_v41 = vsel %vm187_vm2, %v260_v39, -inf }
 0x260   :  { %v336_v42 = vpop.f32.mrb[4].mxu1  ;;  %803 = vmax.xlane.f32.xlu0 %v802_v41 }
 0x261   :  { %v337_v43 = vadd.f32 %v336_v42, %v54_v37  ;;  %v7535_v44 = vpop.f32.mrb[5].mxu1 }
 0x263   :  { %v805_v45 = vsel %vm187_vm2, %v337_v43, -inf }
 0x264   :  { %806 = vmax.xlane.f32.xlu1 %v805_v45 }
 0x2c3   :  { %v413_v46 = vpop.f32.mrb[0].mxu0 }
 0x2c4   :  { %v414_v47 = vadd.f32 %v413_v46, %v54_v37  ;;  %v7540_v48 = vpop.f32.mrb[1].mxu0 }
 0x2c6   :  { %v808_v49 = vsel %vm187_vm2, %v414_v47, -inf }
 0x2c7   :  { %v490_v50 = vpop.f32.mrb[6].mxu1  ;;  %v567_v51 = vpop.f32.mrb[2].mxu0  ;;  %809 = vmax.xlane.f32.xlu0 %v808_v49 }
 0x2c8   :  { %v491_v52 = vadd.f32 %v490_v50, %v54_v37  ;;  %v568_v53 = vadd.f32 %v567_v51, %v54_v37  ;;  %v7545_v54 = vpop.f32.mrb[7].mxu1  ;;  %v7550_v55 = vpop.f32.mrb[3].mxu0 }
 0x2ca   :  { %v814_v56 = vsel %vm187_vm2, %v568_v53, -inf  ;;  %v811_v57 = vsel %vm187_vm2, %v491_v52, -inf }
 0x2cb   :  { %v644_v58 = vpop.f32.mrb[8].mxu1  ;;  %v721_v59 = vpop.f32.mrb[4].mxu0  ;;  %815 = vmax.xlane.f32.xlu1 %v814_v56  ;;  %812 = vmax.xlane.f32.xlu0 %v811_v57 }
 0x2cc   :  { %v645_v60 = vadd.f32 %v644_v58, %v54_v37  ;;  %v722_v61 = vadd.f32 %v721_v59, %v54_v37  ;;  %v7555_v62 = vpop.f32.mrb[9].mxu1  ;;  %v7560_v63 = vpop.f32.mrb[5].mxu0 }
 0x2ce   :  { %v820_v4 = vsel %vm187_vm2, %v722_v61, -inf  ;;  %v817_v7 = vsel %vm187_vm2, %v645_v60, -inf }
 0x2cf   :  { %v798_v9 = vpop.f32.mrb[10].mxu1  ;;  %821 = vmax.xlane.f32.xlu1 %v820_v4  ;;  %818 = vmax.xlane.f32.xlu0 %v817_v7 }
 0x2d0   :  { %v799_v10 = vadd.f32 %v798_v9, %v54_v37  ;;  %v7565_v12 = vpop.f32.mrb[11].mxu1 }
 0x2d2   :  { %v823_v21 = vsel %vm187_vm2, %v799_v10, -inf }
 0x2d3   :  { %824 = vmax.xlane.f32.xlu0 %v823_v21 }
 0x2e0   :  { %890 = vrot.lane.b32.xlu1 %v8524_v13, %s8421_s14 }
 0x2e4   :  { %1042 = vrot.lane.b32.xlu1 %v8550_v16, %s8421_s14 }
 0x2e8   :  { %1118 = vrot.lane.b32.xlu1 %v8556_v18, %s8421_s14 }
 0x2e9   :  { %966 = vrot.lane.b32.xlu0 %v8534_v14, %s8421_s14 }
 0x2ec   :  { %1270 = vrot.lane.b32.xlu1 %v8554_v17, %s8421_s14 }
 0x2ed   :  { %1194 = vrot.lane.b32.xlu0 %v8548_v15, %s8421_s14  ;;  %v804_v24 = vpop.xlane.xlu0 %803 }
 0x2ee   :  { %v826_v25 = vsub.f32 %v260_v39, %v804_v24 }
 0x2f0   :  { %v834_v26 = vmul.f32 1.442695, %v826_v25 }
 0x2f1   :  { %v807_v22 = vpop.xlane.xlu1 %806 }
 0x2f2   :  { %v827_v23 = vsub.f32 %v337_v43, %v807_v22 }
 0x2f4   :  { %v836_v13 = vmul.f32 1.442695, %v827_v23 }
 0x2f6   :  { %8207 = vpow2.f32 %v836_v13  ;;  %v8152_v13 = vpack.i.bf16 %v8501_v5, %v8495_v2 }
 0x2f7   :  { %8209 = vpow2.f32 %v834_v26 }
 0x300   :  { %v8643_v16 = vpop.eup %8207 }
 0x301   :  { %v853_v18 = vsel %vm187_vm2, %v8643_v16, 0.0  ;;  %v8647_v14 = vpop.eup %8209 }
 0x302   :  { %v850_v17 = vsel %vm187_vm2, %v8647_v14, 0.0 }
 0x30c   :  { %854 = vadd.xlane.f32.xlu0 %v853_v18 }
 0x310   :  { %851 = vadd.xlane.f32.xlu1 %v850_v17 }
 0x354   :  { %v810_v15 = vpop.xlane.xlu0 %809 }
 0x355   :  { %v828_v27 = vsub.f32 %v414_v47, %v810_v15 }
 0x357   :  { %v838_v28 = vmul.f32 1.442695, %v828_v27 }
 0x358   :  { %v816_v29 = vpop.xlane.xlu1 %815  ;;  %v813_v30 = vpop.xlane.xlu0 %812 }
 0x359   :  { %8211 = vpow2.f32 %v838_v28  ;;  %v830_v31 = vsub.f32 %v568_v53, %v816_v29  ;;  %v829_v32 = vsub.f32 %v491_v52, %v813_v30 }
 0x35b   :  { %v842_v33 = vmul.f32 1.442695, %v830_v31  ;;  %v840_v34 = vmul.f32 1.442695, %v829_v32 }
 0x35c   :  { %v822_v35 = vpop.xlane.xlu1 %821  ;;  %v819_v36 = vpop.xlane.xlu0 %818 }
 0x35d   :  { %8213 = vpow2.f32 %v842_v33  ;;  %v832_v37 = vsub.f32 %v722_v61, %v822_v35  ;;  %v831_v38 = vsub.f32 %v645_v60, %v819_v36 }
 0x35e   :  { %8215 = vpow2.f32 %v840_v34 }
 0x35f   :  { %v846_v39 = vmul.f32 1.442695, %v832_v37  ;;  %v844_v40 = vmul.f32 1.442695, %v831_v38 }
 0x360   :  { %v891_v41 = vpop.permute.xlu1 %890  ;;  %v825_v42 = vpop.xlane.xlu0 %824 }
 0x361   :  { %8217 = vpow2.f32 %v846_v39  ;;  %v833_v43 = vsub.f32 %v799_v10, %v825_v42  ;;  %7567 = vmatpush3.msra.mxu0 %v891_v41 }
 0x362   :  { %8219 = vpow2.f32 %v844_v40  ;;  %7576 = vmatprep.subr.mxu0 %v8415_v11 }
 0x363   :  { %v8212_v44 = vpop.eup %8211  ;;  %v848_v45 = vmul.f32 1.442695, %v833_v43 }
 0x364   :  { %v967_v46 = vpop.permute.xlu0 %966  ;;  %v856_v47 = vsel %vm187_vm2, %v8212_v44, 0.0  ;;  %v1043_v58 = vpop.permute.xlu1 %1042 }
 0x365   :  { %8221 = vpow2.f32 %v848_v45  ;;  %857 = vadd.xlane.f32.xlu1 %v856_v47  ;;  %7572 = vmatpush3.msra.mxu1 %v967_v46 }
 0x366   :  { %7581 = vmatprep.subr.mxu1 %v8415_v11 }
 0x367   :  { %v8214_v48 = vpop.eup %8213 }
 0x368   :  { %v8216_v49 = vpop.eup %8215  ;;  %v862_v50 = vsel %vm187_vm2, %v8214_v48, 0.0  ;;  %v1119_v59 = vpop.permute.xlu1 %1118 }
 0x369   :  { %863 = vadd.xlane.f32.xlu1 %v862_v50  ;;  %v859_v51 = vsel %vm187_vm2, %v8216_v49, 0.0  ;;  %v1195_v60 = vpop.permute.xlu0 %1194 }
 0x36a   :  { %860 = vadd.xlane.f32.xlu0 %v859_v51 }
 0x36b   :  { %v8656_v52 = vpop.eup %8217 }
 0x36c   :  { %v8658_v53 = vpop.eup %8219  ;;  %v868_v54 = vsel %vm187_vm2, %v8656_v52, 0.0  ;;  %v1271_v61 = vpop.permute.xlu1 %1270 }
 0x36d   :  { %869 = vadd.xlane.f32.xlu1 %v868_v54  ;;  %v865_v55 = vsel %vm187_vm2, %v8658_v53, 0.0 }
 0x36e   :  { %866 = vadd.xlane.f32.xlu0 %v865_v55 }
 0x36f   :  { %v8664_v56 = vpop.eup %8221 }
 0x370   :  { %v871_v57 = vsel %vm187_vm2, %v8664_v56, 0.0 }
 0x372   :  { %872 = vadd.xlane.f32.xlu0 %v871_v57 }
 0x37e   :  { %1422 = vrot.lane.b32.xlu1 %v8568_v20, %s8421_s14 }
 0x382   :  { %8153 = vrot.lane.b32.xlu1 %v8152_v13, %s8422_s15 }
 0x388   :  { %1346 = vrot.lane.b32.xlu0 %v8562_v19, %s8421_s14 }
 0x38c   :  { %8148 = vrot.lane.b32.xlu0 %v8147_v3, %s8422_s15 }
 0x399   :  { %v855_v62 = vpop.xlane.xlu0 %854 }
 0x39a   :  { %8223 = vrcp.f32 %v855_v62 }
 0x39d   :  { %v852_v63 = vpop.xlane.xlu1 %851 }
 0x39e   :  { %8225 = vrcp.f32 %v852_v63 }
 0x3a4   :  { %v8224_v4 = vpop.eup %8223 }
 0x3a5   :  { %v883_v7 = vmul.f32 %v8224_v4, %v8643_v16  ;;  %v7162_v4 = vld [vmem:[%s9490_s6 + $0x1] ss:$0 sm:$0xff] }
 0x3a7   :  { %7574 = vmatmul.mubr.msk.f32.vlgmr.msra.gmra.mrb[12].mxu1 %vm187_vm2, %v883_v7 }
 0x3a8   :  { %v8226_v9 = vpop.eup %8225  ;;  %7582 = vmatpush3.msra.mxu1 %v1119_v59  ;;  %7583 = vmatprep.mubr.msk.f32.mxu1 %vm8418_vm1, %v8415_v11 }
 0x3a9   :  { %v882_v19 = vmul.f32 %v8226_v9, %v8647_v14  ;;  %7591 = vmatprep.subr.mxu1 %v8415_v11 }
 0x3ab   :  { %7569 = vmatmul.mubr.msk.f32.vlgmr.msra.gmra.mrb[6].mxu0 %vm187_vm2, %v882_v19 }
 0x3ac   :  { %7577 = vmatpush3.msra.mxu0 %v1043_v58  ;;  %7578 = vmatprep.mubr.msk.f32.mxu0 %vm8418_vm1, %v8415_v11 }
 0x3ad   :  { %7586 = vmatprep.subr.mxu0 %v8415_v11 }
 0x3f2   :  { %v858_v20 = vpop.xlane.xlu1 %857 }
 0x3f3   :  { %8227 = vrcp.f32 %v858_v20 }
 0x3f6   :  { %v864_v10 = vpop.xlane.xlu1 %863 }
 0x3f7   :  { %8229 = vrcp.f32 %v864_v10  ;;  %v861_v12 = vpop.xlane.xlu0 %860 }
 0x3f8   :  { %8231 = vrcp.f32 %v861_v12 }
 0x3fa   :  { %v870_v21 = vpop.xlane.xlu1 %869 }
 0x3fb   :  { %8233 = vrcp.f32 %v870_v21  ;;  %v867_v22 = vpop.xlane.xlu0 %866 }
 0x3fc   :  { %8235 = vrcp.f32 %v867_v22 }
 0x3fd   :  { %v8228_v23 = vpop.eup %8227 }
 0x3fe   :  { %v884_v24 = vmul.f32 %v8228_v23, %v8212_v44  ;;  %v1423_v17 = vpop.permute.xlu1 %1422  ;;  %v65_v23 = vld [vmem:[#allocation2 + $0x20] sm:$0xff] }
 0x3ff   :  { %v873_v25 = vpop.xlane.xlu0 %872 }
 0x400   :  { %8237 = vrcp.f32 %v873_v25  ;;  %7579 = vmatmul.mubr.msk.f32.vlgmr.msra.gmra.mrb[8].mxu0 %vm187_vm2, %v884_v24  ;;  %v66_v24 = vld [vmem:[#allocation2 + $0x28] sm:$0xff] }
 0x401   :  { %v8230_v26 = vpop.eup %8229  ;;  %7587 = vmatpush3.msra.mxu0 %v1195_v60  ;;  %7588 = vmatprep.mubr.msk.f32.mxu0 %vm8418_vm1, %v8415_v11  ;;  %v8729_v25 = vpack.i.bf16 %v66_v24, %v65_v23 }
 0x402   :  { %v8232_v16 = vpop.eup %8231  ;;  %7596 = vmatprep.subr.mxu0 %v8415_v11  ;;  %v886_v18 = vmul.f32 %v8230_v26, %v8214_v48  ;;  %v8154_v35 = vpop.permute.xlu1 %8153 }
 0x403   :  { %v1347_v2 = vpop.permute.xlu0 %1346  ;;  %v885_v5 = vmul.f32 %v8232_v16, %v8216_v49  ;;  %v8156_v36 = vunpack.i.h.bf16 %v8154_v35  ;;  %v8155_v37 = vunpack.i.l.bf16 %v8154_v35 }
 0x404   :  { %7589 = vmatmul.mubr.msk.f32.vlgmr.msra.gmra.mrb[10].mxu0 %vm187_vm2, %v886_v18 }
 0x405   :  { %v8234_v14 = vpop.eup %8233  ;;  %7584 = vmatmul.mubr.msk.f32.vlgmr.msra.gmra.mrb[14].mxu1 %vm187_vm2, %v885_v5  ;;  %7597 = vmatpush3.msra.mxu0 %v1347_v2  ;;  %v8017_v39 = vpack.c.bf16 %v8156_v36, %v8155_v37 }
 0x406   :  { %v8236_v0 = vpop.eup %8235  ;;  %7592 = vmatpush3.msra.mxu1 %v1271_v61  ;;  %7593 = vmatprep.mubr.msk.f32.mxu1 %vm8418_vm1, %v8415_v11  ;;  %v888_v1 = vmul.f32 %v8234_v14, %v8656_v52 }
 0x407   :  { %7598 = vmatprep.mubr.msk.f32.mxu0 %vm8418_vm1, %v8415_v11  ;;  %7601 = vmatprep.subr.mxu1 %v8415_v11  ;;  %v887_v3 = vmul.f32 %v8236_v0, %v8658_v53  ;;  %v8149_v32 = vpop.permute.xlu0 %8148 }
 0x408   :  { %7599 = vmatmul.mubr.msk.f32.vlgmr.msra.gmra.mrb[12].mxu0 %vm187_vm2, %v888_v1  ;;  %v8151_v33 = vunpack.i.h.bf16 %v8149_v32  ;;  %v8150_v34 = vunpack.i.l.bf16 %v8149_v32 }
 0x409   :  { %7594 = vmatmul.mubr.msk.f32.vlgmr.msra.gmra.mrb[16].mxu1 %vm187_vm2, %v887_v3  ;;  %v67_v3 = vld [vmem:[#allocation2 + $0x30] sm:$0xff] }
 0x40a   :  { %v8238_v15 = vpop.eup %8237  ;;  %7602 = vmatpush3.msra.mxu1 %v1423_v17  ;;  %7603 = vmatprep.mubr.msk.f32.mxu1 %vm8418_vm1, %v8415_v11  ;;  %v8013_v38 = vpack.c.bf16 %v8151_v33, %v8150_v34  ;;  %v68_v17 = vld [vmem:[#allocation2 + $0x38] sm:$0xff]  ;;  %v7167_v33 = vld [vmem:[%s9490_s6 + $0x2] ss:$0 sm:$0xff] }
 0x40b   :  { %v889_v27 = vmul.f32 %v8238_v15, %v8664_v56  ;;  %v8025_v32 = vpack.c.bf16 %v68_v17, %v67_v3 }
 0x40c   :  { %8014 = vmatprep.subr.bf16.mxu0 %v8013_v38 }
 0x40d   :  { %7604 = vmatmul.mubr.msk.f32.vlgmr.msra.gmra.mrb[18].mxu1 %vm187_vm2, %v889_v27  ;;  %8016 = vmatpush3.bf16.msra.mxu0 %v8013_v38 }
 0x40e   :  { %8018 = vmatprep.subr.bf16.mxu0 %v8017_v39 }
 0x411   :  { %8020 = vmatpush3.bf16.msra.mxu0 %v8017_v39 }
 0x47a   :  { %v1038_v28 = vpop.f32.mrb[12].mxu1 }
 0x47b   :  { %v7575_v29 = vpop.f32.mrb[13].mxu1 }
 0x47c   :  { %v8735_v29 = vpack.i.bf16 %v68_v17, %v67_v3 }
 0x47e   :  { %v962_v30 = vpop.f32.mrb[6].mxu0 }
 0x47f   :  { %v7570_v31 = vpop.f32.mrb[7].mxu0 }
 0x480   :  { %v8021_v31 = vpack.c.bf16 %v66_v24, %v65_v23 }
 0x482   :  { %8022 = vmatprep.subr.bf16.mxu1 %v8021_v31 }
 0x483   :  { %8024 = vmatpush3.bf16.msra.mxu1 %v8021_v31 }
 0x484   :  { %8026 = vmatprep.subr.bf16.mxu1 %v8025_v32 }
 0x487   :  { %8028 = vmatpush3.bf16.msra.mxu1 %v8025_v32 }
 0x488   :  { %7639 = vmatprep.subr.mxu1 %v8415_v11 }
 0x4d3   :  { %v1114_v40 = vpop.f32.mrb[8].mxu0 }
 0x4d4   :  { %v7580_v41 = vpop.f32.mrb[9].mxu0  ;;  %1500 = vrot.lane.b32.xlu0 %v1114_v40, %s8413_s12 }
 0x4d7   :  { %v1266_v42 = vpop.f32.mrb[10].mxu0 }
 0x4d8   :  { %v1190_v43 = vpop.f32.mrb[14].mxu1  ;;  %1508 = vrot.lane.b32.xlu0 %v1266_v42, %s8423_s16  ;;  %v7590_v44 = vpop.f32.mrb[11].mxu0 }
 0x4d9   :  { %1502 = vrot.lane.b32.xlu1 %v1190_v43, %s8413_s12  ;;  %v7585_v45 = vpop.f32.mrb[15].mxu1  ;;  %v59_v44 = vld [vmem:[%s9485_s1 + $0x8] sm:$0xff] }
 0x4db   :  { %v1418_v46 = vpop.f32.mrb[12].mxu0 }
 0x4dc   :  { %v1342_v47 = vpop.f32.mrb[16].mxu1  ;;  %1516 = vrot.lane.b32.xlu0 %v1418_v46, %s8424_s17  ;;  %v7600_v48 = vpop.f32.mrb[13].mxu0 }
 0x4dd   :  { %1510 = vrot.lane.b32.xlu1 %v1342_v47, %s8423_s16  ;;  %v7595_v49 = vpop.f32.mrb[17].mxu1  ;;  %v7165_v47 = vld [vmem:[%s9490_s6 + $0x6] ss:$0 sm:$0xff] }
 0x4e0   :  { %v1494_v50 = vpop.f32.mrb[18].mxu1 }
 0x4e1   :  { %1518 = vrot.lane.b32.xlu1 %v1494_v50, %s8424_s17  ;;  %v7605_v51 = vpop.f32.mrb[19].mxu1 }
 0x4e2   :  { %v7166_v51 = vld [vmem:[%s9490_s6 + $0x7] ss:$0 sm:$0xff] }
 0x546   :  { %v1501_v52 = vpop.permute.xlu0 %1500 }
 0x547   :  { %v1522_v55 = vsel %vm187_vm2, %v962_v30, %v1501_v52  ;;  %v58_v30 = vld [vmem:[%s9485_s1] sm:$0xff] }
 0x54a   :  { %v1509_v53 = vpop.permute.xlu0 %1508 }
 0x54b   :  { %v1503_v54 = vpop.permute.xlu1 %1502  ;;  %v1525_v56 = vsel %vm1524_vm3, %v1522_v55, %v1509_v53 }
 0x54c   :  { %v1523_v60 = vsel %vm187_vm2, %v1038_v28, %v1503_v54 }
 0x54e   :  { %v1517_v57 = vpop.permute.xlu0 %1516 }
 0x54f   :  { %v1511_v58 = vpop.permute.xlu1 %1510  ;;  %v1528_v59 = vsel %vm1527_vm4, %v1525_v56, %v1517_v57 }
 0x550   :  { %7614 = vmatprep.mubr.msk.f32.mxu0 %vm74_vm0, %v1528_v59  ;;  %v1526_v61 = vsel %vm1524_vm3, %v1523_v60, %v1511_v58 }
 0x553   :  { %v1519_v62 = vpop.permute.xlu1 %1518 }
 0x554   :  { %v1529_v63 = vsel %vm1527_vm4, %v1526_v61, %v1519_v62 }
 0x555   :  { %7615 = vmatmul.mubr.msk.f32.vlgmr.msra.gmra.mrb[14].mxu0 %vm74_vm0, %v1529_v63 }
 0x556   :  { %7636 = vmatprep.mubr.msk.f32.mxu0 %vm74_vm0, %v58_v30 }
 0x628   :  { %v7616_v7 = vpop.f32.mrb[14].mxu0 }
 0x629   :  { %v1628_v9 = vadd.f32 %v7616_v7, %v7162_v4  ;;  %v1622_v19 = vpop.f32.mrb[15].mxu0 }
 0x62a   :  { %v1623_v20 = vadd.f32 %v7162_v4, %v1622_v19 }
 0x62b   :  { %v1632_v10 = vadd.f32 %v1628_v9, %v8515_v8 }
 0x62c   :  { %v1631_v12 = vadd.f32 %v1623_v20, %v8506_v6 }
 0x62d   :  { %v1638_v21 = vsel %vm74_vm0, %v1632_v10, 0.0 }
 0x62e   :  { %1639 = vadd.xlane.f32.xlu1 %v1638_v21  ;;  %v1635_v22 = vsel %vm74_vm0, %v1631_v12, 0.0 }
 0x62f   :  { %1636 = vadd.xlane.f32.xlu0 %v1635_v22 }
 0x63f   :  { %8158 = vrot.lane.b32.xlu1 %v8729_v25, %s8420_s10 }
 0x643   :  { %1777 = vrot.lane.b32.xlu1 %v7167_v33, %s8420_s10 }
 0x6bb   :  { %v1640_v13 = vpop.xlane.xlu1 %1639 }
 0x6bc   :  { %v1643_v26 = vmul.f32 0.03125, %v1640_v13  ;;  %v1637_v16 = vpop.xlane.xlu0 %1636 }
 0x6bd   :  { %v1642_v18 = vmul.f32 0.03125, %v1637_v16 }
 0x6be   :  { %v1645_v8 = vsub.f32 %v1632_v10, %v1643_v26 }
 0x6bf   :  { %v1644_v2 = vsub.f32 %v1631_v12, %v1642_v18  ;;  %v8159_v1 = vpop.permute.xlu1 %8158 }
 0x6c0   :  { %v1647_v6 = vmul.f32 %v1645_v8, %v1645_v8  ;;  %v8161_v15 = vunpack.i.h.bf16 %v8159_v1  ;;  %v8160_v27 = vunpack.i.l.bf16 %v8159_v1 }
 0x6c1   :  { %v1646_v14 = vmul.f32 %v1644_v2, %v1644_v2 }
 0x6c2   :  { %v1651_v5 = vsel %vm74_vm0, %v1647_v6, 0.0  ;;  %v8029_v28 = vpack.c.bf16 %v8161_v15, %v8160_v27 }
 0x6c3   :  { %1652 = vadd.xlane.f32.xlu0 %v1651_v5  ;;  %v1648_v0 = vsel %vm74_vm0, %v1646_v14, 0.0  ;;  %v1778_v55 = vpop.permute.xlu1 %1777 }
 0x6c4   :  { %8030 = vmatprep.subr.bf16.mxu0 %v8029_v28 }
 0x6c5   :  { %8032 = vmatpush3.bf16.msra.mxu0 %v8029_v28 }
 0x6c7   :  { %1649 = vadd.xlane.f32.xlu0 %v1648_v0  ;;  %v55_v0 = vld [vmem:[%s9487_s3] sm:$0xff] }
 0x6dd   :  { %8163 = vrot.lane.b32.xlu0 %v8735_v29, %s8420_s10 }
 0x750   :  { %v1653_v34 = vpop.xlane.xlu0 %1652 }
 0x751   :  { %v1655_v35 = vmul.f32 0.03125, %v1653_v34 }
 0x753   :  { %v1657_v36 = vadd.f32 1e-05, %v1655_v35 }
 0x754   :  { %v1650_v37 = vpop.xlane.xlu0 %1649 }
 0x755   :  { %8239 = vrsqrt.f32 %v1657_v36  ;;  %v1654_v38 = vmul.f32 0.03125, %v1650_v37 }
 0x757   :  { %v1656_v39 = vadd.f32 1e-05, %v1654_v38 }
 0x758   :  { %v8164_v40 = vpop.permute.xlu0 %8163 }
 0x759   :  { %8241 = vrsqrt.f32 %v1656_v39  ;;  %v8166_v41 = vunpack.i.h.bf16 %v8164_v40  ;;  %v8165_v42 = vunpack.i.l.bf16 %v8164_v40 }
 0x75b   :  { %v8033_v43 = vpack.c.bf16 %v8166_v41, %v8165_v42 }
 0x75d   :  { %8034 = vmatprep.subr.bf16.mxu0 %v8033_v43 }
 0x75e   :  { %8036 = vmatpush3.bf16.msra.mxu0 %v8033_v43 }
 0x75f   :  { %v8240_v45 = vpop.eup %8239  ;;  %7649 = vmatprep.subr.mxu0 %v8415_v11 }
 0x760   :  { %v1661_v46 = vmul.f32 %v8240_v45, %v1645_v8 }
 0x761   :  { %7637 = vmatmul.mubr.msk.f32.vlgmr.msra.gmra.mrb[16].mxu0 %vm74_vm0, %v59_v44 }
 0x762   :  { %7651 = vmatprep.mubr.msk.f32.mxu0 %vm8418_vm1, %v8415_v11  ;;  %v1667_v50 = vmul.f32 %v7165_v47, %v1661_v46 }
 0x763   :  { %v8242_v48 = vpop.eup %8241 }
 0x764   :  { %v1660_v49 = vmul.f32 %v8242_v48, %v1644_v2  ;;  %v8763_v54 = vadd.f32 %v7166_v51, %v1667_v50 }
 0x766   :  { %v1666_v52 = vmul.f32 %v7165_v47, %v1660_v49 }
 0x768   :  { %v8761_v53 = vadd.f32 %v7166_v51, %v1666_v52 }
 0x76a   :  { %7625 = vmatprep.mubr.msk.f32.mxu1 %vm74_vm0, %v8761_v53 }
 0x76b   :  { %7626 = vmatmul.mubr.msk.f32.vlgmr.msra.gmra.mrb[20].mxu1 %vm74_vm0, %v8763_v54 }
 0x76c   :  { %7641 = vmatprep.mubr.msk.f32.mxu1 %vm8418_vm1, %v8415_v11 }
 0x834   :  { %v7638_v56 = vpop.f32.mrb[16].mxu0 }
 0x835   :  { %v1852_v57 = vpop.f32.mrb[17].mxu0  ;;  %v8773_v59 = vadd.f32 %v7638_v56, %v1778_v55 }
 0x836   :  { %v8771_v58 = vadd.f32 %v1852_v57, %v1778_v55 }
 0x838   :  { %1884 = vrot.lane.b32.xlu1 %v8771_v58, %s8417_s0  ;;  %7640 = vmatpush3.xpose.msk.msra.mxu1 %vm187_vm2, %v8771_v58 }
 0x839   :  { %7644 = vmatprep.subr.mxu1 %v8415_v11 }
 0x83c   :  { %1886 = vrot.lane.b32.xlu1 %v8773_v59, %s8417_s0 }
 0x83e   :  { %v7627_v60 = vpop.f32.mrb[20].mxu1 }
 0x83f   :  { %v1757_v61 = vadd.f32 %v7627_v60, %v7167_v33  ;;  %v1751_v62 = vpop.f32.mrb[21].mxu1 }
 0x840   :  { %v1752_v63 = vadd.f32 %v7167_v33, %v1751_v62  ;;  %1888 = vrot.lane.b32.xlu1 %v8771_v58, %s8416_s8 }
 0x841   :  { %1866 = vrot.lane.b32.xlu0 %v1757_v61, %s8417_s0  ;;  %v1897_v7 = vmul.f32 0.35355338, %v1757_v61 }
 0x842   :  { %v1896_v4 = vmul.f32 0.35355338, %v1752_v63 }
 0x844   :  { %1890 = vrot.lane.b32.xlu1 %v8773_v59, %s8416_s8  ;;  %7642 = vmatmul.mubr.msk.f32.vlgmr.msra.gmra.mrb[22].mxu1 %vm187_vm2, %v1896_v4 }
 0x845   :  { %7645 = vmatpush3.xpose.msk.msra.mxu1 %vm187_vm2, %v8773_v59  ;;  %1872 = vrot.lane.b32.xlu0 %v1757_v61, %s8416_s8 }
 0x846   :  { %7646 = vmatprep.mubr.msk.f32.mxu1 %vm8418_vm1, %v8415_v11  ;;  %7654 = vmatprep.subr.mxu1 %v8415_v11 }
 0x848   :  { %1892 = vrot.lane.b32.xlu1 %v8771_v58, %s8419_s9  ;;  %7647 = vmatmul.mubr.msk.f32.vlgmr.msra.gmra.mrb[24].mxu1 %vm187_vm2, %v1897_v7 }
 0x849   :  { %1864 = vrot.lane.b32.xlu0 %v1752_v63, %s8417_s0  ;;  %7656 = vmatprep.mubr.msk.f32.mxu1 %vm8418_vm1, %v8415_v11 }
 0x84c   :  { %1894 = vrot.lane.b32.xlu1 %v8773_v59, %s8419_s9 }
 0x84d   :  { %1870 = vrot.lane.b32.xlu0 %v1752_v63, %s8416_s8 }
 0x851   :  { %1876 = vrot.lane.b32.xlu0 %v1752_v63, %s8419_s9 }
 0x855   :  { %1878 = vrot.lane.b32.xlu0 %v1757_v61, %s8419_s9 }
 0x8aa   :  { %v8805_v9 = vpop.permute.xlu1 %1884 }
 0x8ab   :  { %7650 = vmatpush3.xpose.msk.msra.mxu0 %vm187_vm2, %v8805_v9 }
 0x8ac   :  { %7659 = vmatprep.subr.mxu0 %v8415_v11 }
 0x8ae   :  { %v8810_v19 = vpop.permute.xlu1 %1886 }
 0x8af   :  { %7655 = vmatpush3.xpose.msk.msra.mxu1 %vm187_vm2, %v8810_v19 }
 0x8b0   :  { %7664 = vmatprep.subr.mxu1 %v8415_v11 }
 0x8b2   :  { %v8815_v20 = vpop.permute.xlu1 %1888 }
 0x8b3   :  { %v1867_v10 = vpop.permute.xlu0 %1866 }
 0x8b4   :  { %v1899_v12 = vmul.f32 0.35355338, %v1867_v10 }
 0x8b6   :  { %v8817_v21 = vpop.permute.xlu1 %1890  ;;  %7657 = vmatmul.mubr.msk.f32.vlgmr.msra.gmra.mrb[26].mxu1 %vm187_vm2, %v1899_v12 }
 0x8b7   :  { %v1873_v22 = vpop.permute.xlu0 %1872  ;;  %7665 = vmatpush3.xpose.msk.msra.mxu1 %vm187_vm2, %v8817_v21  ;;  %7666 = vmatprep.mubr.msk.f32.mxu1 %vm8418_vm1, %v8415_v11 }
 0x8b8   :  { %v1901_v23 = vmul.f32 0.35355338, %v1873_v22  ;;  %7674 = vmatprep.subr.mxu1 %v8415_v11 }
 0x8ba   :  { %v8825_v24 = vpop.permute.xlu1 %1892  ;;  %7667 = vmatmul.mubr.msk.f32.vlgmr.msra.gmra.mrb[28].mxu1 %vm187_vm2, %v1901_v23 }
 0x8bb   :  { %v1865_v13 = vpop.permute.xlu0 %1864  ;;  %7676 = vmatprep.mubr.msk.f32.mxu1 %vm8418_vm1, %v8415_v11 }
 0x8bc   :  { %v1898_v26 = vmul.f32 0.35355338, %v1865_v13 }
 0x8be   :  { %7652 = vmatmul.mubr.msk.f32.vlgmr.msra.gmra.mrb[18].mxu0 %vm187_vm2, %v1898_v26  ;;  %v8831_v16 = vpop.permute.xlu1 %1894 }
 0x8bf   :  { %7660 = vmatpush3.xpose.msk.msra.mxu0 %vm187_vm2, %v8815_v20  ;;  %v1871_v18 = vpop.permute.xlu0 %1870  ;;  %7675 = vmatpush3.xpose.msk.msra.mxu1 %vm187_vm2, %v8831_v16 }
 0x8c0   :  { %v1900_v8 = vmul.f32 0.35355338, %v1871_v18  ;;  %7661 = vmatprep.mubr.msk.f32.mxu0 %vm8418_vm1, %v8415_v11  ;;  %7669 = vmatprep.subr.mxu0 %v8415_v11 }
 0x8c1   :  { %7684 = vmatprep.subr.mxu1 %v8415_v11 }
 0x8c2   :  { %7662 = vmatmul.mubr.msk.f32.vlgmr.msra.gmra.mrb[20].mxu0 %vm187_vm2, %v1900_v8 }
 0x8c3   :  { %7670 = vmatpush3.xpose.msk.msra.mxu0 %vm187_vm2, %v8825_v24  ;;  %v1877_v2 = vpop.permute.xlu0 %1876  ;;  %7671 = vmatprep.mubr.msk.f32.mxu0 %vm8418_vm1, %v8415_v11 }
 0x8c4   :  { %v1902_v6 = vmul.f32 0.35355338, %v1877_v2  ;;  %7679 = vmatprep.subr.mxu0 %v8415_v11 }
 0x8c6   :  { %7672 = vmatmul.mubr.msk.f32.vlgmr.msra.gmra.mrb[22].mxu0 %vm187_vm2, %v1902_v6 }
 0x8c7   :  { %v1879_v5 = vpop.permute.xlu0 %1878  ;;  %7681 = vmatprep.mubr.msk.f32.mxu0 %vm8418_vm1, %v8415_v11 }
 0x8c8   :  { %v1903_v14 = vmul.f32 0.35355338, %v1879_v5 }
 0x8ca   :  { %7677 = vmatmul.mubr.msk.f32.vlgmr.msra.gmra.mrb[30].mxu1 %vm187_vm2, %v1903_v14 }
 0x8cb   :  { %7686 = vmatprep.mubr.msk.f32.mxu1 %vm8418_vm1, %v8415_v11 }
 0x917   :  { %v1975_v1 = vpop.f32.mrb[22].mxu1 }
 0x918   :  { %v1976_v3 = vadd.f32 %v1975_v1, %v55_v0  ;;  %v7643_v17 = vpop.f32.mrb[23].mxu1 }
 0x91a   :  { %v2504_v15 = vsel %vm187_vm2, %v1976_v3, -inf }
 0x91b   :  { %2505 = vmax.xlane.f32.xlu1 %v2504_v15  ;;  %v2050_v27 = vpop.f32.mrb[24].mxu1 }
 0x91c   :  { %v2051_v28 = vadd.f32 %v2050_v27, %v55_v0  ;;  %v7648_v30 = vpop.f32.mrb[25].mxu1 }
 0x91e   :  { %v2507_v31 = vsel %vm187_vm2, %v2051_v28, -inf }
 0x91f   :  { %2508 = vmax.xlane.f32.xlu0 %v2507_v31 }
 0x989   :  { %v2200_v32 = vpop.f32.mrb[26].mxu1 }
 0x98a   :  { %v2201_v33 = vadd.f32 %v2200_v32, %v55_v0  ;;  %v7658_v34 = vpop.f32.mrb[27].mxu1 }
 0x98c   :  { %v2513_v35 = vsel %vm187_vm2, %v2201_v33, -inf }
 0x98d   :  { %2514 = vmax.xlane.f32.xlu1 %v2513_v35  ;;  %v2350_v36 = vpop.f32.mrb[28].mxu1 }
 0x98e   :  { %v2351_v37 = vadd.f32 %v2350_v36, %v55_v0  ;;  %v7668_v38 = vpop.f32.mrb[29].mxu1 }
 0x990   :  { %v2519_v39 = vsel %vm187_vm2, %v2351_v37, -inf }
 0x991   :  { %v2125_v40 = vpop.f32.mrb[18].mxu0  ;;  %2520 = vmax.xlane.f32.xlu1 %v2519_v39 }
 0x992   :  { %v2126_v41 = vadd.f32 %v2125_v40, %v55_v0  ;;  %v7653_v42 = vpop.f32.mrb[19].mxu0 }
 0x994   :  { %v2510_v43 = vsel %vm187_vm2, %v2126_v41, -inf }
 0x995   :  { %v2275_v44 = vpop.f32.mrb[20].mxu0  ;;  %2511 = vmax.xlane.f32.xlu0 %v2510_v43 }
 0x996   :  { %v2276_v45 = vadd.f32 %v2275_v44, %v55_v0  ;;  %v7663_v46 = vpop.f32.mrb[21].mxu0 }
 0x998   :  { %v2516_v47 = vsel %vm187_vm2, %v2276_v45, -inf }
 0x999   :  { %v2425_v48 = vpop.f32.mrb[22].mxu0  ;;  %2517 = vmax.xlane.f32.xlu0 %v2516_v47 }
 0x99a   :  { %v2426_v49 = vadd.f32 %v2425_v48, %v55_v0  ;;  %v7673_v50 = vpop.f32.mrb[23].mxu0 }
 0x99c   :  { %v2522_v51 = vsel %vm187_vm2, %v2426_v49, -inf }
 0x99d   :  { %2523 = vmax.xlane.f32.xlu0 %v2522_v51  ;;  %v2500_v52 = vpop.f32.mrb[30].mxu1 }
 0x99e   :  { %v2501_v55 = vadd.f32 %v2500_v52, %v55_v0  ;;  %v7678_v56 = vpop.f32.mrb[31].mxu1 }
 0x9a0   :  { %v2525_v57 = vsel %vm187_vm2, %v2501_v55, -inf }
 0x9a1   :  { %2526 = vmax.xlane.f32.xlu1 %v2525_v57 }
 0x9a8   :  { %v2506_v60 = vpop.xlane.xlu1 %2505 }
 0x9a9   :  { %v2528_v61 = vsub.f32 %v1976_v3, %v2506_v60 }
 0x9ab   :  { %v2536_v63 = vmul.f32 1.442695, %v2528_v61 }
 0x9ac   :  { %v2509_v62 = vpop.xlane.xlu0 %2508 }
 0x9ad   :  { %8243 = vpow2.f32 %v2536_v63 }
 0x9b2   :  { %2668 = vrot.lane.b32.xlu1 %v8773_v59, %s8420_s10  ;;  %v2529_v59 = vsub.f32 %v2051_v28, %v2509_v62 }
 0x9b3   :  { %2592 = vrot.lane.b32.xlu0 %v8771_v58, %s8420_s10 }
 0x9b4   :  { %v2538_v4 = vmul.f32 1.442695, %v2529_v59 }
 0x9b6   :  { %2744 = vrot.lane.b32.xlu1 %v8805_v9, %s8420_s10  ;;  %8245 = vpow2.f32 %v2538_v4 }
 0x9b7   :  { %2820 = vrot.lane.b32.xlu0 %v8810_v19, %s8420_s10  ;;  %v8876_v58 = vpop.eup %8243 }
 0x9b8   :  { %v2552_v7 = vsel %vm187_vm2, %v8876_v58, 0.0 }
 0x9ba   :  { %2896 = vrot.lane.b32.xlu1 %v8815_v20, %s8420_s10 }
 0x9bb   :  { %2972 = vrot.lane.b32.xlu0 %v8817_v21, %s8420_s10 }
 0x9c0   :  { %v8880_v9 = vpop.eup %8245 }
 0x9c1   :  { %v2555_v19 = vsel %vm187_vm2, %v8880_v9, 0.0 }
 0x9da   :  { %2553 = vadd.xlane.f32.xlu0 %v2552_v7 }
 0x9de   :  { %2556 = vadd.xlane.f32.xlu1 %v2555_v19 }
 0xa1a   :  { %v2515_v20 = vpop.xlane.xlu1 %2514 }
 0xa1b   :  { %v2531_v10 = vsub.f32 %v2201_v33, %v2515_v20 }
 0xa1d   :  { %v2542_v12 = vmul.f32 1.442695, %v2531_v10 }
 0xa1e   :  { %v2521_v21 = vpop.xlane.xlu1 %2520 }
 0xa1f   :  { %8247 = vpow2.f32 %v2542_v12  ;;  %v2533_v22 = vsub.f32 %v2351_v37, %v2521_v21 }
 0xa21   :  { %v2546_v23 = vmul.f32 1.442695, %v2533_v22 }
 0xa22   :  { %v2512_v13 = vpop.xlane.xlu0 %2511 }
 0xa23   :  { %8249 = vpow2.f32 %v2546_v23  ;;  %v2530_v26 = vsub.f32 %v2126_v41, %v2512_v13 }
 0xa25   :  { %v2540_v18 = vmul.f32 1.442695, %v2530_v26 }
 0xa26   :  { %v2518_v8 = vpop.xlane.xlu0 %2517 }
 0xa27   :  { %8251 = vpow2.f32 %v2540_v18  ;;  %v2532_v2 = vsub.f32 %v2276_v45, %v2518_v8 }
 0xa29   :  { %v8884_v6 = vpop.eup %8247  ;;  %v2544_v5 = vmul.f32 1.442695, %v2532_v2 }
 0xa2a   :  { %v2524_v14 = vpop.xlane.xlu0 %2523  ;;  %v2561_v0 = vsel %vm187_vm2, %v8884_v6, 0.0 }
 0xa2b   :  { %8253 = vpow2.f32 %v2544_v5  ;;  %v2534_v1 = vsub.f32 %v2426_v49, %v2524_v14  ;;  %2562 = vadd.xlane.f32.xlu1 %v2561_v0 }
 0xa2d   :  { %v8888_v3 = vpop.eup %8249  ;;  %v2548_v17 = vmul.f32 1.442695, %v2534_v1 }
 0xa2e   :  { %v2593_v15 = vpop.permute.xlu0 %2592  ;;  %v2527_v27 = vpop.xlane.xlu1 %2526  ;;  %v2567_v28 = vsel %vm187_vm2, %v8888_v3, 0.0 }
 0xa2f   :  { %8255 = vpow2.f32 %v2548_v17  ;;  %v2535_v30 = vsub.f32 %v2501_v55, %v2527_v27  ;;  %7680 = vmatpush3.msra.mxu0 %v2593_v15  ;;  %2568 = vadd.xlane.f32.xlu1 %v2567_v28 }
 0xa30   :  { %7689 = vmatprep.subr.mxu0 %v8415_v11 }
 0xa31   :  { %v8252_v31 = vpop.eup %8251  ;;  %v2550_v32 = vmul.f32 1.442695, %v2535_v30 }
 0xa32   :  { %v2669_v33 = vpop.permute.xlu1 %2668  ;;  %v2558_v34 = vsel %vm187_vm2, %v8252_v31, 0.0  ;;  %v2821_v41 = vpop.permute.xlu0 %2820 }
 0xa33   :  { %8257 = vpow2.f32 %v2550_v32  ;;  %2559 = vadd.xlane.f32.xlu0 %v2558_v34  ;;  %7685 = vmatpush3.msra.mxu1 %v2669_v33 }
 0xa34   :  { %7694 = vmatprep.subr.mxu1 %v8415_v11 }
 0xa35   :  { %v8895_v35 = vpop.eup %8253 }
 0xa36   :  { %v2564_v36 = vsel %vm187_vm2, %v8895_v35, 0.0  ;;  %v2745_v42 = vpop.permute.xlu1 %2744  ;;  %v2973_v43 = vpop.permute.xlu0 %2972 }
 0xa37   :  { %2565 = vadd.xlane.f32.xlu0 %v2564_v36 }
 0xa39   :  { %v8899_v37 = vpop.eup %8255 }
 0xa3a   :  { %v2570_v38 = vsel %vm187_vm2, %v8899_v37, 0.0  ;;  %v2897_v44 = vpop.permute.xlu1 %2896 }
 0xa3b   :  { %2571 = vadd.xlane.f32.xlu0 %v2570_v38 }
 0xa3d   :  { %v8903_v39 = vpop.eup %8257 }
 0xa3e   :  { %v2573_v40 = vsel %vm187_vm2, %v8903_v39, 0.0 }
 0xa3f   :  { %2574 = vadd.xlane.f32.xlu1 %v2573_v40 }
 0xa50   :  { %3048 = vrot.lane.b32.xlu1 %v8825_v24, %s8420_s10 }
 0xa51   :  { %3124 = vrot.lane.b32.xlu0 %v8831_v16, %s8420_s10 }
 0xa54   :  { %8168 = vrot.lane.b32.xlu1 %v8729_v25, %s8422_s15 }
 0xa55   :  { %8173 = vrot.lane.b32.xlu0 %v8735_v29, %s8422_s15 }
 0xa67   :  { %v2554_v45 = vpop.xlane.xlu0 %2553 }
 0xa68   :  { %8259 = vrcp.f32 %v2554_v45 }
 0xa6b   :  { %v2557_v46 = vpop.xlane.xlu1 %2556 }
 0xa6c   :  { %8261 = vrcp.f32 %v2557_v46  ;;  %v7196_v46 = vld [vmem:[%s9490_s6 + $0x3] ss:$0 sm:$0xff] }
 0xa72   :  { %v8260_v47 = vpop.eup %8259 }
 0xa73   :  { %v2584_v48 = vmul.f32 %v8260_v47, %v8876_v58 }
 0xa75   :  { %7682 = vmatmul.mubr.msk.f32.vlgmr.msra.gmra.mrb[24].mxu0 %vm187_vm2, %v2584_v48 }
 0xa76   :  { %v8262_v49 = vpop.eup %8261  ;;  %7690 = vmatpush3.msra.mxu0 %v2745_v42  ;;  %7691 = vmatprep.mubr.msk.f32.mxu0 %vm8418_vm1, %v8415_v11 }
 0xa77   :  { %v2585_v24 = vmul.f32 %v8262_v49, %v8880_v9  ;;  %7699 = vmatprep.subr.mxu0 %v8415_v11 }
 0xa79   :  { %7687 = vmatmul.mubr.msk.f32.vlgmr.msra.gmra.mrb[32].mxu1 %vm187_vm2, %v2585_v24 }
 0xa7a   :  { %7695 = vmatpush3.msra.mxu1 %v2821_v41  ;;  %7696 = vmatprep.mubr.msk.f32.mxu1 %vm8418_vm1, %v8415_v11 }
 0xa7b   :  { %7704 = vmatprep.subr.mxu1 %v8415_v11 }
 0xab8   :  { %v2563_v16 = vpop.xlane.xlu1 %2562 }
 0xab9   :  { %8263 = vrcp.f32 %v2563_v16 }
 0xabc   :  { %v2569_v50 = vpop.xlane.xlu1 %2568 }
 0xabd   :  { %8265 = vrcp.f32 %v2569_v50 }
 0xac0   :  { %v2560_v51 = vpop.xlane.xlu0 %2559 }
 0xac1   :  { %8267 = vrcp.f32 %v2560_v51 }
 0xac3   :  { %v8264_v52 = vpop.eup %8263 }
 0xac4   :  { %v2566_v55 = vpop.xlane.xlu0 %2565  ;;  %v2587_v56 = vmul.f32 %v8264_v52, %v8884_v6 }
 0xac5   :  { %8269 = vrcp.f32 %v2566_v55 }
 0xac6   :  { %7697 = vmatmul.mubr.msk.f32.vlgmr.msra.gmra.mrb[34].mxu1 %vm187_vm2, %v2587_v56 }
 0xac7   :  { %v8266_v57 = vpop.eup %8265  ;;  %7705 = vmatpush3.msra.mxu1 %v2973_v43  ;;  %7706 = vmatprep.mubr.msk.f32.mxu1 %vm8418_vm1, %v8415_v11 }
 0xac8   :  { %v2572_v60 = vpop.xlane.xlu0 %2571  ;;  %v2589_v61 = vmul.f32 %v8266_v57, %v8888_v3  ;;  %7714 = vmatprep.subr.mxu1 %v8415_v11 }
 0xac9   :  { %8271 = vrcp.f32 %v2572_v60 }
 0xaca   :  { %7707 = vmatmul.mubr.msk.f32.vlgmr.msra.gmra.mrb[36].mxu1 %vm187_vm2, %v2589_v61 }
 0xacb   :  { %v8268_v62 = vpop.eup %8267  ;;  %7716 = vmatprep.mubr.msk.f32.mxu1 %vm8418_vm1, %v8415_v11 }
 0xacc   :  { %v3125_v63 = vpop.permute.xlu0 %3124  ;;  %v2575_v59 = vpop.xlane.xlu1 %2574  ;;  %v2586_v4 = vmul.f32 %v8268_v62, %v8252_v31 }
 0xacd   :  { %8273 = vrcp.f32 %v2575_v59  ;;  %7715 = vmatpush3.msra.mxu1 %v3125_v63 }
 0xace   :  { %7692 = vmatmul.mubr.msk.f32.vlgmr.msra.gmra.mrb[26].mxu0 %vm187_vm2, %v2586_v4 }
 0xacf   :  { %v8270_v58 = vpop.eup %8269  ;;  %7700 = vmatpush3.msra.mxu0 %v2897_v44  ;;  %7701 = vmatprep.mubr.msk.f32.mxu0 %vm8418_vm1, %v8415_v11 }
 0xad0   :  { %v3049_v7 = vpop.permute.xlu1 %3048  ;;  %7709 = vmatprep.subr.mxu0 %v8415_v11  ;;  %v2588_v9 = vmul.f32 %v8270_v58, %v8895_v35  ;;  %v8174_v8 = vpop.permute.xlu0 %8173  ;;  %v3370_v58 = vld [vmem:[#allocation4 + $0x8] sm:$0xff] }
 0xad1   :  { %v8176_v2 = vunpack.i.h.bf16 %v8174_v8  ;;  %v8175_v6 = vunpack.i.l.bf16 %v8174_v8 }
 0xad2   :  { %7702 = vmatmul.mubr.msk.f32.vlgmr.msra.gmra.mrb[28].mxu0 %vm187_vm2, %v2588_v9 }
 0xad3   :  { %v8272_v19 = vpop.eup %8271  ;;  %7710 = vmatpush3.msra.mxu0 %v3049_v7  ;;  %7711 = vmatprep.mubr.msk.f32.mxu0 %vm8418_vm1, %v8415_v11  ;;  %v8041_v14 = vpack.c.bf16 %v8176_v2, %v8175_v6  ;;  %v3371_v7 = vld [vmem:[#allocation4 + $0x10] sm:$0xff] }
 0xad4   :  { %v2590_v20 = vmul.f32 %v8272_v19, %v8899_v37  ;;  %v8169_v13 = vpop.permute.xlu1 %8168  ;;  %v3372_v19 = vld [vmem:[#allocation4 + $0x18] sm:$0xff] }
 0xad5   :  { %v8171_v26 = vunpack.i.h.bf16 %v8169_v13  ;;  %v8170_v18 = vunpack.i.l.bf16 %v8169_v13  ;;  %v3377_v13 = vld [vmem:[#allocation4 + $0x40] sm:$0xff] }
 0xad6   :  { %7712 = vmatmul.mubr.msk.f32.vlgmr.msra.gmra.mrb[30].mxu0 %vm187_vm2, %v2590_v20  ;;  %v8049_v20 = vpack.c.bf16 %v3372_v19, %v3371_v7  ;;  %v9002_v7 = vld [vmem:[#allocation2 + $0x58] sm:$0xff] }
 0xad7   :  { %v8274_v10 = vpop.eup %8273  ;;  %v8037_v5 = vpack.c.bf16 %v8171_v26, %v8170_v18  ;;  %v3378_v26 = vld [vmem:[#allocation4 + $0x48] sm:$0xff] }
 0xad8   :  { %v2591_v12 = vmul.f32 %v8274_v10, %v8903_v39  ;;  %v3373_v10 = vld [vmem:[#allocation4 + $0x20] sm:$0xff]  ;;  %v8061_v18 = vpack.c.bf16 %v3378_v26, %v3377_v13  ;;  %v7207_v13 = vld [vmem:[%s9490_s6 + $0xa] ss:$0 sm:$0xff] }
 0xad9   :  { %8038 = vmatprep.subr.bf16.mxu0 %v8037_v5 }
 0xada   :  { %7717 = vmatmul.mubr.msk.f32.vlgmr.msra.gmra.mrb[38].mxu1 %vm187_vm2, %v2591_v12  ;;  %8040 = vmatpush3.bf16.msra.mxu0 %v8037_v5  ;;  %v3374_v12 = vld [vmem:[#allocation4 + $0x28] sm:$0xff] }
 0xadb   :  { %8042 = vmatprep.subr.bf16.mxu0 %v8041_v14 }
 0xade   :  { %8044 = vmatpush3.bf16.msra.mxu0 %v8041_v14 }
 0xb48   :  { %v2664_v29 = vpop.f32.mrb[24].mxu0 }
 0xb49   :  { %v7683_v21 = vpop.f32.mrb[25].mxu0 }
 0xb4a   :  { %v8053_v21 = vpack.c.bf16 %v3374_v12, %v3373_v10 }
 0xb4c   :  { %v2740_v22 = vpop.f32.mrb[32].mxu1  ;;  %8054 = vmatprep.subr.bf16.mxu0 %v8053_v21 }
 0xb4d   :  { %v7688_v23 = vpop.f32.mrb[33].mxu1 }
 0xb99   :  { %v2892_v0 = vpop.f32.mrb[34].mxu1 }
 0xb9a   :  { %3204 = vrot.lane.b32.xlu0 %v2892_v0, %s8413_s12  ;;  %v7698_v1 = vpop.f32.mrb[35].mxu1 }
 0xb9d   :  { %v3044_v25 = vpop.f32.mrb[36].mxu1 }
 0xb9e   :  { %3212 = vrot.lane.b32.xlu0 %v3044_v25, %s8423_s16  ;;  %v7708_v3 = vpop.f32.mrb[37].mxu1  ;;  %v7199_v25 = vld [vmem:[%s9490_s6 + $0x8] ss:$0 sm:$0xff] }
 0xba1   :  { %v2816_v17 = vpop.f32.mrb[26].mxu0 }
 0xba2   :  { %3202 = vrot.lane.b32.xlu1 %v2816_v17, %s8413_s12  ;;  %v7693_v15 = vpop.f32.mrb[27].mxu0 }
 0xba5   :  { %v2968_v27 = vpop.f32.mrb[28].mxu0 }
 0xba6   :  { %3210 = vrot.lane.b32.xlu1 %v2968_v27, %s8423_s16  ;;  %v7703_v28 = vpop.f32.mrb[29].mxu0  ;;  %v7200_v27 = vld [vmem:[%s9490_s6 + $0x9] ss:$0 sm:$0xff] }
 0xba9   :  { %v3120_v30 = vpop.f32.mrb[30].mxu0 }
 0xbaa   :  { %3218 = vrot.lane.b32.xlu1 %v3120_v30, %s8424_s17  ;;  %v7713_v31 = vpop.f32.mrb[31].mxu0 }
 0xbad   :  { %v3196_v32 = vpop.f32.mrb[38].mxu1 }
 0xbae   :  { %3220 = vrot.lane.b32.xlu0 %v3196_v32, %s8424_s17  ;;  %v7718_v33 = vpop.f32.mrb[39].mxu1 }
 0xbaf   :  { %v3379_v33 = vld [vmem:[#allocation4 + $0x50] sm:$0xff] }
 0xc0c   :  { %v3205_v35 = vpop.permute.xlu0 %3204 }
 0xc0d   :  { %v3225_v42 = vsel %vm187_vm2, %v2740_v22, %v3205_v35  ;;  %v3376_v22 = vld [vmem:[#allocation4 + $0x38] sm:$0xff] }
 0xc10   :  { %v3213_v38 = vpop.permute.xlu0 %3212 }
 0xc11   :  { %v3227_v43 = vsel %vm1524_vm3, %v3225_v42, %v3213_v38 }
 0xc14   :  { %v3203_v34 = vpop.permute.xlu1 %3202 }
 0xc15   :  { %v3224_v37 = vsel %vm187_vm2, %v2664_v29, %v3203_v34  ;;  %v3375_v29 = vld [vmem:[#allocation4 + $0x30] sm:$0xff]  ;;  %v3380_v34 = vld [vmem:[#allocation4 + $0x58] sm:$0xff] }
 0xc16   :  { %v8057_v23 = vpack.c.bf16 %v3376_v22, %v3375_v29  ;;  %v8065_v35 = vpack.c.bf16 %v3380_v34, %v3379_v33 }
 0xc18   :  { %v3211_v36 = vpop.permute.xlu1 %3210 }
 0xc19   :  { %v3226_v39 = vsel %vm1524_vm3, %v3224_v37, %v3211_v36  ;;  %v7201_v36 = vld [vmem:[%s9490_s6 + $0x4] ss:$0 sm:$0xff] }
 0xc1c   :  { %v3219_v40 = vpop.permute.xlu1 %3218 }
 0xc1d   :  { %v3228_v41 = vsel %vm1527_vm4, %v3226_v39, %v3219_v40 }
 0xc1e   :  { %7727 = vmatprep.mubr.msk.f32.mxu0 %vm74_vm0, %v3228_v41 }
 0xc20   :  { %v3221_v44 = vpop.permute.xlu0 %3220 }
 0xc21   :  { %v3229_v45 = vsel %vm1527_vm4, %v3227_v43, %v3221_v44  ;;  %v7204_v43 = vld [vmem:[%s9490_s6 + $0x5] ss:$0 sm:$0xff] }
 0xc22   :  { %7728 = vmatmul.mubr.msk.f32.vlgmr.msra.gmra.mrb[32].mxu0 %vm74_vm0, %v3229_v45 }
 0xc23   :  { %8056 = vmatpush3.bf16.msra.mxu0 %v8053_v21 }
 0xc24   :  { %8058 = vmatprep.subr.bf16.mxu0 %v8057_v23 }
 0xc27   :  { %8060 = vmatpush3.bf16.msra.mxu0 %v8057_v23 }
 0xc28   :  { %8062 = vmatprep.subr.bf16.mxu0 %v8061_v18 }
 0xc2b   :  { %8064 = vmatpush3.bf16.msra.mxu0 %v8061_v18 }
 0xc2c   :  { %8066 = vmatprep.subr.bf16.mxu0 %v8065_v35 }
 0xc2f   :  { %8068 = vmatpush3.bf16.msra.mxu0 %v8065_v35 }
 0xc30   :  { %7781 = vmatprep.subr.mxu0 %v8415_v11 }
 0xcf5   :  { %v7729_v47 = vpop.f32.mrb[32].mxu0 }
 0xcf6   :  { %v3324_v48 = vadd.f32 %v7729_v47, %v7196_v46  ;;  %v3318_v49 = vpop.f32.mrb[33].mxu0 }
 0xcf7   :  { %v3319_v24 = vadd.f32 %v7196_v46, %v3318_v49 }
 0xcf8   :  { %v3328_v16 = vadd.f32 %v3324_v48, %v8763_v54 }
 0xcf9   :  { %v3327_v50 = vadd.f32 %v3319_v24, %v8761_v53  ;;  %v3369_v53 = vld [vmem:[#allocation4] sm:$0xff] }
 0xcfa   :  { %v3334_v51 = vsel %vm74_vm0, %v3328_v16, 0.0  ;;  %v8045_v9 = vpack.c.bf16 %v3370_v58, %v3369_v53 }
 0xcfb   :  { %3335 = vadd.xlane.f32.xlu0 %v3334_v51  ;;  %v3331_v52 = vsel %vm74_vm0, %v3327_v50, 0.0 }
 0xcfc   :  { %3332 = vadd.xlane.f32.xlu1 %v3331_v52  ;;  %8046 = vmatprep.subr.bf16.mxu1 %v8045_v9 }
 0xcfd   :  { %8048 = vmatpush3.bf16.msra.mxu1 %v8045_v9 }
 0xcfe   :  { %8050 = vmatprep.subr.bf16.mxu1 %v8049_v20 }
 0xd01   :  { %8052 = vmatpush3.bf16.msra.mxu1 %v8049_v20 }
 0xd88   :  { %v3336_v55 = vpop.xlane.xlu0 %3335 }
 0xd89   :  { %v3338_v56 = vmul.f32 0.03125, %v3336_v55  ;;  %v3333_v57 = vpop.xlane.xlu1 %3332 }
 0xd8a   :  { %v3337_v60 = vmul.f32 0.03125, %v3333_v57 }
 0xd8b   :  { %v3340_v61 = vsub.f32 %v3328_v16, %v3338_v56 }
 0xd8c   :  { %v3339_v62 = vsub.f32 %v3327_v50, %v3337_v60 }
 0xd8d   :  { %v3342_v63 = vmul.f32 %v3340_v61, %v3340_v61 }
 0xd8e   :  { %v3341_v59 = vmul.f32 %v3339_v62, %v3339_v62 }
 0xd8f   :  { %v3346_v4 = vsel %vm74_vm0, %v3342_v63, 0.0 }
 0xd90   :  { %3347 = vadd.xlane.f32.xlu1 %v3346_v4  ;;  %v3343_v54 = vsel %vm74_vm0, %v3341_v59, 0.0  ;;  %v8992_v59 = vld [vmem:[#allocation2 + $0x40] sm:$0xff]  ;;  %v8994_v4 = vld [vmem:[#allocation2 + $0x48] sm:$0xff] }
 0xd91   :  { %3344 = vadd.xlane.f32.xlu0 %v3343_v54  ;;  %v8996_v54 = vld [vmem:[#allocation2 + $0x50] sm:$0xff]  ;;  %v8177_v53 = vpack.i.bf16 %v8994_v4, %v8992_v59  ;;  %v8069_v58 = vpack.c.bf16 %v8994_v4, %v8992_v59 }
 0xd92   :  { %v8182_v9 = vpack.i.bf16 %v9002_v7, %v8996_v54  ;;  %v8073_v19 = vpack.c.bf16 %v9002_v7, %v8996_v54 }
 0xd93   :  { %8070 = vmatprep.subr.bf16.mxu1 %v8069_v58 }
 0xe1d   :  { %v3348_v8 = vpop.xlane.xlu1 %3347 }
 0xe1e   :  { %v3350_v2 = vmul.f32 0.03125, %v3348_v8  ;;  %v3345_v6 = vpop.xlane.xlu0 %3344 }
 0xe1f   :  { %v3349_v5 = vmul.f32 0.03125, %v3345_v6 }
 0xe20   :  { %v3352_v14 = vadd.f32 1e-05, %v3350_v2  ;;  %v7208_v2 = vld [vmem:[%s9490_s6 + $0xb] ss:$0 sm:$0xff] }
 0xe21   :  { %v3351_v0 = vadd.f32 1e-05, %v3349_v5 }
 0xe22   :  { %8275 = vrsqrt.f32 %v3352_v14 }
 0xe23   :  { %8277 = vrsqrt.f32 %v3351_v0 }
 0xe2c   :  { %v8276_v1 = vpop.eup %8275 }
 0xe2d   :  { %v8278_v3 = vpop.eup %8277  ;;  %v3356_v17 = vmul.f32 %v8276_v1, %v3340_v61  ;;  %v7210_v1 = vld [vmem:[%s9490_s6 + $0x10] ss:$0 sm:$0xff] }
 0xe2e   :  { %v3355_v15 = vmul.f32 %v8278_v3, %v3339_v62 }
 0xe2f   :  { %v3362_v28 = vmul.f32 %v7199_v25, %v3356_v17 }
 0xe30   :  { %v3361_v30 = vmul.f32 %v7199_v25, %v3355_v15 }
 0xe31   :  { %v3368_v32 = vadd.f32 %v7200_v27, %v3362_v28 }
 0xe32   :  { %v3367_v31 = vadd.f32 %v7200_v27, %v3361_v30 }
 0xe34   :  { %7738 = vmatprep.mubr.msk.f32.mxu1 %vm74_vm0, %v3367_v31 }
 0xe35   :  { %7739 = vmatmul.mubr.msk.f32.vlgmr.msra.gmra.mrb[40].mxu1 %vm74_vm0, %v3368_v32 }
 0xe36   :  { %8072 = vmatpush3.bf16.msra.mxu1 %v8069_v58 }
 0xe37   :  { %8074 = vmatprep.subr.bf16.mxu1 %v8073_v19 }
 0xe3a   :  { %8076 = vmatpush3.bf16.msra.mxu1 %v8073_v19 }
 0xe3b   :  { %7771 = vmatprep.subr.mxu1 %v8415_v11 }
 0xf08   :  { %v7740_v37 = vpop.f32.mrb[40].mxu1 }
 0xf09   :  { %v3464_v38 = vadd.f32 %v7740_v37, %v7201_v36  ;;  %v3458_v39 = vpop.f32.mrb[41].mxu1 }
 0xf0a   :  { %v3459_v40 = vadd.f32 %v7201_v36, %v3458_v39 }
 0xf0b   :  { %v3468_v42 = vmax.f32 %v3464_v38, 0.0 }
 0xf0c   :  { %v3467_v41 = vmax.f32 %v3459_v40, 0.0 }
 0xf0e   :  { %7757 = vmatprep.mubr.msk.f32.mxu0 %vm3474_vm5, %v3467_v41 }
 0xf0f   :  { %7758 = vmatmul.mubr.msk.f32.vlgmr.msra.gmra.mrb[34].mxu0 %vm3474_vm5, %v3468_v42 }
 0xf10   :  { %7783 = vmatprep.mubr.msk.f32.mxu0 %vm8418_vm1, %v8415_v11 }
 0xfe2   :  { %v7759_v44 = vpop.f32.mrb[34].mxu0 }
 0xfe3   :  { %v3553_v45 = vadd.f32 %v7759_v44, %v7204_v43  ;;  %v3547_v46 = vpop.f32.mrb[35].mxu0 }
 0xfe4   :  { %v3548_v47 = vadd.f32 %v7204_v43, %v3547_v46 }
 0xfe5   :  { %v3557_v48 = vadd.f32 %v3553_v45, %v3368_v32 }
 0xfe6   :  { %v3556_v49 = vadd.f32 %v3548_v47, %v3367_v31 }
 0xfe7   :  { %v3563_v24 = vsel %vm74_vm0, %v3557_v48, 0.0 }
 0xfe8   :  { %3564 = vadd.xlane.f32.xlu1 %v3563_v24  ;;  %v3560_v16 = vsel %vm74_vm0, %v3556_v49, 0.0 }
 0xfe9   :  { %3561 = vadd.xlane.f32.xlu0 %v3560_v16  ;;  %v8359_v16 = vld [vmem:[%s9486_s2] sm:$0xff] }
0x1075   :  { %v3565_v50 = vpop.xlane.xlu1 %3564 }
0x1076   :  { %v3567_v51 = vmul.f32 0.03125, %v3565_v50  ;;  %v3562_v52 = vpop.xlane.xlu0 %3561 }
0x1077   :  { %v3566_v55 = vmul.f32 0.03125, %v3562_v52 }
0x1078   :  { %v3569_v56 = vsub.f32 %v3557_v48, %v3567_v51 }
0x1079   :  { %v3568_v57 = vsub.f32 %v3556_v49, %v3566_v55 }
0x107a   :  { %v3571_v60 = vmul.f32 %v3569_v56, %v3569_v56 }
0x107b   :  { %v3570_v61 = vmul.f32 %v3568_v57, %v3568_v57 }
0x107c   :  { %v3575_v62 = vsel %vm74_vm0, %v3571_v60, 0.0 }
0x107d   :  { %3576 = vadd.xlane.f32.xlu1 %v3575_v62  ;;  %v3572_v63 = vsel %vm74_vm0, %v3570_v61, 0.0 }
0x107e   :  { %3573 = vadd.xlane.f32.xlu0 %v3572_v63 }
0x110a   :  { %v3577_v20 = vpop.xlane.xlu1 %3576 }
0x110b   :  { %v3579_v10 = vmul.f32 0.03125, %v3577_v20  ;;  %v3574_v12 = vpop.xlane.xlu0 %3573 }
0x110c   :  { %v3578_v29 = vmul.f32 0.03125, %v3574_v12 }
0x110d   :  { %v3581_v21 = vadd.f32 1e-05, %v3579_v10 }
0x110e   :  { %v3580_v22 = vadd.f32 1e-05, %v3578_v29 }
0x110f   :  { %8279 = vrsqrt.f32 %v3581_v21 }
0x1110   :  { %8281 = vrsqrt.f32 %v3580_v22 }
0x1119   :  { %v8280_v23 = vpop.eup %8279 }
0x111a   :  { %v8282_v26 = vpop.eup %8281  ;;  %v3585_v18 = vmul.f32 %v8280_v23, %v3569_v56 }
0x111b   :  { %v3584_v8 = vmul.f32 %v8282_v26, %v3568_v57 }
0x111c   :  { %v3591_v6 = vmul.f32 %v7207_v13, %v3585_v18 }
0x111d   :  { %v3590_v5 = vmul.f32 %v7207_v13, %v3584_v8 }
0x111e   :  { %v9017_v0 = vadd.f32 %v7208_v2, %v3591_v6 }
0x111f   :  { %v9015_v14 = vadd.f32 %v7208_v2, %v3590_v5 }
0x1121   :  { %7768 = vmatprep.mubr.msk.f32.mxu1 %vm74_vm0, %v9015_v14 }
0x1122   :  { %7769 = vmatmul.mubr.msk.f32.vlgmr.msra.gmra.mrb[42].mxu1 %vm74_vm0, %v9017_v0 }
0x1123   :  { %7773 = vmatprep.mubr.msk.f32.mxu1 %vm8418_vm1, %v8415_v11 }
0x11f5   :  { %v7770_v25 = vpop.f32.mrb[42].mxu1 }
0x11f6   :  { %v9028_v3 = vadd.f32 %v7770_v25, %v7210_v1  ;;  %v3686_v17 = vpop.f32.mrb[43].mxu1 }
0x11f7   :  { %v9030_v15 = vadd.f32 %v7210_v1, %v3686_v17 }
0x11f8   :  { %3700 = vrot.lane.b32.xlu1 %v9028_v3, %s8417_s0  ;;  %v3717_v37 = vmul.f32 0.35355338, %v9028_v3 }
0x11f9   :  { %3698 = vrot.lane.b32.xlu0 %v9030_v15, %s8417_s0  ;;  %v3716_v35 = vmul.f32 0.35355338, %v9030_v15 }
0x11fc   :  { %3704 = vrot.lane.b32.xlu1 %v9030_v15, %s8416_s8 }
0x11fd   :  { %3706 = vrot.lane.b32.xlu0 %v9028_v3, %s8416_s8 }
0x1200   :  { %3710 = vrot.lane.b32.xlu1 %v9030_v15, %s8419_s9 }
0x1201   :  { %3712 = vrot.lane.b32.xlu0 %v9028_v3, %s8419_s9 }
0x1204   :  { %3724 = vrot.lane.b32.xlu1 %v9030_v15, %s8420_s10 }
0x1205   :  { %3801 = vrot.lane.b32.xlu0 %v9028_v3, %s8420_s10 }
0x126a   :  { %v9048_v27 = vpop.permute.xlu1 %3700 }
0x126b   :  { %3955 = vrot.lane.b32.xlu0 %v9048_v27, %s8420_s10  ;;  %v9052_v28 = vpop.permute.xlu0 %3698  ;;  %v3719_v40 = vmul.f32 0.35355338, %v9048_v27 }
0x126c   :  { %3878 = vrot.lane.b32.xlu1 %v9052_v28, %s8420_s10  ;;  %v3718_v41 = vmul.f32 0.35355338, %v9052_v28 }
0x126e   :  { %v9056_v30 = vpop.permute.xlu1 %3704 }
0x126f   :  { %v9058_v31 = vpop.permute.xlu0 %3706  ;;  %v3720_v44 = vmul.f32 0.35355338, %v9056_v30 }
0x1270   :  { %4032 = vrot.lane.b32.xlu1 %v9056_v30, %s8420_s10  ;;  %4109 = vrot.lane.b32.xlu0 %v9058_v31, %s8420_s10  ;;  %v3721_v45 = vmul.f32 0.35355338, %v9058_v31 }
0x1272   :  { %v9064_v32 = vpop.permute.xlu1 %3710 }
0x1273   :  { %v9066_v33 = vpop.permute.xlu0 %3712  ;;  %v3722_v48 = vmul.f32 0.35355338, %v9064_v32 }
0x1274   :  { %4186 = vrot.lane.b32.xlu1 %v9064_v32, %s8420_s10  ;;  %4263 = vrot.lane.b32.xlu0 %v9066_v33, %s8420_s10  ;;  %v3723_v49 = vmul.f32 0.35355338, %v9066_v33 }
0x1276   :  { %v3725_v34 = vpop.permute.xlu1 %3724 }
0x1277   :  { %7772 = vmatpush3.xpose.msk.msra.mxu1 %vm187_vm2, %v3725_v34  ;;  %v3802_v36 = vpop.permute.xlu0 %3801 }
0x1278   :  { %7776 = vmatprep.subr.mxu1 %v8415_v11 }
0x127a   :  { %7774 = vmatmul.mubr.msk.f32.vlgmr.msra.gmra.mrb[44].mxu1 %vm187_vm2, %v3716_v35 }
0x127b   :  { %7777 = vmatpush3.xpose.msk.msra.mxu1 %vm187_vm2, %v3802_v36  ;;  %7778 = vmatprep.mubr.msk.f32.mxu1 %vm8418_vm1, %v8415_v11 }
0x127c   :  { %7786 = vmatprep.subr.mxu1 %v8415_v11 }
0x127e   :  { %7779 = vmatmul.mubr.msk.f32.vlgmr.msra.gmra.mrb[46].mxu1 %vm187_vm2, %v3717_v37 }
0x127f   :  { %7788 = vmatprep.mubr.msk.f32.mxu1 %vm8418_vm1, %v8415_v11 }
0x12dd   :  { %v3956_v38 = vpop.permute.xlu0 %3955 }
0x12de   :  { %v3879_v39 = vpop.permute.xlu1 %3878  ;;  %7787 = vmatpush3.xpose.msk.msra.mxu1 %vm187_vm2, %v3956_v38 }
0x12df   :  { %7782 = vmatpush3.xpose.msk.msra.mxu0 %vm187_vm2, %v3879_v39  ;;  %7796 = vmatprep.subr.mxu1 %v8415_v11 }
0x12e0   :  { %7791 = vmatprep.subr.mxu0 %v8415_v11 }
0x12e1   :  { %7789 = vmatmul.mubr.msk.f32.vlgmr.msra.gmra.mrb[48].mxu1 %vm187_vm2, %v3719_v40 }
0x12e2   :  { %7784 = vmatmul.mubr.msk.f32.vlgmr.msra.gmra.mrb[36].mxu0 %vm187_vm2, %v3718_v41  ;;  %v4033_v42 = vpop.permute.xlu1 %4032  ;;  %v4110_v43 = vpop.permute.xlu0 %4109  ;;  %7798 = vmatprep.mubr.msk.f32.mxu1 %vm8418_vm1, %v8415_v11 }
0x12e3   :  { %7792 = vmatpush3.xpose.msk.msra.mxu0 %vm187_vm2, %v4033_v42  ;;  %7797 = vmatpush3.xpose.msk.msra.mxu1 %vm187_vm2, %v4110_v43 }
0x12e4   :  { %7793 = vmatprep.mubr.msk.f32.mxu0 %vm8418_vm1, %v8415_v11  ;;  %7801 = vmatprep.subr.mxu0 %v8415_v11 }
0x12e5   :  { %7806 = vmatprep.subr.mxu1 %v8415_v11 }
0x12e6   :  { %7794 = vmatmul.mubr.msk.f32.vlgmr.msra.gmra.mrb[38].mxu0 %vm187_vm2, %v3720_v44  ;;  %v4187_v46 = vpop.permute.xlu1 %4186  ;;  %v4264_v47 = vpop.permute.xlu0 %4263  ;;  %7799 = vmatmul.mubr.msk.f32.vlgmr.msra.gmra.mrb[50].mxu1 %vm187_vm2, %v3721_v45 }
0x12e7   :  { %7802 = vmatpush3.xpose.msk.msra.mxu0 %vm187_vm2, %v4187_v46  ;;  %7807 = vmatpush3.xpose.msk.msra.mxu1 %vm187_vm2, %v4264_v47 }
0x12e8   :  { %7803 = vmatprep.mubr.msk.f32.mxu0 %vm8418_vm1, %v8415_v11  ;;  %7808 = vmatprep.mubr.msk.f32.mxu1 %vm8418_vm1, %v8415_v11 }
0x12e9   :  { %7811 = vmatprep.subr.mxu0 %v8415_v11  ;;  %7816 = vmatprep.subr.mxu1 %v8415_v11 }
0x12ea   :  { %7804 = vmatmul.mubr.msk.f32.vlgmr.msra.gmra.mrb[40].mxu0 %vm187_vm2, %v3722_v48  ;;  %7809 = vmatmul.mubr.msk.f32.vlgmr.msra.gmra.mrb[52].mxu1 %vm187_vm2, %v3723_v49 }
0x12eb   :  { %7813 = vmatprep.mubr.msk.f32.mxu0 %vm8418_vm1, %v8415_v11  ;;  %7818 = vmatprep.mubr.msk.f32.mxu1 %vm8418_vm1, %v8415_v11 }
0x134d   :  { %v3797_v24 = vpop.f32.mrb[44].mxu1 }
0x134e   :  { %v3798_v50 = vadd.f32 %v8359_v16, %v3797_v24  ;;  %v7775_v51 = vpop.f32.mrb[45].mxu1 }
0x1350   :  { %v4340_v52 = vsel %vm187_vm2, %v3798_v50, -inf }
0x1351   :  { %4341 = vmax.xlane.f32.xlu1 %v4340_v52  ;;  %v3874_v55 = vpop.f32.mrb[46].mxu1 }
0x1352   :  { %v3875_v56 = vadd.f32 %v8359_v16, %v3874_v55  ;;  %v7780_v57 = vpop.f32.mrb[47].mxu1 }
0x1354   :  { %v4343_v60 = vsel %vm187_vm2, %v3875_v56, -inf }
0x1355   :  { %4344 = vmax.xlane.f32.xlu0 %v4343_v60 }
0x13b4   :  { %v4028_v61 = vpop.f32.mrb[48].mxu1 }
0x13b5   :  { %v4029_v62 = vadd.f32 %v8359_v16, %v4028_v61  ;;  %v3951_v63 = vpop.f32.mrb[36].mxu0  ;;  %v7790_v58 = vpop.f32.mrb[49].mxu1 }
0x13b6   :  { %v3952_v19 = vadd.f32 %v8359_v16, %v3951_v63  ;;  %v7785_v20 = vpop.f32.mrb[37].mxu0 }
0x13b7   :  { %v4349_v10 = vsel %vm187_vm2, %v4029_v62, -inf }
0x13b8   :  { %4350 = vmax.xlane.f32.xlu1 %v4349_v10  ;;  %v4346_v12 = vsel %vm187_vm2, %v3952_v19, -inf }
0x13b9   :  { %v4105_v29 = vpop.f32.mrb[38].mxu0  ;;  %4347 = vmax.xlane.f32.xlu0 %v4346_v12  ;;  %v4182_v21 = vpop.f32.mrb[50].mxu1 }
0x13ba   :  { %v4106_v22 = vadd.f32 %v8359_v16, %v4105_v29  ;;  %v4183_v23 = vadd.f32 %v8359_v16, %v4182_v21  ;;  %v7795_v13 = vpop.f32.mrb[39].mxu0  ;;  %v7800_v26 = vpop.f32.mrb[51].mxu1 }
0x13bc   :  { %v4352_v18 = vsel %vm187_vm2, %v4106_v22, -inf  ;;  %v4355_v8 = vsel %vm187_vm2, %v4183_v23, -inf }
0x13bd   :  { %v4259_v2 = vpop.f32.mrb[40].mxu0  ;;  %4353 = vmax.xlane.f32.xlu0 %v4352_v18  ;;  %4356 = vmax.xlane.f32.xlu1 %v4355_v8  ;;  %v4336_v6 = vpop.f32.mrb[52].mxu1 }
0x13be   :  { %v4260_v5 = vadd.f32 %v8359_v16, %v4259_v2  ;;  %v4337_v1 = vadd.f32 %v8359_v16, %v4336_v6  ;;  %v7805_v25 = vpop.f32.mrb[41].mxu0  ;;  %v7810_v17 = vpop.f32.mrb[53].mxu1 }
0x13c0   :  { %v4358_v34 = vsel %vm187_vm2, %v4260_v5, -inf  ;;  %v4361_v35 = vsel %vm187_vm2, %v4337_v1, -inf }
0x13c1   :  { %4359 = vmax.xlane.f32.xlu0 %v4358_v34  ;;  %4362 = vmax.xlane.f32.xlu1 %v4361_v35 }
0x13d2   :  { %4504 = vrot.lane.b32.xlu1 %v9028_v3, %s8421_s14 }
0x13d6   :  { %4580 = vrot.lane.b32.xlu1 %v9052_v28, %s8421_s14 }
0x13d7   :  { %4428 = vrot.lane.b32.xlu0 %v9030_v15, %s8421_s14 }
0x13da   :  { %4732 = vrot.lane.b32.xlu1 %v9056_v30, %s8421_s14 }
0x13db   :  { %4656 = vrot.lane.b32.xlu0 %v9048_v27, %s8421_s14 }
0x13de   :  { %v4342_v36 = vpop.xlane.xlu1 %4341 }
0x13df   :  { %4808 = vrot.lane.b32.xlu0 %v9058_v31, %s8421_s14  ;;  %v4364_v38 = vsub.f32 %v3798_v50, %v4342_v36 }
0x13e1   :  { %v4372_v3 = vmul.f32 1.442695, %v4364_v38 }
0x13e2   :  { %v4345_v37 = vpop.xlane.xlu0 %4344 }
0x13e3   :  { %v4365_v39 = vsub.f32 %v3875_v56, %v4345_v37  ;;  %8283 = vpow2.f32 %v4372_v3 }
0x13e5   :  { %v4374_v40 = vmul.f32 1.442695, %v4365_v39 }
0x13e7   :  { %8285 = vpow2.f32 %v4374_v40 }
0x13ed   :  { %v9143_v28 = vpop.eup %8283 }
0x13ee   :  { %v4388_v30 = vsel %vm187_vm2, %v9143_v28, 0.0 }
0x13f1   :  { %v9145_v15 = vpop.eup %8285 }
0x13f2   :  { %v4391_v27 = vsel %vm187_vm2, %v9145_v15, 0.0 }
0x13fe   :  { %4389 = vadd.xlane.f32.xlu0 %v4388_v30  ;;  %4392 = vadd.xlane.f32.xlu1 %v4391_v27 }
0x1445   :  { %v4351_v31 = vpop.xlane.xlu1 %4350 }
0x1446   :  { %v4367_v41 = vsub.f32 %v4029_v62, %v4351_v31  ;;  %v4348_v42 = vpop.xlane.xlu0 %4347 }
0x1447   :  { %v4366_v43 = vsub.f32 %v3952_v19, %v4348_v42 }
0x1448   :  { %v4378_v44 = vmul.f32 1.442695, %v4367_v41 }
0x1449   :  { %v4376_v45 = vmul.f32 1.442695, %v4366_v43 }
0x144a   :  { %8287 = vpow2.f32 %v4378_v44  ;;  %v4354_v46 = vpop.xlane.xlu0 %4353  ;;  %v4357_v47 = vpop.xlane.xlu1 %4356 }
0x144b   :  { %8289 = vpow2.f32 %v4376_v45  ;;  %v4368_v48 = vsub.f32 %v4106_v22, %v4354_v46  ;;  %v4369_v49 = vsub.f32 %v4183_v23, %v4357_v47 }
0x144d   :  { %v4380_v24 = vmul.f32 1.442695, %v4368_v48  ;;  %v4382_v16 = vmul.f32 1.442695, %v4369_v49 }
0x144e   :  { %v4360_v50 = vpop.xlane.xlu0 %4359  ;;  %v4363_v51 = vpop.xlane.xlu1 %4362 }
0x144f   :  { %8291 = vpow2.f32 %v4380_v24  ;;  %v4370_v52 = vsub.f32 %v4260_v5, %v4360_v50  ;;  %v4371_v55 = vsub.f32 %v4337_v1, %v4363_v51 }
0x1450   :  { %8293 = vpow2.f32 %v4382_v16 }
0x1451   :  { %v4384_v56 = vmul.f32 1.442695, %v4370_v52  ;;  %v4386_v57 = vmul.f32 1.442695, %v4371_v55 }
0x1452   :  { %v4429_v60 = vpop.permute.xlu0 %4428  ;;  %v4505_v61 = vpop.permute.xlu1 %4504 }
0x1453   :  { %8295 = vpow2.f32 %v4384_v56  ;;  %7812 = vmatpush3.msra.mxu0 %v4429_v60  ;;  %7817 = vmatpush3.msra.mxu1 %v4505_v61 }
0x1454   :  { %v8288_v62 = vpop.eup %8287  ;;  %8297 = vpow2.f32 %v4386_v57  ;;  %7821 = vmatprep.subr.mxu0 %v8415_v11  ;;  %7826 = vmatprep.subr.mxu1 %v8415_v11 }
0x1455   :  { %v8290_v63 = vpop.eup %8289  ;;  %v4397_v58 = vsel %vm187_vm2, %v8288_v62, 0.0 }
0x1456   :  { %4398 = vadd.xlane.f32.xlu1 %v4397_v58  ;;  %v4394_v19 = vsel %vm187_vm2, %v8290_v63, 0.0  ;;  %v4657_v26 = vpop.permute.xlu0 %4656  ;;  %v4581_v18 = vpop.permute.xlu1 %4580 }
0x1457   :  { %4395 = vadd.xlane.f32.xlu0 %v4394_v19 }
0x1459   :  { %v8292_v20 = vpop.eup %8291 }
0x145a   :  { %v8294_v10 = vpop.eup %8293  ;;  %v4400_v12 = vsel %vm187_vm2, %v8292_v20, 0.0  ;;  %v4809_v8 = vpop.permute.xlu0 %4808 }
0x145b   :  { %4401 = vadd.xlane.f32.xlu0 %v4400_v12  ;;  %v4403_v29 = vsel %vm187_vm2, %v8294_v10, 0.0  ;;  %v4733_v2 = vpop.permute.xlu1 %4732 }
0x145c   :  { %4404 = vadd.xlane.f32.xlu1 %v4403_v29 }
0x145d   :  { %v9157_v21 = vpop.eup %8295 }
0x145e   :  { %v9159_v22 = vpop.eup %8297  ;;  %v4406_v23 = vsel %vm187_vm2, %v9157_v21, 0.0 }
0x145f   :  { %4407 = vadd.xlane.f32.xlu0 %v4406_v23  ;;  %v4409_v13 = vsel %vm187_vm2, %v9159_v22, 0.0 }
0x1460   :  { %4410 = vadd.xlane.f32.xlu1 %v4409_v13 }
0x1471   :  { %4884 = vrot.lane.b32.xlu1 %v9064_v32, %s8421_s14 }
0x1475   :  { %4960 = vrot.lane.b32.xlu0 %v9066_v33, %s8421_s14  ;;  %8178 = vrot.lane.b32.xlu1 %v8177_v53, %s8422_s15 }
0x1479   :  { %8183 = vrot.lane.b32.xlu0 %v8182_v9, %s8422_s15 }
0x148b   :  { %v4390_v6 = vpop.xlane.xlu0 %4389  ;;  %v4393_v5 = vpop.xlane.xlu1 %4392 }
0x148c   :  { %8299 = vrcp.f32 %v4390_v6 }
0x148d   :  { %8301 = vrcp.f32 %v4393_v5  ;;  %v8360_v5 = vld [vmem:[%s9485_s1] sm:$0xff] }
0x1496   :  { %v8300_v32 = vpop.eup %8299 }
0x1497   :  { %v8302_v33 = vpop.eup %8301  ;;  %v4420_v1 = vmul.f32 %v8300_v32, %v9143_v28  ;;  %v7238_v32 = vld [vmem:[%s9490_s6 + $0x11] ss:$0 sm:$0xff] }
0x1498   :  { %v4421_v59 = vmul.f32 %v8302_v33, %v9145_v15 }
0x1499   :  { %7814 = vmatmul.mubr.msk.f32.vlgmr.msra.gmra.mrb[42].mxu0 %vm187_vm2, %v4420_v1 }
0x149a   :  { %7819 = vmatmul.mubr.msk.f32.vlgmr.msra.gmra.mrb[54].mxu1 %vm187_vm2, %v4421_v59  ;;  %7822 = vmatpush3.msra.mxu0 %v4581_v18 }
0x149b   :  { %7827 = vmatpush3.msra.mxu1 %v4657_v26  ;;  %7828 = vmatprep.mubr.msk.f32.mxu1 %vm8418_vm1, %v8415_v11 }
0x149c   :  { %7836 = vmatprep.subr.mxu1 %v8415_v11  ;;  %7823 = vmatprep.mubr.msk.f32.mxu0 %vm8418_vm1, %v8415_v11 }
0x149d   :  { %7831 = vmatprep.subr.mxu0 %v8415_v11 }
0x14e3   :  { %v4399_v4 = vpop.xlane.xlu1 %4398 }
0x14e4   :  { %8303 = vrcp.f32 %v4399_v4  ;;  %v4396_v54 = vpop.xlane.xlu0 %4395 }
0x14e5   :  { %8305 = vrcp.f32 %v4396_v54 }
0x14e8   :  { %v4402_v53 = vpop.xlane.xlu0 %4401 }
0x14e9   :  { %8307 = vrcp.f32 %v4402_v53  ;;  %v4405_v7 = vpop.xlane.xlu1 %4404 }
0x14ea   :  { %8309 = vrcp.f32 %v4405_v7 }
0x14ec   :  { %v4408_v9 = vpop.xlane.xlu0 %4407 }
0x14ed   :  { %8311 = vrcp.f32 %v4408_v9  ;;  %v4411_v25 = vpop.xlane.xlu1 %4410 }
0x14ee   :  { %v8304_v17 = vpop.eup %8303  ;;  %8313 = vrcp.f32 %v4411_v25 }
0x14ef   :  { %v8306_v34 = vpop.eup %8305  ;;  %v4423_v35 = vmul.f32 %v8304_v17, %v8288_v62 }
0x14f0   :  { %v4422_v36 = vmul.f32 %v8306_v34, %v8290_v63  ;;  %v4961_v15 = vpop.permute.xlu0 %4960 }
0x14f1   :  { %7829 = vmatmul.mubr.msk.f32.vlgmr.msra.gmra.mrb[56].mxu1 %vm187_vm2, %v4423_v35  ;;  %v4885_v40 = vpop.permute.xlu1 %4884 }
0x14f2   :  { %7837 = vmatpush3.msra.mxu1 %v4809_v8  ;;  %7824 = vmatmul.mubr.msk.f32.vlgmr.msra.gmra.mrb[44].mxu0 %vm187_vm2, %v4422_v36 }
0x14f3   :  { %v8308_v37 = vpop.eup %8307  ;;  %7832 = vmatpush3.msra.mxu0 %v4733_v2  ;;  %7833 = vmatprep.mubr.msk.f32.mxu0 %vm8418_vm1, %v8415_v11 }
0x14f4   :  { %v8310_v38 = vpop.eup %8309  ;;  %v4424_v39 = vmul.f32 %v8308_v37, %v8292_v20  ;;  %7838 = vmatprep.mubr.msk.f32.mxu1 %vm8418_vm1, %v8415_v11  ;;  %7841 = vmatprep.subr.mxu0 %v8415_v11  ;;  %v8184_v42 = vpop.permute.xlu0 %8183 }
0x14f5   :  { %v4425_v3 = vmul.f32 %v8310_v38, %v8294_v10  ;;  %7846 = vmatprep.subr.mxu1 %v8415_v11  ;;  %v8179_v41 = vpop.permute.xlu1 %8178  ;;  %v8186_v45 = vunpack.i.h.bf16 %v8184_v42  ;;  %v8185_v46 = vunpack.i.l.bf16 %v8184_v42  ;;  %v7246_v42 = vld [vmem:[%s9490_s6 + $0x12] ss:$0 sm:$0xff] }
0x14f6   :  { %7834 = vmatmul.mubr.msk.f32.vlgmr.msra.gmra.mrb[46].mxu0 %vm187_vm2, %v4424_v39  ;;  %v8181_v43 = vunpack.i.h.bf16 %v8179_v41  ;;  %v8180_v44 = vunpack.i.l.bf16 %v8179_v41 }
0x14f7   :  { %v8312_v28 = vpop.eup %8311  ;;  %7839 = vmatmul.mubr.msk.f32.vlgmr.msra.gmra.mrb[58].mxu1 %vm187_vm2, %v4425_v3  ;;  %7842 = vmatpush3.msra.mxu0 %v4885_v40  ;;  %v8081_v48 = vpack.c.bf16 %v8186_v45, %v8185_v46  ;;  %v3607_v40 = vld [vmem:[#allocation2 + $0x78] sm:$0xff] }
0x14f8   :  { %v8314_v30 = vpop.eup %8313  ;;  %v4426_v27 = vmul.f32 %v8312_v28, %v9157_v21  ;;  %7847 = vmatpush3.msra.mxu1 %v4961_v15  ;;  %7843 = vmatprep.mubr.msk.f32.mxu0 %vm8418_vm1, %v8415_v11  ;;  %v8077_v47 = vpack.c.bf16 %v8181_v43, %v8180_v44  ;;  %v3604_v15 = vld [vmem:[#allocation2 + $0x60] sm:$0xff] }
0x14f9   :  { %v4427_v31 = vmul.f32 %v8314_v30, %v9159_v22  ;;  %7848 = vmatprep.mubr.msk.f32.mxu1 %vm8418_vm1, %v8415_v11  ;;  %v3605_v30 = vld [vmem:[#allocation2 + $0x68] sm:$0xff] }
0x14fa   :  { %7844 = vmatmul.mubr.msk.f32.vlgmr.msra.gmra.mrb[48].mxu0 %vm187_vm2, %v4426_v27  ;;  %8078 = vmatprep.subr.bf16.mxu0 %v8077_v47  ;;  %v9236_v27 = vpack.i.bf16 %v3605_v30, %v3604_v15 }
0x14fb   :  { %7849 = vmatmul.mubr.msk.f32.vlgmr.msra.gmra.mrb[60].mxu1 %vm187_vm2, %v4427_v31  ;;  %8080 = vmatpush3.bf16.msra.mxu0 %v8077_v47  ;;  %v8085_v31 = vpack.c.bf16 %v3605_v30, %v3604_v15 }
0x14fc   :  { %8082 = vmatprep.subr.bf16.mxu0 %v8081_v48 }
0x14fd   :  { %8086 = vmatprep.subr.bf16.mxu1 %v8085_v31 }
0x14fe   :  { %8088 = vmatpush3.bf16.msra.mxu1 %v8085_v31 }
0x14ff   :  { %8084 = vmatpush3.bf16.msra.mxu0 %v8081_v48 }
0x156c   :  { %v4500_v49 = vpop.f32.mrb[42].mxu0 }
0x156d   :  { %v4576_v24 = vpop.f32.mrb[54].mxu1  ;;  %v7815_v16 = vpop.f32.mrb[43].mxu0 }
0x156e   :  { %v7820_v50 = vpop.f32.mrb[55].mxu1 }
0x15c4   :  { %v4728_v51 = vpop.f32.mrb[56].mxu1 }
0x15c5   :  { %v4652_v52 = vpop.f32.mrb[44].mxu0  ;;  %5040 = vrot.lane.b32.xlu0 %v4728_v51, %s8413_s12  ;;  %v7830_v55 = vpop.f32.mrb[57].mxu1 }
0x15c6   :  { %5038 = vrot.lane.b32.xlu1 %v4652_v52, %s8413_s12  ;;  %v7825_v56 = vpop.f32.mrb[45].mxu0 }
0x15c9   :  { %v4804_v57 = vpop.f32.mrb[46].mxu0 }
0x15ca   :  { %v4880_v60 = vpop.f32.mrb[58].mxu1  ;;  %5046 = vrot.lane.b32.xlu1 %v4804_v57, %s8423_s16  ;;  %v7835_v61 = vpop.f32.mrb[47].mxu0 }
0x15cb   :  { %5048 = vrot.lane.b32.xlu0 %v4880_v60, %s8423_s16  ;;  %v7840_v62 = vpop.f32.mrb[59].mxu1  ;;  %v7243_v60 = vld [vmem:[%s9490_s6 + $0x16] ss:$0 sm:$0xff] }
0x15cd   :  { %v4956_v63 = vpop.f32.mrb[48].mxu0 }
0x15ce   :  { %v5032_v58 = vpop.f32.mrb[60].mxu1  ;;  %5054 = vrot.lane.b32.xlu1 %v4956_v63, %s8424_s17  ;;  %v7845_v19 = vpop.f32.mrb[49].mxu0 }
0x15cf   :  { %5056 = vrot.lane.b32.xlu0 %v5032_v58, %s8424_s17  ;;  %v7850_v20 = vpop.f32.mrb[61].mxu1  ;;  %v8361_v58 = vld [vmem:[%s9485_s1 + $0x8] sm:$0xff]  ;;  %v7244_v19 = vld [vmem:[%s9490_s6 + $0x17] ss:$0 sm:$0xff] }
0x1637   :  { %v5041_v10 = vpop.permute.xlu0 %5040 }
0x1638   :  { %v5039_v12 = vpop.permute.xlu1 %5038  ;;  %v5061_v23 = vsel %vm187_vm2, %v4576_v24, %v5041_v10 }
0x1639   :  { %v5060_v22 = vsel %vm187_vm2, %v4500_v49, %v5039_v12 }
0x163c   :  { %v5047_v29 = vpop.permute.xlu1 %5046 }
0x163d   :  { %v5049_v21 = vpop.permute.xlu0 %5048  ;;  %v5062_v13 = vsel %vm1524_vm3, %v5060_v22, %v5047_v29 }
0x163e   :  { %v5063_v18 = vsel %vm1524_vm3, %v5061_v23, %v5049_v21 }
0x1640   :  { %v5055_v26 = vpop.permute.xlu1 %5054 }
0x1641   :  { %v5064_v8 = vsel %vm1527_vm4, %v5062_v13, %v5055_v26  ;;  %v5057_v2 = vpop.permute.xlu0 %5056 }
0x1642   :  { %v5065_v6 = vsel %vm1527_vm4, %v5063_v18, %v5057_v2  ;;  %7859 = vmatprep.mubr.msk.f32.mxu0 %vm74_vm0, %v5064_v8 }
0x1643   :  { %7860 = vmatmul.mubr.msk.f32.vlgmr.msra.gmra.mrb[50].mxu0 %vm74_vm0, %v5065_v6 }
0x1644   :  { %7881 = vmatprep.mubr.msk.f32.mxu0 %vm74_vm0, %v8360_v5 }
0x1716   :  { %v7861_v33 = vpop.f32.mrb[50].mxu0 }
0x1717   :  { %v5164_v1 = vadd.f32 %v7861_v33, %v7238_v32  ;;  %v5158_v59 = vpop.f32.mrb[51].mxu0 }
0x1718   :  { %v5159_v4 = vadd.f32 %v7238_v32, %v5158_v59 }
0x1719   :  { %v5168_v54 = vadd.f32 %v5164_v1, %v9017_v0 }
0x171a   :  { %v5167_v53 = vadd.f32 %v5159_v4, %v9015_v14  ;;  %v3606_v14 = vld [vmem:[#allocation2 + $0x70] sm:$0xff] }
0x171b   :  { %v5174_v7 = vsel %vm74_vm0, %v5168_v54, 0.0  ;;  %v9232_v28 = vpack.i.bf16 %v3607_v40, %v3606_v14  ;;  %v8089_v41 = vpack.c.bf16 %v3607_v40, %v3606_v14  ;;  %v8362_v40 = vld [vmem:[%s9487_s3] sm:$0xff] }
0x171c   :  { %5175 = vadd.xlane.f32.xlu0 %v5174_v7  ;;  %v5171_v9 = vsel %vm74_vm0, %v5167_v53, 0.0 }
0x171d   :  { %5172 = vadd.xlane.f32.xlu1 %v5171_v9  ;;  %8090 = vmatprep.subr.bf16.mxu1 %v8089_v41 }
0x171e   :  { %8092 = vmatpush3.bf16.msra.mxu1 %v8089_v41 }
0x171f   :  { %7884 = vmatprep.subr.mxu1 %v8415_v11 }
0x17a9   :  { %v5176_v25 = vpop.xlane.xlu0 %5175 }
0x17aa   :  { %v5178_v17 = vmul.f32 0.03125, %v5176_v25  ;;  %v5173_v34 = vpop.xlane.xlu1 %5172 }
0x17ab   :  { %v5177_v35 = vmul.f32 0.03125, %v5173_v34 }
0x17ac   :  { %v5180_v36 = vsub.f32 %v5168_v54, %v5178_v17 }
0x17ad   :  { %v5179_v37 = vsub.f32 %v5167_v53, %v5177_v35 }
0x17ae   :  { %v5182_v38 = vmul.f32 %v5180_v36, %v5180_v36 }
0x17af   :  { %v5181_v39 = vmul.f32 %v5179_v37, %v5179_v37 }
0x17b0   :  { %v5186_v3 = vsel %vm74_vm0, %v5182_v38, 0.0 }
0x17b1   :  { %5187 = vadd.xlane.f32.xlu1 %v5186_v3  ;;  %v5183_v0 = vsel %vm74_vm0, %v5181_v39, 0.0 }
0x17b2   :  { %5184 = vadd.xlane.f32.xlu0 %v5183_v0 }
0x17c2   :  { %8193 = vrot.lane.b32.xlu1 %v9232_v28, %s8420_s10 }
0x17c6   :  { %5312 = vrot.lane.b32.xlu1 %v7246_v42, %s8420_s10 }
0x17c8   :  { %8188 = vrot.lane.b32.xlu0 %v9236_v27, %s8420_s10 }
0x183e   :  { %v5188_v43 = vpop.xlane.xlu1 %5187 }
0x183f   :  { %v5190_v44 = vmul.f32 0.03125, %v5188_v43  ;;  %v5185_v45 = vpop.xlane.xlu0 %5184 }
0x1840   :  { %v5189_v46 = vmul.f32 0.03125, %v5185_v45 }
0x1841   :  { %v5192_v47 = vadd.f32 1e-05, %v5190_v44 }
0x1842   :  { %v5191_v48 = vadd.f32 1e-05, %v5189_v46  ;;  %v8194_v49 = vpop.permute.xlu1 %8193 }
0x1843   :  { %8315 = vrsqrt.f32 %v5192_v47  ;;  %v8189_v24 = vpop.permute.xlu0 %8188  ;;  %v8196_v16 = vunpack.i.h.bf16 %v8194_v49  ;;  %v8195_v50 = vunpack.i.l.bf16 %v8194_v49 }
0x1844   :  { %8317 = vrsqrt.f32 %v5191_v48  ;;  %v8191_v51 = vunpack.i.h.bf16 %v8189_v24  ;;  %v8190_v52 = vunpack.i.l.bf16 %v8189_v24 }
0x1845   :  { %v8097_v56 = vpack.c.bf16 %v8196_v16, %v8195_v50 }
0x1846   :  { %v8093_v55 = vpack.c.bf16 %v8191_v51, %v8190_v52  ;;  %v5313_v21 = vpop.permute.xlu1 %5312 }
0x1848   :  { %8094 = vmatprep.subr.bf16.mxu0 %v8093_v55 }
0x1849   :  { %8096 = vmatpush3.bf16.msra.mxu0 %v8093_v55 }
0x184a   :  { %8098 = vmatprep.subr.bf16.mxu0 %v8097_v56 }
0x184d   :  { %v8316_v57 = vpop.eup %8315  ;;  %8100 = vmatpush3.bf16.msra.mxu0 %v8097_v56 }
0x184e   :  { %v8318_v61 = vpop.eup %8317  ;;  %v5196_v62 = vmul.f32 %v8316_v57, %v5180_v36  ;;  %7894 = vmatprep.subr.mxu0 %v8415_v11 }
0x184f   :  { %v5195_v63 = vmul.f32 %v8318_v61, %v5179_v37 }
0x1850   :  { %7882 = vmatmul.mubr.msk.f32.vlgmr.msra.gmra.mrb[52].mxu0 %vm74_vm0, %v8361_v58  ;;  %v5202_v20 = vmul.f32 %v7243_v60, %v5196_v62 }
0x1851   :  { %v5201_v10 = vmul.f32 %v7243_v60, %v5195_v63  ;;  %7896 = vmatprep.mubr.msk.f32.mxu0 %vm8418_vm1, %v8415_v11 }
0x1852   :  { %v9260_v29 = vadd.f32 %v7244_v19, %v5202_v20 }
0x1853   :  { %v9258_v12 = vadd.f32 %v7244_v19, %v5201_v10 }
0x1855   :  { %7870 = vmatprep.mubr.msk.f32.mxu1 %vm74_vm0, %v9258_v12 }
0x1856   :  { %7871 = vmatmul.mubr.msk.f32.vlgmr.msra.gmra.mrb[62].mxu1 %vm74_vm0, %v9260_v29 }
0x1857   :  { %7886 = vmatprep.mubr.msk.f32.mxu1 %vm8418_vm1, %v8415_v11 }
0x1923   :  { %v7883_v22 = vpop.f32.mrb[52].mxu0 }
0x1924   :  { %v5381_v23 = vpop.f32.mrb[53].mxu0  ;;  %v9270_v26 = vadd.f32 %v7883_v22, %v5313_v21 }
0x1925   :  { %v9268_v13 = vadd.f32 %v5381_v23, %v5313_v21 }
0x1927   :  { %5413 = vrot.lane.b32.xlu0 %v9268_v13, %s8417_s0  ;;  %7885 = vmatpush3.xpose.msk.msra.mxu1 %vm187_vm2, %v9268_v13 }
0x1928   :  { %7889 = vmatprep.subr.mxu1 %v8415_v11 }
0x1929   :  { %v7872_v18 = vpop.f32.mrb[62].mxu1 }
0x192a   :  { %v5292_v8 = vadd.f32 %v7872_v18, %v7246_v42  ;;  %v5286_v2 = vpop.f32.mrb[63].mxu1 }
0x192b   :  { %v5287_v6 = vadd.f32 %v7246_v42, %v5286_v2  ;;  %5415 = vrot.lane.b32.xlu0 %v9270_v26, %s8417_s0 }
0x192c   :  { %5395 = vrot.lane.b32.xlu1 %v5292_v8, %s8417_s0  ;;  %v5426_v32 = vmul.f32 0.35355338, %v5292_v8 }
0x192d   :  { %v5425_v5 = vmul.f32 0.35355338, %v5287_v6 }
0x192f   :  { %5417 = vrot.lane.b32.xlu0 %v9268_v13, %s8416_s8  ;;  %7887 = vmatmul.mubr.msk.f32.vlgmr.msra.gmra.mrb[64].mxu1 %vm187_vm2, %v5425_v5 }
0x1930   :  { %7890 = vmatpush3.xpose.msk.msra.mxu1 %vm187_vm2, %v9270_v26  ;;  %5401 = vrot.lane.b32.xlu1 %v5292_v8, %s8416_s8 }
0x1931   :  { %7891 = vmatprep.mubr.msk.f32.mxu1 %vm8418_vm1, %v8415_v11  ;;  %7899 = vmatprep.subr.mxu1 %v8415_v11 }
0x1933   :  { %5419 = vrot.lane.b32.xlu0 %v9270_v26, %s8416_s8  ;;  %7892 = vmatmul.mubr.msk.f32.vlgmr.msra.gmra.mrb[66].mxu1 %vm187_vm2, %v5426_v32 }
0x1934   :  { %5393 = vrot.lane.b32.xlu1 %v5287_v6, %s8417_s0  ;;  %7901 = vmatprep.mubr.msk.f32.mxu1 %vm8418_vm1, %v8415_v11 }
0x1937   :  { %5421 = vrot.lane.b32.xlu0 %v9268_v13, %s8419_s9 }
0x1938   :  { %5399 = vrot.lane.b32.xlu1 %v5287_v6, %s8416_s8 }
0x193b   :  { %5423 = vrot.lane.b32.xlu0 %v9270_v26, %s8419_s9 }
0x193c   :  { %5405 = vrot.lane.b32.xlu1 %v5287_v6, %s8419_s9 }
0x1940   :  { %5407 = vrot.lane.b32.xlu1 %v5292_v8, %s8419_s9 }
0x1999   :  { %v9302_v33 = vpop.permute.xlu0 %5413 }
0x199a   :  { %7895 = vmatpush3.xpose.msk.msra.mxu0 %vm187_vm2, %v9302_v33 }
0x199b   :  { %7904 = vmatprep.subr.mxu0 %v8415_v11 }
0x199d   :  { %v9307_v1 = vpop.permute.xlu0 %5415 }
0x199e   :  { %v5396_v59 = vpop.permute.xlu1 %5395  ;;  %7900 = vmatpush3.xpose.msk.msra.mxu1 %vm187_vm2, %v9307_v1 }
0x199f   :  { %v5428_v4 = vmul.f32 0.35355338, %v5396_v59  ;;  %7909 = vmatprep.subr.mxu1 %v8415_v11 }
0x19a1   :  { %v9312_v54 = vpop.permute.xlu0 %5417  ;;  %7902 = vmatmul.mubr.msk.f32.vlgmr.msra.gmra.mrb[68].mxu1 %vm187_vm2, %v5428_v4 }
0x19a2   :  { %v5402_v53 = vpop.permute.xlu1 %5401  ;;  %7911 = vmatprep.mubr.msk.f32.mxu1 %vm8418_vm1, %v8415_v11 }
0x19a3   :  { %v5430_v25 = vmul.f32 0.35355338, %v5402_v53 }
0x19a5   :  { %v9317_v7 = vpop.permute.xlu0 %5419 }
0x19a6   :  { %v5394_v9 = vpop.permute.xlu1 %5393  ;;  %7910 = vmatpush3.xpose.msk.msra.mxu1 %vm187_vm2, %v9317_v7 }
0x19a7   :  { %v5427_v17 = vmul.f32 0.35355338, %v5394_v9  ;;  %7919 = vmatprep.subr.mxu1 %v8415_v11 }
0x19a9   :  { %v9322_v34 = vpop.permute.xlu0 %5421  ;;  %7897 = vmatmul.mubr.msk.f32.vlgmr.msra.gmra.mrb[54].mxu0 %vm187_vm2, %v5427_v17  ;;  %7912 = vmatmul.mubr.msk.f32.vlgmr.msra.gmra.mrb[70].mxu1 %vm187_vm2, %v5430_v25 }
0x19aa   :  { %7905 = vmatpush3.xpose.msk.msra.mxu0 %vm187_vm2, %v9312_v54  ;;  %v5400_v35 = vpop.permute.xlu1 %5399  ;;  %7906 = vmatprep.mubr.msk.f32.mxu0 %vm8418_vm1, %v8415_v11 }
0x19ab   :  { %v5429_v36 = vmul.f32 0.35355338, %v5400_v35  ;;  %7914 = vmatprep.subr.mxu0 %v8415_v11  ;;  %7921 = vmatprep.mubr.msk.f32.mxu1 %vm8418_vm1, %v8415_v11 }
0x19ad   :  { %v9333_v37 = vpop.permute.xlu0 %5423  ;;  %7907 = vmatmul.mubr.msk.f32.vlgmr.msra.gmra.mrb[56].mxu0 %vm187_vm2, %v5429_v36 }
0x19ae   :  { %7915 = vmatpush3.xpose.msk.msra.mxu0 %vm187_vm2, %v9322_v34  ;;  %v5406_v38 = vpop.permute.xlu1 %5405  ;;  %7920 = vmatpush3.xpose.msk.msra.mxu1 %vm187_vm2, %v9333_v37 }
0x19af   :  { %v5431_v39 = vmul.f32 0.35355338, %v5406_v38  ;;  %7916 = vmatprep.mubr.msk.f32.mxu0 %vm8418_vm1, %v8415_v11  ;;  %7924 = vmatprep.subr.mxu0 %v8415_v11 }
0x19b0   :  { %7929 = vmatprep.subr.mxu1 %v8415_v11 }
0x19b1   :  { %7917 = vmatmul.mubr.msk.f32.vlgmr.msra.gmra.mrb[58].mxu0 %vm187_vm2, %v5431_v39 }
0x19b2   :  { %v5408_v3 = vpop.permute.xlu1 %5407  ;;  %7926 = vmatprep.mubr.msk.f32.mxu0 %vm8418_vm1, %v8415_v11 }
0x19b3   :  { %v5432_v0 = vmul.f32 0.35355338, %v5408_v3 }
0x19b5   :  { %7922 = vmatmul.mubr.msk.f32.vlgmr.msra.gmra.mrb[72].mxu1 %vm187_vm2, %v5432_v0 }
0x19b6   :  { %7931 = vmatprep.mubr.msk.f32.mxu1 %vm8418_vm1, %v8415_v11 }
0x1a02   :  { %v5504_v14 = vpop.f32.mrb[64].mxu1 }
0x1a03   :  { %v5505_v15 = vadd.f32 %v8362_v40, %v5504_v14  ;;  %v7888_v30 = vpop.f32.mrb[65].mxu1 }
0x1a05   :  { %v6033_v31 = vsel %vm187_vm2, %v5505_v15, -inf }
0x1a06   :  { %6034 = vmax.xlane.f32.xlu0 %v6033_v31  ;;  %v5579_v41 = vpop.f32.mrb[66].mxu1 }
0x1a07   :  { %v5580_v42 = vadd.f32 %v8362_v40, %v5579_v41  ;;  %v7893_v43 = vpop.f32.mrb[67].mxu1 }
0x1a09   :  { %v6036_v44 = vsel %vm187_vm2, %v5580_v42, -inf }
0x1a0a   :  { %6037 = vmax.xlane.f32.xlu1 %v6036_v44 }
0x1a74   :  { %v5729_v45 = vpop.f32.mrb[68].mxu1 }
0x1a75   :  { %v7903_v46 = vpop.f32.mrb[69].mxu1  ;;  %v5730_v50 = vadd.f32 %v8362_v40, %v5729_v45 }
0x1a77   :  { %v6042_v61 = vsel %vm187_vm2, %v5730_v50, -inf }
0x1a7c   :  { %v5654_v47 = vpop.f32.mrb[54].mxu0  ;;  %v5879_v48 = vpop.f32.mrb[70].mxu1 }
0x1a7d   :  { %v5655_v49 = vadd.f32 %v8362_v40, %v5654_v47  ;;  %v7898_v24 = vpop.f32.mrb[55].mxu0  ;;  %v7913_v16 = vpop.f32.mrb[71].mxu1  ;;  %v5880_v57 = vadd.f32 %v8362_v40, %v5879_v48 }
0x1a7f   :  { %v6039_v51 = vsel %vm187_vm2, %v5655_v49, -inf  ;;  %v6048_v20 = vsel %vm187_vm2, %v5880_v57, -inf }
0x1a80   :  { %v5804_v52 = vpop.f32.mrb[56].mxu0  ;;  %6040 = vmax.xlane.f32.xlu0 %v6039_v51 }
0x1a81   :  { %v5805_v55 = vadd.f32 %v8362_v40, %v5804_v52  ;;  %v7908_v56 = vpop.f32.mrb[57].mxu0 }
0x1a83   :  { %v6045_v60 = vsel %vm187_vm2, %v5805_v55, -inf }
0x1a84   :  { %v5954_v62 = vpop.f32.mrb[58].mxu0  ;;  %6046 = vmax.xlane.f32.xlu1 %v6045_v60  ;;  %6043 = vmax.xlane.f32.xlu0 %v6042_v61 }
0x1a85   :  { %v5955_v63 = vadd.f32 %v8362_v40, %v5954_v62  ;;  %v7918_v58 = vpop.f32.mrb[59].mxu0 }
0x1a87   :  { %v6051_v19 = vsel %vm187_vm2, %v5955_v63, -inf }
0x1a88   :  { %6052 = vmax.xlane.f32.xlu1 %v6051_v19  ;;  %6049 = vmax.xlane.f32.xlu0 %v6048_v20  ;;  %v6029_v10 = vpop.f32.mrb[72].mxu1 }
0x1a89   :  { %v6030_v21 = vadd.f32 %v8362_v40, %v6029_v10  ;;  %v7923_v22 = vpop.f32.mrb[73].mxu1 }
0x1a8b   :  { %v6054_v23 = vsel %vm187_vm2, %v6030_v21, -inf }
0x1a8c   :  { %6055 = vmax.xlane.f32.xlu0 %v6054_v23 }
0x1a93   :  { %v6035_v2 = vpop.xlane.xlu0 %6034 }
0x1a94   :  { %v6057_v6 = vsub.f32 %v5505_v15, %v6035_v2 }
0x1a96   :  { %v6065_v5 = vmul.f32 1.442695, %v6057_v6 }
0x1a97   :  { %v6038_v18 = vpop.xlane.xlu1 %6037 }
0x1a98   :  { %v6058_v8 = vsub.f32 %v5580_v42, %v6038_v18 }
0x1a99   :  { %6121 = vrot.lane.b32.xlu1 %v9268_v13, %s8420_s10 }
0x1a9a   :  { %v6067_v13 = vmul.f32 1.442695, %v6058_v8 }
0x1a9c   :  { %8319 = vpow2.f32 %v6067_v13 }
0x1a9d   :  { %6273 = vrot.lane.b32.xlu1 %v9302_v33, %s8420_s10  ;;  %8321 = vpow2.f32 %v6065_v5 }
0x1aa1   :  { %6349 = vrot.lane.b32.xlu1 %v9307_v1, %s8420_s10 }
0x1aa2   :  { %6197 = vrot.lane.b32.xlu0 %v9270_v26, %s8420_s10 }
0x1aa5   :  { %6501 = vrot.lane.b32.xlu1 %v9317_v7, %s8420_s10 }
0x1aa6   :  { %6425 = vrot.lane.b32.xlu0 %v9312_v54, %s8420_s10  ;;  %v9373_v32 = vpop.eup %8319 }
0x1aa7   :  { %v6084_v33 = vsel %vm187_vm2, %v9373_v32, 0.0  ;;  %v9377_v26 = vpop.eup %8321 }
0x1aa8   :  { %v6081_v1 = vsel %vm187_vm2, %v9377_v26, 0.0 }
0x1ac5   :  { %6085 = vadd.xlane.f32.xlu0 %v6084_v33 }
0x1ac9   :  { %6082 = vadd.xlane.f32.xlu1 %v6081_v1 }
0x1b0d   :  { %v6041_v59 = vpop.xlane.xlu0 %6040 }
0x1b0e   :  { %v6059_v4 = vsub.f32 %v5655_v49, %v6041_v59 }
0x1b10   :  { %v6069_v54 = vmul.f32 1.442695, %v6059_v4 }
0x1b11   :  { %v6047_v53 = vpop.xlane.xlu1 %6046  ;;  %v6044_v7 = vpop.xlane.xlu0 %6043 }
0x1b12   :  { %8323 = vpow2.f32 %v6069_v54  ;;  %v6061_v9 = vsub.f32 %v5805_v55, %v6047_v53  ;;  %v6060_v25 = vsub.f32 %v5730_v50, %v6044_v7 }
0x1b14   :  { %v6073_v17 = vmul.f32 1.442695, %v6061_v9  ;;  %v6071_v35 = vmul.f32 1.442695, %v6060_v25 }
0x1b15   :  { %v6053_v36 = vpop.xlane.xlu1 %6052  ;;  %v6050_v38 = vpop.xlane.xlu0 %6049 }
0x1b16   :  { %8325 = vpow2.f32 %v6073_v17  ;;  %v6063_v39 = vsub.f32 %v5955_v63, %v6053_v36  ;;  %v6062_v3 = vsub.f32 %v5880_v57, %v6050_v38 }
0x1b17   :  { %8327 = vpow2.f32 %v6071_v35 }
0x1b18   :  { %v6077_v0 = vmul.f32 1.442695, %v6063_v39  ;;  %v6075_v14 = vmul.f32 1.442695, %v6062_v3 }
0x1b19   :  { %v6122_v40 = vpop.permute.xlu1 %6121  ;;  %v6056_v15 = vpop.xlane.xlu0 %6055 }
0x1b1a   :  { %8329 = vpow2.f32 %v6077_v0  ;;  %v6064_v30 = vsub.f32 %v6030_v21, %v6056_v15  ;;  %7925 = vmatpush3.msra.mxu0 %v6122_v40 }
0x1b1b   :  { %8331 = vpow2.f32 %v6075_v14  ;;  %7934 = vmatprep.subr.mxu0 %v8415_v11 }
0x1b1c   :  { %v8324_v31 = vpop.eup %8323  ;;  %v6079_v41 = vmul.f32 1.442695, %v6064_v30 }
0x1b1d   :  { %v6198_v42 = vpop.permute.xlu0 %6197  ;;  %v6087_v43 = vsel %vm187_vm2, %v8324_v31, 0.0  ;;  %v6274_v52 = vpop.permute.xlu1 %6273 }
0x1b1e   :  { %8333 = vpow2.f32 %v6079_v41  ;;  %6088 = vadd.xlane.f32.xlu1 %v6087_v43  ;;  %7930 = vmatpush3.msra.mxu1 %v6198_v42 }
0x1b1f   :  { %7939 = vmatprep.subr.mxu1 %v8415_v11 }
0x1b20   :  { %v8326_v44 = vpop.eup %8325 }
0x1b21   :  { %v8328_v45 = vpop.eup %8327  ;;  %v6093_v46 = vsel %vm187_vm2, %v8326_v44, 0.0  ;;  %v6350_v55 = vpop.permute.xlu1 %6349 }
0x1b22   :  { %6094 = vadd.xlane.f32.xlu1 %v6093_v46  ;;  %v6090_v47 = vsel %vm187_vm2, %v8328_v45, 0.0  ;;  %v6426_v56 = vpop.permute.xlu0 %6425 }
0x1b23   :  { %6091 = vadd.xlane.f32.xlu0 %v6090_v47 }
0x1b24   :  { %v8330_v48 = vpop.eup %8329 }
0x1b25   :  { %v8332_v49 = vpop.eup %8331  ;;  %v6099_v24 = vsel %vm187_vm2, %v8330_v48, 0.0  ;;  %v6502_v57 = vpop.permute.xlu1 %6501 }
0x1b26   :  { %6100 = vadd.xlane.f32.xlu1 %v6099_v24  ;;  %v6096_v16 = vsel %vm187_vm2, %v8332_v49, 0.0 }
0x1b27   :  { %6097 = vadd.xlane.f32.xlu0 %v6096_v16 }
0x1b28   :  { %v9388_v50 = vpop.eup %8333 }
0x1b29   :  { %v6102_v51 = vsel %vm187_vm2, %v9388_v50, 0.0 }
0x1b2b   :  { %6103 = vadd.xlane.f32.xlu0 %v6102_v51 }
0x1b37   :  { %6653 = vrot.lane.b32.xlu1 %v9333_v37, %s8420_s10 }
0x1b3b   :  { %8203 = vrot.lane.b32.xlu1 %v9232_v28, %s8422_s15 }
0x1b41   :  { %6577 = vrot.lane.b32.xlu0 %v9322_v34, %s8420_s10 }
0x1b45   :  { %8198 = vrot.lane.b32.xlu0 %v9236_v27, %s8422_s15 }
0x1b52   :  { %v6086_v60 = vpop.xlane.xlu0 %6085 }
0x1b53   :  { %8335 = vrcp.f32 %v6086_v60  ;;  %v7276_v60 = vld [vmem:[%s9490_s6 + $0x13] ss:$0 sm:$0xff] }
0x1b56   :  { %v6083_v61 = vpop.xlane.xlu1 %6082 }
0x1b57   :  { %8337 = vrcp.f32 %v6083_v61 }
0x1b5d   :  { %v8336_v62 = vpop.eup %8335 }
0x1b5e   :  { %v6114_v63 = vmul.f32 %v8336_v62, %v9373_v32 }
0x1b60   :  { %7932 = vmatmul.mubr.msk.f32.vlgmr.msra.gmra.mrb[74].mxu1 %vm187_vm2, %v6114_v63 }
0x1b61   :  { %v8338_v58 = vpop.eup %8337  ;;  %7940 = vmatpush3.msra.mxu1 %v6350_v55  ;;  %7941 = vmatprep.mubr.msk.f32.mxu1 %vm8418_vm1, %v8415_v11 }
0x1b62   :  { %v6113_v34 = vmul.f32 %v8338_v58, %v9377_v26  ;;  %7949 = vmatprep.subr.mxu1 %v8415_v11 }
0x1b64   :  { %7927 = vmatmul.mubr.msk.f32.vlgmr.msra.gmra.mrb[60].mxu0 %vm187_vm2, %v6113_v34 }
0x1b65   :  { %7935 = vmatpush3.msra.mxu0 %v6274_v52  ;;  %7936 = vmatprep.mubr.msk.f32.mxu0 %vm8418_vm1, %v8415_v11 }
0x1b66   :  { %7944 = vmatprep.subr.mxu0 %v8415_v11 }
0x1bab   :  { %v6089_v37 = vpop.xlane.xlu1 %6088 }
0x1bac   :  { %8339 = vrcp.f32 %v6089_v37 }
0x1baf   :  { %v6095_v19 = vpop.xlane.xlu1 %6094 }
0x1bb0   :  { %8341 = vrcp.f32 %v6095_v19  ;;  %v6092_v20 = vpop.xlane.xlu0 %6091 }
0x1bb1   :  { %8343 = vrcp.f32 %v6092_v20 }
0x1bb3   :  { %v6101_v10 = vpop.xlane.xlu1 %6100 }
0x1bb4   :  { %8345 = vrcp.f32 %v6101_v10  ;;  %v6098_v21 = vpop.xlane.xlu0 %6097 }
0x1bb5   :  { %8347 = vrcp.f32 %v6098_v21 }
0x1bb6   :  { %v8340_v22 = vpop.eup %8339 }
0x1bb7   :  { %v6115_v23 = vmul.f32 %v8340_v22, %v8324_v31  ;;  %v6654_v27 = vpop.permute.xlu1 %6653 }
0x1bb8   :  { %v6104_v18 = vpop.xlane.xlu0 %6103 }
0x1bb9   :  { %8349 = vrcp.f32 %v6104_v18  ;;  %7937 = vmatmul.mubr.msk.f32.vlgmr.msra.gmra.mrb[62].mxu0 %vm187_vm2, %v6115_v23 }
0x1bba   :  { %v8342_v8 = vpop.eup %8341  ;;  %7945 = vmatpush3.msra.mxu0 %v6426_v56  ;;  %7946 = vmatprep.mubr.msk.f32.mxu0 %vm8418_vm1, %v8415_v11 }
0x1bbb   :  { %v8344_v2 = vpop.eup %8343  ;;  %v6117_v6 = vmul.f32 %v8342_v8, %v8326_v44  ;;  %7954 = vmatprep.subr.mxu0 %v8415_v11  ;;  %v8204_v38 = vpop.permute.xlu1 %8203 }
0x1bbc   :  { %v6116_v13 = vmul.f32 %v8344_v2, %v8328_v45  ;;  %v6578_v5 = vpop.permute.xlu0 %6577  ;;  %v8206_v39 = vunpack.i.h.bf16 %v8204_v38 }
0x1bbd   :  { %7947 = vmatmul.mubr.msk.f32.vlgmr.msra.gmra.mrb[64].mxu0 %vm187_vm2, %v6117_v6 }
0x1bbe   :  { %v8346_v32 = vpop.eup %8345  ;;  %7942 = vmatmul.mubr.msk.f32.vlgmr.msra.gmra.mrb[76].mxu1 %vm187_vm2, %v6116_v13  ;;  %7955 = vmatpush3.msra.mxu0 %v6578_v5  ;;  %v6900_v5 = vld [vmem:[#allocation4 + $0x68] sm:$0xff] }
0x1bbf   :  { %v8348_v33 = vpop.eup %8347  ;;  %v6119_v26 = vmul.f32 %v8346_v32, %v8330_v48  ;;  %7950 = vmatpush3.msra.mxu1 %v6502_v57  ;;  %7951 = vmatprep.mubr.msk.f32.mxu1 %vm8418_vm1, %v8415_v11 }
0x1bc0   :  { %v6118_v1 = vmul.f32 %v8348_v33, %v8332_v49  ;;  %7956 = vmatprep.mubr.msk.f32.mxu0 %vm8418_vm1, %v8415_v11  ;;  %7959 = vmatprep.subr.mxu1 %v8415_v11  ;;  %v8199_v54 = vpop.permute.xlu0 %8198  ;;  %v6901_v33 = vld [vmem:[#allocation4 + $0x70] sm:$0xff] }
0x1bc1   :  { %7957 = vmatmul.mubr.msk.f32.vlgmr.msra.gmra.mrb[66].mxu0 %vm187_vm2, %v6119_v26  ;;  %v8201_v53 = vunpack.i.h.bf16 %v8199_v54  ;;  %v8200_v7 = vunpack.i.l.bf16 %v8199_v54  ;;  %v6902_v26 = vld [vmem:[#allocation4 + $0x78] sm:$0xff] }
0x1bc2   :  { %7952 = vmatmul.mubr.msk.f32.vlgmr.msra.gmra.mrb[78].mxu1 %vm187_vm2, %v6118_v1  ;;  %v8113_v1 = vpack.c.bf16 %v6902_v26, %v6901_v33  ;;  %v7293_v33 = vld [vmem:[%s9490_s6 + $0x1a] ss:$0 sm:$0xff] }
0x1bc3   :  { %v8350_v59 = vpop.eup %8349  ;;  %7960 = vmatpush3.msra.mxu1 %v6654_v27  ;;  %7961 = vmatprep.mubr.msk.f32.mxu1 %vm8418_vm1, %v8415_v11  ;;  %v8101_v9 = vpack.c.bf16 %v8201_v53, %v8200_v7  ;;  %v8205_v11 = vunpack.i.l.bf16 %v8204_v38  ;;  %v6903_v27 = vld [vmem:[#allocation4 + $0x80] sm:$0xff]  ;;  %v6906_v53 = vld [vmem:[#allocation4 + $0x98] sm:$0xff] }
0x1bc4   :  { %v6120_v4 = vmul.f32 %v8350_v59, %v9388_v50  ;;  %v6904_v59 = vld [vmem:[#allocation4 + $0x88] sm:$0xff] }
0x1bc5   :  { %8102 = vmatprep.subr.bf16.mxu0 %v8101_v9  ;;  %v8105_v3 = vpack.c.bf16 %v8206_v39, %v8205_v11  ;;  %v8117_v54 = vpack.c.bf16 %v6904_v59, %v6903_v27  ;;  %v7294_v27 = vld [vmem:[%s9490_s6 + $0x1b] ss:$0 sm:$0xff] }
0x1bc6   :  { %7962 = vmatmul.mubr.msk.f32.vlgmr.msra.gmra.mrb[80].mxu1 %vm187_vm2, %v6120_v4  ;;  %8104 = vmatpush3.bf16.msra.mxu0 %v8101_v9  ;;  %v6905_v4 = vld [vmem:[#allocation4 + $0x90] sm:$0xff]  ;;  %v6907_v9 = vld [vmem:[#allocation4 + $0xa0] sm:$0xff] }
0x1bc7   :  { %8106 = vmatprep.subr.bf16.mxu0 %v8105_v3  ;;  %v8121_v7 = vpack.c.bf16 %v6906_v53, %v6905_v4 }
0x1bca   :  { %8108 = vmatpush3.bf16.msra.mxu0 %v8105_v3 }
0x1bcb   :  { %8118 = vmatprep.subr.bf16.mxu0 %v8117_v54 }
0x1c33   :  { %v6269_v25 = vpop.f32.mrb[74].mxu1 }
0x1c34   :  { %v7933_v17 = vpop.f32.mrb[75].mxu1 }
0x1c37   :  { %v6193_v35 = vpop.f32.mrb[60].mxu0 }
0x1c38   :  { %v7928_v36 = vpop.f32.mrb[61].mxu0 }
0x1c8c   :  { %v6345_v0 = vpop.f32.mrb[62].mxu0 }
0x1c8d   :  { %v7938_v14 = vpop.f32.mrb[63].mxu0  ;;  %6731 = vrot.lane.b32.xlu0 %v6345_v0, %s8413_s12 }
0x1c8e   :  { %v7281_v14 = vld [vmem:[%s9490_s6 + $0x18] ss:$0 sm:$0xff] }
0x1c90   :  { %v6497_v28 = vpop.f32.mrb[64].mxu0 }
0x1c91   :  { %v6421_v40 = vpop.f32.mrb[76].mxu1  ;;  %6739 = vrot.lane.b32.xlu0 %v6497_v28, %s8423_s16  ;;  %v7948_v15 = vpop.f32.mrb[65].mxu0 }
0x1c92   :  { %6733 = vrot.lane.b32.xlu1 %v6421_v40, %s8413_s12  ;;  %v7943_v30 = vpop.f32.mrb[77].mxu1  ;;  %v7282_v40 = vld [vmem:[%s9490_s6 + $0x19] ss:$0 sm:$0xff] }
0x1c94   :  { %v6649_v31 = vpop.f32.mrb[66].mxu0 }
0x1c95   :  { %v6573_v41 = vpop.f32.mrb[78].mxu1  ;;  %6747 = vrot.lane.b32.xlu0 %v6649_v31, %s8424_s17  ;;  %v7958_v42 = vpop.f32.mrb[67].mxu0 }
0x1c96   :  { %6741 = vrot.lane.b32.xlu1 %v6573_v41, %s8423_s16  ;;  %v7953_v43 = vpop.f32.mrb[79].mxu1 }
0x1c99   :  { %v6725_v44 = vpop.f32.mrb[80].mxu1 }
0x1c9a   :  { %6749 = vrot.lane.b32.xlu1 %v6725_v44, %s8424_s17  ;;  %v7963_v45 = vpop.f32.mrb[81].mxu1  ;;  %v6909_v44 = vld [vmem:[#allocation4 + $0xb0] sm:$0xff] }
0x1c9b   :  { %v6910_v45 = vld [vmem:[#allocation4 + $0xb8] sm:$0xff] }
0x1cff   :  { %v6732_v46 = vpop.permute.xlu0 %6731 }
0x1d00   :  { %v6753_v49 = vsel %vm187_vm2, %v6193_v35, %v6732_v46  ;;  %v8129_v46 = vpack.c.bf16 %v6910_v45, %v6909_v44 }
0x1d03   :  { %v6740_v47 = vpop.permute.xlu0 %6739 }
0x1d04   :  { %v6734_v48 = vpop.permute.xlu1 %6733  ;;  %v6755_v24 = vsel %vm1524_vm3, %v6753_v49, %v6740_v47  ;;  %v7284_v47 = vld [vmem:[%s9490_s6 + $0x14] ss:$0 sm:$0xff] }
0x1d05   :  { %v6754_v52 = vsel %vm187_vm2, %v6269_v25, %v6734_v48  ;;  %v6908_v25 = vld [vmem:[#allocation4 + $0xa8] sm:$0xff] }
0x1d06   :  { %v8125_v17 = vpack.c.bf16 %v6908_v25, %v6907_v9 }
0x1d07   :  { %v6748_v16 = vpop.permute.xlu0 %6747 }
0x1d08   :  { %v6757_v50 = vsel %vm1527_vm4, %v6755_v24, %v6748_v16  ;;  %v6742_v51 = vpop.permute.xlu1 %6741 }
0x1d09   :  { %7972 = vmatprep.mubr.msk.f32.mxu0 %vm74_vm0, %v6757_v50  ;;  %v6756_v55 = vsel %vm1524_vm3, %v6754_v52, %v6742_v51  ;;  %v7288_v52 = vld [vmem:[%s9490_s6 + $0x15] ss:$0 sm:$0xff] }
0x1d0c   :  { %v6750_v56 = vpop.permute.xlu1 %6749 }
0x1d0d   :  { %v6758_v57 = vsel %vm1527_vm4, %v6756_v55, %v6750_v56 }
0x1d0e   :  { %7973 = vmatmul.mubr.msk.f32.vlgmr.msra.gmra.mrb[68].mxu0 %vm74_vm0, %v6758_v57 }
0x1d0f   :  { %8120 = vmatpush3.bf16.msra.mxu0 %v8117_v54 }
0x1d10   :  { %8122 = vmatprep.subr.bf16.mxu0 %v8121_v7 }
0x1d13   :  { %8124 = vmatpush3.bf16.msra.mxu0 %v8121_v7 }
0x1d14   :  { %8126 = vmatprep.subr.bf16.mxu0 %v8125_v17 }
0x1d17   :  { %8128 = vmatpush3.bf16.msra.mxu0 %v8125_v17 }
0x1d18   :  { %8130 = vmatprep.subr.bf16.mxu0 %v8129_v46 }
0x1d1b   :  { %8132 = vmatpush3.bf16.msra.mxu0 %v8129_v46 }
0x1de1   :  { %v7974_v61 = vpop.f32.mrb[68].mxu0 }
0x1de2   :  { %v6853_v62 = vadd.f32 %v7974_v61, %v7276_v60  ;;  %v6847_v63 = vpop.f32.mrb[69].mxu0 }
0x1de3   :  { %v6848_v58 = vadd.f32 %v7276_v60, %v6847_v63 }
0x1de4   :  { %v6857_v34 = vadd.f32 %v6853_v62, %v9260_v29 }
0x1de5   :  { %v6856_v37 = vadd.f32 %v6848_v58, %v9258_v12  ;;  %v6899_v12 = vld [vmem:[#allocation4 + $0x60] sm:$0xff] }
0x1de6   :  { %v6863_v19 = vsel %vm74_vm0, %v6857_v34, 0.0  ;;  %v8109_v32 = vpack.c.bf16 %v6900_v5, %v6899_v12 }
0x1de7   :  { %6864 = vadd.xlane.f32.xlu1 %v6863_v19  ;;  %v6860_v20 = vsel %vm74_vm0, %v6856_v37, 0.0 }
0x1de8   :  { %6861 = vadd.xlane.f32.xlu0 %v6860_v20  ;;  %8110 = vmatprep.subr.bf16.mxu1 %v8109_v32 }
0x1de9   :  { %8112 = vmatpush3.bf16.msra.mxu1 %v8109_v32 }
0x1dea   :  { %8114 = vmatprep.subr.bf16.mxu1 %v8113_v1 }
0x1ded   :  { %8116 = vmatpush3.bf16.msra.mxu1 %v8113_v1 }
0x1e74   :  { %v6865_v10 = vpop.xlane.xlu1 %6864 }
0x1e75   :  { %v6867_v21 = vmul.f32 0.03125, %v6865_v10  ;;  %v6862_v22 = vpop.xlane.xlu0 %6861 }
0x1e76   :  { %v6866_v23 = vmul.f32 0.03125, %v6862_v22 }
0x1e77   :  { %v6869_v18 = vsub.f32 %v6857_v34, %v6867_v21 }
0x1e78   :  { %v6868_v8 = vsub.f32 %v6856_v37, %v6866_v23 }
0x1e79   :  { %v6871_v13 = vmul.f32 %v6869_v18, %v6869_v18 }
0x1e7a   :  { %v6870_v2 = vmul.f32 %v6868_v8, %v6868_v8 }
0x1e7b   :  { %v6875_v29 = vsel %vm74_vm0, %v6871_v13, 0.0 }
0x1e7c   :  { %v6872_v6 = vsel %vm74_vm0, %v6870_v2, 0.0 }
0x1e7d   :  { %6873 = vadd.xlane.f32.xlu0 %v6872_v6 }
0x1e81   :  { %6876 = vadd.xlane.f32.xlu0 %v6875_v29 }
0x1f0a   :  { %v6874_v35 = vpop.xlane.xlu0 %6873 }
0x1f0b   :  { %v6878_v36 = vmul.f32 0.03125, %v6874_v35 }
0x1f0d   :  { %v6880_v38 = vadd.f32 1e-05, %v6878_v36 }
0x1f0e   :  { %v6877_v39 = vpop.xlane.xlu0 %6876 }
0x1f0f   :  { %8351 = vrsqrt.f32 %v6880_v38  ;;  %v6879_v11 = vmul.f32 0.03125, %v6877_v39 }
0x1f11   :  { %v6881_v3 = vadd.f32 1e-05, %v6879_v11 }
0x1f13   :  { %8353 = vrsqrt.f32 %v6881_v3 }
0x1f19   :  { %v8352_v0 = vpop.eup %8351 }
0x1f1a   :  { %v6884_v28 = vmul.f32 %v8352_v0, %v6868_v8 }
0x1f1c   :  { %v6890_v15 = vmul.f32 %v7281_v14, %v6884_v28 }
0x1f1d   :  { %v8354_v30 = vpop.eup %8353 }
0x1f1e   :  { %v6885_v31 = vmul.f32 %v8354_v30, %v6869_v18  ;;  %v6896_v41 = vadd.f32 %v7282_v40, %v6890_v15 }
0x1f20   :  { %v6891_v42 = vmul.f32 %v7281_v14, %v6885_v31  ;;  %7983 = vmatprep.mubr.msk.f32.mxu1 %vm74_vm0, %v6896_v41 }
0x1f22   :  { %v6897_v43 = vadd.f32 %v7282_v40, %v6891_v42 }
0x1f24   :  { %7984 = vmatmul.mubr.msk.f32.vlgmr.msra.gmra.mrb[82].mxu1 %vm74_vm0, %v6897_v43 }
0x1ff7   :  { %v7985_v48 = vpop.f32.mrb[82].mxu1 }
0x1ff8   :  { %v6994_v49 = vadd.f32 %v7985_v48, %v7284_v47  ;;  %v6988_v24 = vpop.f32.mrb[83].mxu1 }
0x1ff9   :  { %v6989_v16 = vadd.f32 %v7284_v47, %v6988_v24 }
0x1ffa   :  { %v6998_v51 = vmax.f32 %v6994_v49, 0.0 }
0x1ffb   :  { %v6997_v50 = vmax.f32 %v6989_v16, 0.0 }
0x1ffd   :  { %8002 = vmatprep.mubr.msk.f32.mxu0 %vm3474_vm5, %v6997_v50 }
0x1ffe   :  { %8003 = vmatmul.mubr.msk.f32.vlgmr.msra.gmra.mrb[70].mxu0 %vm3474_vm5, %v6998_v51 }
0x20d1   :  { %v8004_v55 = vpop.f32.mrb[70].mxu0 }
0x20d2   :  { %v7082_v56 = vadd.f32 %v8004_v55, %v7288_v52  ;;  %v7076_v57 = vpop.f32.mrb[71].mxu0 }
0x20d3   :  { %v7077_v60 = vadd.f32 %v7288_v52, %v7076_v57 }
0x20d4   :  { %v7086_v61 = vadd.f32 %v7082_v56, %v6897_v43 }
0x20d5   :  { %v7085_v62 = vadd.f32 %v7077_v60, %v6896_v41 }
0x20d6   :  { %v7092_v63 = vsel %vm74_vm0, %v7086_v61, 0.0 }
0x20d7   :  { %7093 = vadd.xlane.f32.xlu0 %v7092_v63  ;;  %v7089_v58 = vsel %vm74_vm0, %v7085_v62, 0.0 }
0x20d8   :  { %7090 = vadd.xlane.f32.xlu1 %v7089_v58 }
0x2164   :  { %v7094_v34 = vpop.xlane.xlu0 %7093 }
0x2165   :  { %v7096_v37 = vmul.f32 0.03125, %v7094_v34  ;;  %v7091_v19 = vpop.xlane.xlu1 %7090 }
0x2166   :  { %v7095_v20 = vmul.f32 0.03125, %v7091_v19 }
0x2167   :  { %v7098_v10 = vsub.f32 %v7086_v61, %v7096_v37 }
0x2168   :  { %v7097_v21 = vsub.f32 %v7085_v62, %v7095_v20 }
0x2169   :  { %v7100_v22 = vmul.f32 %v7098_v10, %v7098_v10 }
0x216a   :  { %v7099_v23 = vmul.f32 %v7097_v21, %v7097_v21 }
0x216b   :  { %v7104_v18 = vsel %vm74_vm0, %v7100_v22, 0.0 }
0x216c   :  { %7105 = vadd.xlane.f32.xlu0 %v7104_v18  ;;  %v7101_v8 = vsel %vm74_vm0, %v7099_v23, 0.0 }
0x216d   :  { %7102 = vadd.xlane.f32.xlu1 %v7101_v8 }
0x21f9   :  { %v7106_v2 = vpop.xlane.xlu0 %7105 }
0x21fa   :  { %v7108_v6 = vmul.f32 0.03125, %v7106_v2  ;;  %v7103_v13 = vpop.xlane.xlu1 %7102 }
0x21fb   :  { %v7107_v29 = vmul.f32 0.03125, %v7103_v13 }
0x21fc   :  { %v7110_v12 = vadd.f32 1e-05, %v7108_v6 }
0x21fd   :  { %v7109_v5 = vadd.f32 1e-05, %v7107_v29 }
0x21fe   :  { %8355 = vrsqrt.f32 %v7110_v12 }
0x21ff   :  { %8357 = vrsqrt.f32 %v7109_v5 }
0x2208   :  { %v8356_v32 = vpop.eup %8355 }
0x2209   :  { %v8358_v26 = vpop.eup %8357  ;;  %v7114_v1 = vmul.f32 %v8356_v32, %v7098_v10 }
0x220a   :  { %v7113_v59 = vmul.f32 %v8358_v26, %v7097_v21 }
0x220b   :  { %v7120_v4 = vmul.f32 %v7293_v33, %v7114_v1 }
0x220c   :  { %v7119_v54 = vmul.f32 %v7293_v33, %v7113_v59 }
0x220d   :  { %v7126_v53 = vadd.f32 %v7294_v27, %v7120_v4 }
0x220e   :  { %v7125_v7 = vadd.f32 %v7294_v27, %v7119_v54 }
0x220f   :  { %7128 = vst.msk [vmem:[%s9491_s7 + $0x8] sm:$0xff] %vm74_vm0, %v7126_v53 }
0x2210   :  { %7127 = vst.msk [vmem:[%s9491_s7] sm:$0xff] %vm74_vm0, %v7125_v7 }
0x2211   :  { %7133 = vsyncpa [#allocation3], 1 }
0x2212   :  { %7134 = vsyncpa [#allocation5], 1 }

</bundles_post_ra>
